<compile_context>
chip_gen: v6e
topology: v6e:2x2x1
jax: 0.10.0
libtpu: 0.0.40
codegen_flags: <defaults>
</compile_context>

<pallas_src>
import functools

import numpy as np
import jax
import jax.numpy as jnp
from jax import lax
from jax.experimental import pallas as pl
from jax.experimental.pallas import tpu as pltpu

ENC_CHANNELS = [4, 8]
DEC_CHANNELS = [8, 8]   # module's own wiring requires DEC[0] == DEC[1]
IN_CHANNELS = 2


# ----------------------------------------------------------------------------
# Static layer plan (mirrors AE_Registrator.__init__ wiring).
# ----------------------------------------------------------------------------
def build_plan(enc_ch, dec_ch, h0, w0):
    plan = []
    h, w = h0, w0
    plan.append(dict(op="conv", H=h, W=w, cin=IN_CHANNELS, cout=enc_ch[0]))
    for i in range(1, len(enc_ch)):
        plan.append(dict(op="pool", H=h, W=w, c=enc_ch[i - 1]))
        h, w = h // 2, w // 2
        plan.append(dict(op="conv", H=h, W=w, cin=enc_ch[i - 1], cout=enc_ch[i]))
    plan.append(dict(op="tconv", H=h, W=w, cin=enc_ch[-1], cout=dec_ch[0]))
    h, w = 2 * h, 2 * w
    plan.append(dict(op="conv", H=h, W=w, cin=dec_ch[0], cout=dec_ch[1]))
    for i in range(1, len(dec_ch)):
        plan.append(dict(op="tconv", H=h, W=w, cin=dec_ch[i - 1], cout=dec_ch[i - 1]))
        h, w = 2 * h, 2 * w
        plan.append(dict(op="conv", H=h, W=w, cin=dec_ch[i - 1], cout=dec_ch[i]))
    return plan, (h, w, dec_ch[-1])


def init_params(key, plan):
    params = []
    keys = jax.random.split(key, 2 * len(plan) + 2)
    ki = 0
    for op in plan:
        if op["op"] == "conv":
            cin, cout = op["cin"], op["cout"]
            w = jax.random.normal(keys[ki], (cout, cin, 3, 3), jnp.float32)
            w = w / np.sqrt(cin * 9)
            b = jax.random.normal(keys[ki + 1], (cout,), jnp.float32) * 0.05
            params.append((w, b))
            ki += 2
        elif op["op"] == "tconv":
            cin, cout = op["cin"], op["cout"]
            w = jax.random.normal(keys[ki], (cin, cout, 2, 2), jnp.float32)
            w = w / np.sqrt(cin * 4)
            b = jax.random.normal(keys[ki + 1], (cout,), jnp.float32) * 0.05
            params.append((w, b))
            ki += 2
        else:
            params.append(None)
    return params


# ----------------------------------------------------------------------------
# Host-side 0/1 selection constants (exact when applied to bf16 data).
# ----------------------------------------------------------------------------
def _pool_select_matrix(h, w):
    """(h*w, (h//2)*(w//2)); picks the stride-2 window anchors."""
    ho, wo = h // 2, w // 2
    sel = np.zeros((h * w, ho * wo), np.float32)
    q = np.arange(ho * wo)
    sel[(2 * (q // wo)) * w + 2 * (q % wo), q] = 1.0
    return jnp.asarray(sel, jnp.bfloat16)


def _upsample_scatter_matrix(h, w):
    """(h*w, 4*h*w); scatters a coarse map to even rows/cols of the 2x map."""
    m = h * w
    t = np.zeros((m, 4 * m), np.float32)
    i = np.arange(m)
    t[i, (2 * (i // w)) * (2 * w) + 2 * (i % w)] = 1.0
    return jnp.asarray(t, jnp.bfloat16)


# ----------------------------------------------------------------------------
# In-kernel building blocks (operate on (channels, H*W) values).
# ----------------------------------------------------------------------------
def _conv3x3(x, w_mat, b, h, w):
    """x:(cin,h*w) f32, w_mat:(cout,9*cin) bf16, b:(cout,1) f32 -> (cout,h*w) f32."""
    cin, m = x.shape
    zpad = jnp.zeros((cin, w + 1), x.dtype)
    xp = jnp.concatenate([zpad, x, zpad], axis=1)          # (cin, m + 2w + 2)
    col = lax.broadcasted_iota(jnp.int32, (1, m), 1) % w
    taps = []
    for dy in range(3):
        for dx in range(3):
            t = xp[:, dy * w + dx: dy * w + dx + m]        # flat shift by (dy-1)*w+(dx-1)
            if dx == 0:                                    # kill horizontal row-wrap
                t = jnp.where(col >= 1, t, 0.0)
            elif dx == 2:
                t = jnp.where(col <= w - 2, t, 0.0)
            taps.append(t)
    xt = jnp.concatenate(taps, axis=0).astype(jnp.bfloat16)   # (9*cin, m)
    y = jnp.dot(w_mat, xt, preferred_element_type=jnp.float32) + b
    return jnp.maximum(y, 0.0)                             # module always applies ReLU


def _maxpool2x2(x, sel, w):
    """x:(c,h*w) f32, sel:(h*w,(h//2)*(w//2)) 0/1 bf16 -> (c,(h//2)*(w//2)) f32."""
    c, m = x.shape
    zpad = jnp.zeros((c, w + 1), x.dtype)
    xe = jnp.concatenate([x, zpad], axis=1)
    m0 = jnp.maximum(xe[:, 0:m], xe[:, 1:m + 1])
    m1 = jnp.maximum(xe[:, w:w + m], xe[:, w + 1:w + 1 + m])
    win = jnp.maximum(m0, m1).astype(jnp.bfloat16)         # 2x2-window max at each anchor
    return jnp.dot(win, sel, preferred_element_type=jnp.float32)  # exact anchor pick


def _conv_transpose2x2(x, w_cat, b_cat, t00, cout, w):
    """x:(cin,h*w) f32, w_cat:(4*cout,cin) bf16, b_cat:(4*cout,1) f32,
    t00:(h*w,4*h*w) 0/1 bf16 -> (cout, 4*h*w) f32 (row stride 2*w)."""
    cin, m = x.shape
    z = jnp.dot(w_cat, x.astype(jnp.bfloat16),
                preferred_element_type=jnp.float32) + b_cat       # (4*cout, m)
    u = jnp.dot(z.astype(jnp.bfloat16), t00,
                preferred_element_type=jnp.float32)               # (4*cout, 4m)
    out = None
    for py in range(2):
        for px in range(2):
            p = 2 * py + px
            up = u[p * cout:(p + 1) * cout, :]
            s = py * 2 * w + px                            # lane shift to phase position
            if s:
                up = jnp.concatenate(
                    [jnp.zeros((cout, s), up.dtype), up[:, :4 * m - s]], axis=1)
            out = up if out is None else out + up          # disjoint supports -> exact
    return out


# ----------------------------------------------------------------------------
# Fused forward pass: one pallas_call, grid over batch.
# ----------------------------------------------------------------------------
def make_forward(plan, out_hwc):
    hf, wf, cf = out_hwc

    consts = {}
    for li, op in enumerate(plan):
        if op["op"] == "pool":
            consts[li] = _pool_select_matrix(op["H"], op["W"])
        elif op["op"] == "tconv":
            consts[li] = _upsample_scatter_matrix(op["H"], op["W"])

    def kernel(*refs):
        x_ref, o_ref = refs[0], refs[-1]
        prm = refs[1:-1]
        i = 0
        x = x_ref[0]                                       # (cin0, H0*W0) f32
        for op in plan:
            if op["op"] == "conv":
                x = _conv3x3(x, prm[i][...], prm[i + 1][...], op["H"], op["W"])
                i += 2
            elif op["op"] == "pool":
                x = _maxpool2x2(x, prm[i][...], op["W"])
                i += 1
            else:
                x = _conv_transpose2x2(x, prm[i][...], prm[i + 1][...],
                                       prm[i + 2][...], op["cout"], op["W"])
                i += 3
        o_ref[0] = x                                       # (cf, hf*wf) f32, lane dense

    def forward(x_nchw, params):
        n, c0, h0, w0 = x_nchw.shape
        m0 = h0 * w0
        x_flat = x_nchw.reshape(n, c0, m0)

        args = []
        in_specs = [pl.BlockSpec((1, c0, m0), lambda bi: (bi, 0, 0))]
        for li, (op, p) in enumerate(zip(plan, params)):
            if op["op"] == "conv":
                wt, bias = p
                cout, cin = op["cout"], op["cin"]
                # w_mat[o, (dy*3+dx)*cin + c] = w[o, c, dy, dx]
                args.append(jnp.transpose(wt, (0, 2, 3, 1))
                            .reshape(cout, 9 * cin).astype(jnp.bfloat16))
                args.append(bias.reshape(cout, 1).astype(jnp.float32))
            elif op["op"] == "pool":
                args.append(consts[li])
            else:
                wt, bias = p
                cin, cout = op["cin"], op["cout"]
                # w_cat[(2*py+px)*cout + o, c] = w[c, o, py, px]
                args.append(jnp.transpose(wt, (2, 3, 1, 0))
                            .reshape(4 * cout, cin).astype(jnp.bfloat16))
                args.append(jnp.tile(bias.reshape(1, cout), (4, 1))
                            .reshape(4 * cout, 1).astype(jnp.float32))
                args.append(consts[li])
        for a in args:
            in_specs.append(pl.BlockSpec(a.shape,
                                         lambda bi, nd=a.ndim: (0,) * nd))

        out = pl.pallas_call(
            kernel,
            out_shape=jax.ShapeDtypeStruct((n, cf, hf * wf), jnp.float32),
            grid=(n,),
            in_specs=in_specs,
            out_specs=pl.BlockSpec((1, cf, hf * wf), lambda bi: (bi, 0, 0)),
            compiler_params=pltpu.CompilerParams(
                dimension_semantics=("parallel",),
                vmem_limit_bytes=32 * 1024 * 1024),
        )(x_flat, *args)
        return out.reshape(n, cf, hf, wf)

    return forward


# ----------------------------------------------------------------------------
# Pure-JAX reference (verification only).
# ----------------------------------------------------------------------------
def ref_forward(x, params, plan):
    hp = lax.Precision.HIGHEST
    for op, p in zip(plan, params):
        if op["op"] == "conv":
            w, b = p
            y = lax.conv_general_dilated(
                x, w, (1, 1), "SAME",
                dimension_numbers=("NCHW", "OIHW", "NCHW"), precision=hp)
            x = jnp.maximum(y + b[None, :, None, None], 0.0)
        elif op["op"] == "pool":
            x = lax.reduce_window(x, -jnp.inf, lax.max,
                                  (1, 1, 2, 2), (1, 1, 2, 2), "VALID")
        else:
            w, b = p
            t = jnp.einsum("nchw,coyx->nohywx", x, w, precision=hp)
            nn, oo, hh, _, ww, _ = t.shape
            x = t.reshape(nn, oo, 2 * hh, 2 * ww) + b[None, :, None, None]
    return x


# ----------------------------------------------------------------------------
if __name__ == "__main__":
    assert len(ENC_CHANNELS) > 1
    assert len(DEC_CHANNELS) == 1 or DEC_CHANNELS[0] == DEC_CHANNELS[1], (
        "AE_Registrator's wiring requires decoder_channels[0] == decoder_channels[1]")

    key = jax.random.PRNGKey(0)
    k_x, k_p = jax.random.split(key)

    batch, h0, w0 = 2, 16, 16
    x = jax.random.normal(k_x, (batch, IN_CHANNELS, h0, w0), jnp.float32)  # NCHW (PET+CT)

    plan, out_hwc = build_plan(ENC_CHANNELS, DEC_CHANNELS, h0, w0)
    params = init_params(k_p, plan)

    forward = jax.jit(make_forward(plan, out_hwc))
    y = jax.block_until_ready(forward(x, params))

    hf, wf, cf = out_hwc
    assert y.shape == (batch, cf, hf, wf), y.shape

    y_ref = jax.block_until_ready(
        jax.jit(functools.partial(ref_forward, plan=plan))(x, params))
    np.testing.assert_allclose(np.asarray(y), np.asarray(y_ref),
                               atol=3e-2, rtol=3e-2)
    print("KERNEL_OK")
</pallas_src>

<mosaic_0001>
module attributes {stable_mosaic.version = 11 : i64} {
  func.func @kernel(%arg0: i32, %arg1: memref<1x2x256xf32, #tpu.memory_space<vmem>>, %arg2: memref<4x18xbf16, #tpu.memory_space<vmem>>, %arg3: memref<4x1xf32, #tpu.memory_space<vmem>>, %arg4: memref<256x64xbf16, #tpu.memory_space<vmem>>, %arg5: memref<8x36xbf16, #tpu.memory_space<vmem>>, %arg6: memref<8x1xf32, #tpu.memory_space<vmem>>, %arg7: memref<32x8xbf16, #tpu.memory_space<vmem>>, %arg8: memref<32x1xf32, #tpu.memory_space<vmem>>, %arg9: memref<64x256xbf16, #tpu.memory_space<vmem>>, %arg10: memref<8x72xbf16, #tpu.memory_space<vmem>>, %arg11: memref<8x1xf32, #tpu.memory_space<vmem>>, %arg12: memref<32x8xbf16, #tpu.memory_space<vmem>>, %arg13: memref<32x1xf32, #tpu.memory_space<vmem>>, %arg14: memref<256x1024xbf16, #tpu.memory_space<vmem>>, %arg15: memref<8x72xbf16, #tpu.memory_space<vmem>>, %arg16: memref<8x1xf32, #tpu.memory_space<vmem>>, %arg17: memref<1x8x1024xf32, #tpu.memory_space<vmem>>) attributes {dimension_semantics = [#tpu.dimension_semantics<parallel>], iteration_bounds = array<i64: 2>, scalar_prefetch = 0 : i64, scratch_operands = 0 : i64, tpu.core_type = #tpu.core_type<tc>, window_params = [{transform_indices = @transform_0, window_bounds = array<i64: 1, 2, 256>}, {pipeline_mode = #tpu.pipeline_mode<synchronous>, transform_indices = @transform_1, window_bounds = array<i64: 4, 18>}, {pipeline_mode = #tpu.pipeline_mode<synchronous>, transform_indices = @transform_2, window_bounds = array<i64: 4, 1>}, {pipeline_mode = #tpu.pipeline_mode<synchronous>, transform_indices = @transform_3, window_bounds = array<i64: 256, 64>}, {pipeline_mode = #tpu.pipeline_mode<synchronous>, transform_indices = @transform_4, window_bounds = array<i64: 8, 36>}, {pipeline_mode = #tpu.pipeline_mode<synchronous>, transform_indices = @transform_5, window_bounds = array<i64: 8, 1>}, {pipeline_mode = #tpu.pipeline_mode<synchronous>, transform_indices = @transform_6, window_bounds = array<i64: 32, 8>}, {pipeline_mode = #tpu.pipeline_mode<synchronous>, transform_indices = @transform_7, window_bounds = array<i64: 32, 1>}, {pipeline_mode = #tpu.pipeline_mode<synchronous>, transform_indices = @transform_8, window_bounds = array<i64: 64, 256>}, {pipeline_mode = #tpu.pipeline_mode<synchronous>, transform_indices = @transform_9, window_bounds = array<i64: 8, 72>}, {pipeline_mode = #tpu.pipeline_mode<synchronous>, transform_indices = @transform_10, window_bounds = array<i64: 8, 1>}, {pipeline_mode = #tpu.pipeline_mode<synchronous>, transform_indices = @transform_11, window_bounds = array<i64: 32, 8>}, {pipeline_mode = #tpu.pipeline_mode<synchronous>, transform_indices = @transform_12, window_bounds = array<i64: 32, 1>}, {pipeline_mode = #tpu.pipeline_mode<synchronous>, transform_indices = @transform_13, window_bounds = array<i64: 256, 1024>}, {pipeline_mode = #tpu.pipeline_mode<synchronous>, transform_indices = @transform_14, window_bounds = array<i64: 8, 72>}, {pipeline_mode = #tpu.pipeline_mode<synchronous>, transform_indices = @transform_15, window_bounds = array<i64: 8, 1>}, {transform_indices = @transform_16, window_bounds = array<i64: 1, 8, 1024>}]} {
    %c0 = arith.constant 0 : index
    %c0_0 = arith.constant 0 : index
    %c0_1 = arith.constant 0 : index
    %0 = vector.load %arg1[%c0, %c0_0, %c0_1] : memref<1x2x256xf32, #tpu.memory_space<vmem>>, vector<1x2x256xf32>
    %1 = vector.shape_cast %0 : vector<1x2x256xf32> to vector<2x256xf32>
    %c0_2 = arith.constant 0 : index
    %c0_3 = arith.constant 0 : index
    %2 = vector.load %arg2[%c0_2, %c0_3] : memref<4x18xbf16, #tpu.memory_space<vmem>>, vector<4x18xbf16>
    %c0_4 = arith.constant 0 : index
    %c0_5 = arith.constant 0 : index
    %3 = vector.load %arg3[%c0_4, %c0_5] : memref<4x1xf32, #tpu.memory_space<vmem>>, vector<4x1xf32>
    %cst = arith.constant 0.000000e+00 : f32
    %4 = vector.broadcast %cst : f32 to vector<2x17xf32>
    %5 = tpu.concatenate %4, %1, %4 in 1 : vector<2x17xf32>, vector<2x256xf32>, vector<2x17xf32> -> vector<2x290xf32>
    %6 = tpu.iota {dimensions = array<i32: 1>} : vector<1x256xi32>
    %c16_i32 = arith.constant 16 : i32
    %c0_i32 = arith.constant 0 : i32
    %7 = arith.cmpi eq, %c16_i32, %c0_i32 : i32
    %c1_i32 = arith.constant 1 : i32
    %8 = arith.select %7, %c1_i32, %c16_i32 : i32
    %9 = vector.broadcast %8 : i32 to vector<1x256xi32>
    %10 = arith.remsi %6, %9 : vector<1x256xi32>
    %c0_i32_6 = arith.constant 0 : i32
    %11 = vector.broadcast %c0_i32_6 : i32 to vector<1x256xi32>
    %12 = arith.cmpi ne, %10, %11 : vector<1x256xi32>
    %c0_i32_7 = arith.constant 0 : i32
    %13 = vector.broadcast %c0_i32_7 : i32 to vector<1x256xi32>
    %14 = arith.cmpi slt, %10, %13 : vector<1x256xi32>
    %c0_i32_8 = arith.constant 0 : i32
    %15 = arith.cmpi slt, %8, %c0_i32_8 : i32
    %16 = vector.broadcast %15 : i1 to vector<1x256xi1>
    %17 = vector.broadcast %16 : vector<1x256xi1> to vector<1x256xi1>
    %18 = arith.xori %14, %17 : vector<1x256xi1>
    %19 = arith.andi %18, %12 : vector<1x256xi1>
    %20 = vector.broadcast %8 : i32 to vector<1x256xi32>
    %21 = arith.addi %10, %20 : vector<1x256xi32>
    %22 = arith.select %19, %21, %10 : vector<1x256xi1>, vector<1x256xi32>
    %23 = vector.extract_strided_slice %5 {offsets = [0, 0], sizes = [2, 256], strides = [1, 1]} : vector<2x290xf32> to vector<2x256xf32>
    %c1_i32_9 = arith.constant 1 : i32
    %24 = vector.broadcast %c1_i32_9 : i32 to vector<1x256xi32>
    %25 = arith.cmpi sge, %22, %24 : vector<1x256xi32>
    %cst_10 = arith.constant 0.000000e+00 : f32
    %26 = vector.shape_cast %25 : vector<1x256xi1> to vector<1x256xi1>
    %27 = vector.broadcast %26 : vector<1x256xi1> to vector<2x256xi1>
    %28 = vector.broadcast %cst_10 : f32 to vector<2x256xf32>
    %29 = arith.select %27, %23, %28 : vector<2x256xi1>, vector<2x256xf32>
    %30 = vector.extract_strided_slice %5 {offsets = [0, 1], sizes = [2, 256], strides = [1, 1]} : vector<2x290xf32> to vector<2x256xf32>
    %31 = vector.extract_strided_slice %5 {offsets = [0, 2], sizes = [2, 256], strides = [1, 1]} : vector<2x290xf32> to vector<2x256xf32>
    %c14_i32 = arith.constant 14 : i32
    %32 = vector.broadcast %c14_i32 : i32 to vector<1x256xi32>
    %33 = arith.cmpi sle, %22, %32 : vector<1x256xi32>
    %cst_11 = arith.constant 0.000000e+00 : f32
    %34 = vector.shape_cast %33 : vector<1x256xi1> to vector<1x256xi1>
    %35 = vector.broadcast %34 : vector<1x256xi1> to vector<2x256xi1>
    %36 = vector.broadcast %cst_11 : f32 to vector<2x256xf32>
    %37 = arith.select %35, %31, %36 : vector<2x256xi1>, vector<2x256xf32>
    %38 = vector.extract_strided_slice %5 {offsets = [0, 16], sizes = [2, 256], strides = [1, 1]} : vector<2x290xf32> to vector<2x256xf32>
    %c1_i32_12 = arith.constant 1 : i32
    %39 = vector.broadcast %c1_i32_12 : i32 to vector<1x256xi32>
    %40 = arith.cmpi sge, %22, %39 : vector<1x256xi32>
    %cst_13 = arith.constant 0.000000e+00 : f32
    %41 = vector.shape_cast %40 : vector<1x256xi1> to vector<1x256xi1>
    %42 = vector.broadcast %41 : vector<1x256xi1> to vector<2x256xi1>
    %43 = vector.broadcast %cst_13 : f32 to vector<2x256xf32>
    %44 = arith.select %42, %38, %43 : vector<2x256xi1>, vector<2x256xf32>
    %45 = vector.extract_strided_slice %5 {offsets = [0, 17], sizes = [2, 256], strides = [1, 1]} : vector<2x290xf32> to vector<2x256xf32>
    %46 = vector.extract_strided_slice %5 {offsets = [0, 18], sizes = [2, 256], strides = [1, 1]} : vector<2x290xf32> to vector<2x256xf32>
    %c14_i32_14 = arith.constant 14 : i32
    %47 = vector.broadcast %c14_i32_14 : i32 to vector<1x256xi32>
    %48 = arith.cmpi sle, %22, %47 : vector<1x256xi32>
    %cst_15 = arith.constant 0.000000e+00 : f32
    %49 = vector.shape_cast %48 : vector<1x256xi1> to vector<1x256xi1>
    %50 = vector.broadcast %49 : vector<1x256xi1> to vector<2x256xi1>
    %51 = vector.broadcast %cst_15 : f32 to vector<2x256xf32>
    %52 = arith.select %50, %46, %51 : vector<2x256xi1>, vector<2x256xf32>
    %53 = vector.extract_strided_slice %5 {offsets = [0, 32], sizes = [2, 256], strides = [1, 1]} : vector<2x290xf32> to vector<2x256xf32>
    %c1_i32_16 = arith.constant 1 : i32
    %54 = vector.broadcast %c1_i32_16 : i32 to vector<1x256xi32>
    %55 = arith.cmpi sge, %22, %54 : vector<1x256xi32>
    %cst_17 = arith.constant 0.000000e+00 : f32
    %56 = vector.shape_cast %55 : vector<1x256xi1> to vector<1x256xi1>
    %57 = vector.broadcast %56 : vector<1x256xi1> to vector<2x256xi1>
    %58 = vector.broadcast %cst_17 : f32 to vector<2x256xf32>
    %59 = arith.select %57, %53, %58 : vector<2x256xi1>, vector<2x256xf32>
    %60 = vector.extract_strided_slice %5 {offsets = [0, 33], sizes = [2, 256], strides = [1, 1]} : vector<2x290xf32> to vector<2x256xf32>
    %61 = vector.extract_strided_slice %5 {offsets = [0, 34], sizes = [2, 256], strides = [1, 1]} : vector<2x290xf32> to vector<2x256xf32>
    %c14_i32_18 = arith.constant 14 : i32
    %62 = vector.broadcast %c14_i32_18 : i32 to vector<1x256xi32>
    %63 = arith.cmpi sle, %22, %62 : vector<1x256xi32>
    %cst_19 = arith.constant 0.000000e+00 : f32
    %64 = vector.shape_cast %63 : vector<1x256xi1> to vector<1x256xi1>
    %65 = vector.broadcast %64 : vector<1x256xi1> to vector<2x256xi1>
    %66 = vector.broadcast %cst_19 : f32 to vector<2x256xf32>
    %67 = arith.select %65, %61, %66 : vector<2x256xi1>, vector<2x256xf32>
    %68 = tpu.concatenate %29, %30, %37, %44, %45, %52, %59, %60, %67 in 0 : vector<2x256xf32>, vector<2x256xf32>, vector<2x256xf32>, vector<2x256xf32>, vector<2x256xf32>, vector<2x256xf32>, vector<2x256xf32>, vector<2x256xf32>, vector<2x256xf32> -> vector<18x256xf32>
    %69 = arith.truncf %68 : vector<18x256xf32> to vector<18x256xbf16>
    %cst_20 = arith.constant dense<0.000000e+00> : vector<4x256xf32>
    %70 = tpu.matmul %2, %69, %cst_20 {dimension_numbers = #tpu.dot_dimension_numbers<[1], [0], [0], [1], [0, 0, 1, 1], [], []>} : vector<4x18xbf16>, vector<18x256xbf16>, vector<4x256xf32> -> vector<4x256xf32>
    %71 = vector.broadcast %3 : vector<4x1xf32> to vector<4x256xf32>
    %72 = arith.addf %70, %71 : vector<4x256xf32>
    %cst_21 = arith.constant 0.000000e+00 : f32
    %73 = vector.broadcast %cst_21 : f32 to vector<4x256xf32>
    %74 = arith.maximumf %72, %73 : vector<4x256xf32>
    %c0_22 = arith.constant 0 : index
    %c0_23 = arith.constant 0 : index
    %75 = vector.load %arg4[%c0_22, %c0_23] : memref<256x64xbf16, #tpu.memory_space<vmem>>, vector<256x64xbf16>
    %cst_24 = arith.constant 0.000000e+00 : f32
    %76 = vector.broadcast %cst_24 : f32 to vector<4x17xf32>
    %77 = tpu.concatenate %74, %76 in 1 : vector<4x256xf32>, vector<4x17xf32> -> vector<4x273xf32>
    %78 = vector.extract_strided_slice %77 {offsets = [0, 0], sizes = [4, 256], strides = [1, 1]} : vector<4x273xf32> to vector<4x256xf32>
    %79 = vector.extract_strided_slice %77 {offsets = [0, 1], sizes = [4, 256], strides = [1, 1]} : vector<4x273xf32> to vector<4x256xf32>
    %80 = arith.maximumf %78, %79 : vector<4x256xf32>
    %81 = vector.extract_strided_slice %77 {offsets = [0, 16], sizes = [4, 256], strides = [1, 1]} : vector<4x273xf32> to vector<4x256xf32>
    %82 = vector.extract_strided_slice %77 {offsets = [0, 17], sizes = [4, 256], strides = [1, 1]} : vector<4x273xf32> to vector<4x256xf32>
    %83 = arith.maximumf %81, %82 : vector<4x256xf32>
    %84 = arith.maximumf %80, %83 : vector<4x256xf32>
    %85 = arith.truncf %84 : vector<4x256xf32> to vector<4x256xbf16>
    %cst_25 = arith.constant dense<0.000000e+00> : vector<4x64xf32>
    %86 = tpu.matmul %85, %75, %cst_25 {dimension_numbers = #tpu.dot_dimension_numbers<[1], [0], [0], [1], [0, 0, 1, 1], [], []>} : vector<4x256xbf16>, vector<256x64xbf16>, vector<4x64xf32> -> vector<4x64xf32>
    %c0_26 = arith.constant 0 : index
    %c0_27 = arith.constant 0 : index
    %87 = vector.load %arg5[%c0_26, %c0_27] : memref<8x36xbf16, #tpu.memory_space<vmem>>, vector<8x36xbf16>
    %c0_28 = arith.constant 0 : index
    %c0_29 = arith.constant 0 : index
    %88 = vector.load %arg6[%c0_28, %c0_29] : memref<8x1xf32, #tpu.memory_space<vmem>>, vector<8x1xf32>
    %cst_30 = arith.constant 0.000000e+00 : f32
    %89 = vector.broadcast %cst_30 : f32 to vector<4x9xf32>
    %90 = tpu.concatenate %89, %86, %89 in 1 : vector<4x9xf32>, vector<4x64xf32>, vector<4x9xf32> -> vector<4x82xf32>
    %91 = tpu.iota {dimensions = array<i32: 1>} : vector<1x64xi32>
    %c8_i32 = arith.constant 8 : i32
    %c0_i32_31 = arith.constant 0 : i32
    %92 = arith.cmpi eq, %c8_i32, %c0_i32_31 : i32
    %c1_i32_32 = arith.constant 1 : i32
    %93 = arith.select %92, %c1_i32_32, %c8_i32 : i32
    %94 = vector.broadcast %93 : i32 to vector<1x64xi32>
    %95 = arith.remsi %91, %94 : vector<1x64xi32>
    %c0_i32_33 = arith.constant 0 : i32
    %96 = vector.broadcast %c0_i32_33 : i32 to vector<1x64xi32>
    %97 = arith.cmpi ne, %95, %96 : vector<1x64xi32>
    %c0_i32_34 = arith.constant 0 : i32
    %98 = vector.broadcast %c0_i32_34 : i32 to vector<1x64xi32>
    %99 = arith.cmpi slt, %95, %98 : vector<1x64xi32>
    %c0_i32_35 = arith.constant 0 : i32
    %100 = arith.cmpi slt, %93, %c0_i32_35 : i32
    %101 = vector.broadcast %100 : i1 to vector<1x64xi1>
    %102 = vector.broadcast %101 : vector<1x64xi1> to vector<1x64xi1>
    %103 = arith.xori %99, %102 : vector<1x64xi1>
    %104 = arith.andi %103, %97 : vector<1x64xi1>
    %105 = vector.broadcast %93 : i32 to vector<1x64xi32>
    %106 = arith.addi %95, %105 : vector<1x64xi32>
    %107 = arith.select %104, %106, %95 : vector<1x64xi1>, vector<1x64xi32>
    %108 = vector.extract_strided_slice %90 {offsets = [0, 0], sizes = [4, 64], strides = [1, 1]} : vector<4x82xf32> to vector<4x64xf32>
    %c1_i32_36 = arith.constant 1 : i32
    %109 = vector.broadcast %c1_i32_36 : i32 to vector<1x64xi32>
    %110 = arith.cmpi sge, %107, %109 : vector<1x64xi32>
    %cst_37 = arith.constant 0.000000e+00 : f32
    %111 = vector.shape_cast %110 : vector<1x64xi1> to vector<1x64xi1>
    %112 = vector.broadcast %111 : vector<1x64xi1> to vector<4x64xi1>
    %113 = vector.broadcast %cst_37 : f32 to vector<4x64xf32>
    %114 = arith.select %112, %108, %113 : vector<4x64xi1>, vector<4x64xf32>
    %115 = vector.extract_strided_slice %90 {offsets = [0, 1], sizes = [4, 64], strides = [1, 1]} : vector<4x82xf32> to vector<4x64xf32>
    %116 = vector.extract_strided_slice %90 {offsets = [0, 2], sizes = [4, 64], strides = [1, 1]} : vector<4x82xf32> to vector<4x64xf32>
    %c6_i32 = arith.constant 6 : i32
    %117 = vector.broadcast %c6_i32 : i32 to vector<1x64xi32>
    %118 = arith.cmpi sle, %107, %117 : vector<1x64xi32>
    %cst_38 = arith.constant 0.000000e+00 : f32
    %119 = vector.shape_cast %118 : vector<1x64xi1> to vector<1x64xi1>
    %120 = vector.broadcast %119 : vector<1x64xi1> to vector<4x64xi1>
    %121 = vector.broadcast %cst_38 : f32 to vector<4x64xf32>
    %122 = arith.select %120, %116, %121 : vector<4x64xi1>, vector<4x64xf32>
    %123 = vector.extract_strided_slice %90 {offsets = [0, 8], sizes = [4, 64], strides = [1, 1]} : vector<4x82xf32> to vector<4x64xf32>
    %c1_i32_39 = arith.constant 1 : i32
    %124 = vector.broadcast %c1_i32_39 : i32 to vector<1x64xi32>
    %125 = arith.cmpi sge, %107, %124 : vector<1x64xi32>
    %cst_40 = arith.constant 0.000000e+00 : f32
    %126 = vector.shape_cast %125 : vector<1x64xi1> to vector<1x64xi1>
    %127 = vector.broadcast %126 : vector<1x64xi1> to vector<4x64xi1>
    %128 = vector.broadcast %cst_40 : f32 to vector<4x64xf32>
    %129 = arith.select %127, %123, %128 : vector<4x64xi1>, vector<4x64xf32>
    %130 = vector.extract_strided_slice %90 {offsets = [0, 9], sizes = [4, 64], strides = [1, 1]} : vector<4x82xf32> to vector<4x64xf32>
    %131 = vector.extract_strided_slice %90 {offsets = [0, 10], sizes = [4, 64], strides = [1, 1]} : vector<4x82xf32> to vector<4x64xf32>
    %c6_i32_41 = arith.constant 6 : i32
    %132 = vector.broadcast %c6_i32_41 : i32 to vector<1x64xi32>
    %133 = arith.cmpi sle, %107, %132 : vector<1x64xi32>
    %cst_42 = arith.constant 0.000000e+00 : f32
    %134 = vector.shape_cast %133 : vector<1x64xi1> to vector<1x64xi1>
    %135 = vector.broadcast %134 : vector<1x64xi1> to vector<4x64xi1>
    %136 = vector.broadcast %cst_42 : f32 to vector<4x64xf32>
    %137 = arith.select %135, %131, %136 : vector<4x64xi1>, vector<4x64xf32>
    %138 = vector.extract_strided_slice %90 {offsets = [0, 16], sizes = [4, 64], strides = [1, 1]} : vector<4x82xf32> to vector<4x64xf32>
    %c1_i32_43 = arith.constant 1 : i32
    %139 = vector.broadcast %c1_i32_43 : i32 to vector<1x64xi32>
    %140 = arith.cmpi sge, %107, %139 : vector<1x64xi32>
    %cst_44 = arith.constant 0.000000e+00 : f32
    %141 = vector.shape_cast %140 : vector<1x64xi1> to vector<1x64xi1>
    %142 = vector.broadcast %141 : vector<1x64xi1> to vector<4x64xi1>
    %143 = vector.broadcast %cst_44 : f32 to vector<4x64xf32>
    %144 = arith.select %142, %138, %143 : vector<4x64xi1>, vector<4x64xf32>
    %145 = vector.extract_strided_slice %90 {offsets = [0, 17], sizes = [4, 64], strides = [1, 1]} : vector<4x82xf32> to vector<4x64xf32>
    %146 = vector.extract_strided_slice %90 {offsets = [0, 18], sizes = [4, 64], strides = [1, 1]} : vector<4x82xf32> to vector<4x64xf32>
    %c6_i32_45 = arith.constant 6 : i32
    %147 = vector.broadcast %c6_i32_45 : i32 to vector<1x64xi32>
    %148 = arith.cmpi sle, %107, %147 : vector<1x64xi32>
    %cst_46 = arith.constant 0.000000e+00 : f32
    %149 = vector.shape_cast %148 : vector<1x64xi1> to vector<1x64xi1>
    %150 = vector.broadcast %149 : vector<1x64xi1> to vector<4x64xi1>
    %151 = vector.broadcast %cst_46 : f32 to vector<4x64xf32>
    %152 = arith.select %150, %146, %151 : vector<4x64xi1>, vector<4x64xf32>
    %153 = tpu.concatenate %114, %115, %122, %129, %130, %137, %144, %145, %152 in 0 : vector<4x64xf32>, vector<4x64xf32>, vector<4x64xf32>, vector<4x64xf32>, vector<4x64xf32>, vector<4x64xf32>, vector<4x64xf32>, vector<4x64xf32>, vector<4x64xf32> -> vector<36x64xf32>
    %154 = arith.truncf %153 : vector<36x64xf32> to vector<36x64xbf16>
    %cst_47 = arith.constant dense<0.000000e+00> : vector<8x64xf32>
    %155 = tpu.matmul %87, %154, %cst_47 {dimension_numbers = #tpu.dot_dimension_numbers<[1], [0], [0], [1], [0, 0, 1, 1], [], []>} : vector<8x36xbf16>, vector<36x64xbf16>, vector<8x64xf32> -> vector<8x64xf32>
    %156 = vector.broadcast %88 : vector<8x1xf32> to vector<8x64xf32>
    %157 = arith.addf %155, %156 : vector<8x64xf32>
    %cst_48 = arith.constant 0.000000e+00 : f32
    %158 = vector.broadcast %cst_48 : f32 to vector<8x64xf32>
    %159 = arith.maximumf %157, %158 : vector<8x64xf32>
    %c0_49 = arith.constant 0 : index
    %c0_50 = arith.constant 0 : index
    %160 = vector.load %arg7[%c0_49, %c0_50] : memref<32x8xbf16, #tpu.memory_space<vmem>>, vector<32x8xbf16>
    %c0_51 = arith.constant 0 : index
    %c0_52 = arith.constant 0 : index
    %161 = vector.load %arg8[%c0_51, %c0_52] : memref<32x1xf32, #tpu.memory_space<vmem>>, vector<32x1xf32>
    %c0_53 = arith.constant 0 : index
    %c0_54 = arith.constant 0 : index
    %162 = vector.load %arg9[%c0_53, %c0_54] : memref<64x256xbf16, #tpu.memory_space<vmem>>, vector<64x256xbf16>
    %163 = arith.truncf %159 : vector<8x64xf32> to vector<8x64xbf16>
    %cst_55 = arith.constant dense<0.000000e+00> : vector<32x64xf32>
    %164 = tpu.matmul %160, %163, %cst_55 {dimension_numbers = #tpu.dot_dimension_numbers<[1], [0], [0], [1], [0, 0, 1, 1], [], []>} : vector<32x8xbf16>, vector<8x64xbf16>, vector<32x64xf32> -> vector<32x64xf32>
    %165 = vector.broadcast %161 : vector<32x1xf32> to vector<32x64xf32>
    %166 = arith.addf %164, %165 : vector<32x64xf32>
    %167 = arith.truncf %166 : vector<32x64xf32> to vector<32x64xbf16>
    %cst_56 = arith.constant dense<0.000000e+00> : vector<32x256xf32>
    %168 = tpu.matmul %167, %162, %cst_56 {dimension_numbers = #tpu.dot_dimension_numbers<[1], [0], [0], [1], [0, 0, 1, 1], [], []>} : vector<32x64xbf16>, vector<64x256xbf16>, vector<32x256xf32> -> vector<32x256xf32>
    %169 = vector.extract_strided_slice %168 {offsets = [0, 0], sizes = [8, 256], strides = [1, 1]} : vector<32x256xf32> to vector<8x256xf32>
    %170 = vector.extract_strided_slice %168 {offsets = [8, 0], sizes = [8, 256], strides = [1, 1]} : vector<32x256xf32> to vector<8x256xf32>
    %cst_57 = arith.constant 0.000000e+00 : f32
    %171 = vector.broadcast %cst_57 : f32 to vector<8x1xf32>
    %172 = vector.extract_strided_slice %170 {offsets = [0, 0], sizes = [8, 255], strides = [1, 1]} : vector<8x256xf32> to vector<8x255xf32>
    %173 = tpu.concatenate %171, %172 in 1 : vector<8x1xf32>, vector<8x255xf32> -> vector<8x256xf32>
    %174 = arith.addf %169, %173 : vector<8x256xf32>
    %175 = vector.extract_strided_slice %168 {offsets = [16, 0], sizes = [8, 256], strides = [1, 1]} : vector<32x256xf32> to vector<8x256xf32>
    %cst_58 = arith.constant 0.000000e+00 : f32
    %176 = vector.broadcast %cst_58 : f32 to vector<8x16xf32>
    %177 = vector.extract_strided_slice %175 {offsets = [0, 0], sizes = [8, 240], strides = [1, 1]} : vector<8x256xf32> to vector<8x240xf32>
    %178 = tpu.concatenate %176, %177 in 1 : vector<8x16xf32>, vector<8x240xf32> -> vector<8x256xf32>
    %179 = arith.addf %174, %178 : vector<8x256xf32>
    %180 = vector.extract_strided_slice %168 {offsets = [24, 0], sizes = [8, 256], strides = [1, 1]} : vector<32x256xf32> to vector<8x256xf32>
    %cst_59 = arith.constant 0.000000e+00 : f32
    %181 = vector.broadcast %cst_59 : f32 to vector<8x17xf32>
    %182 = vector.extract_strided_slice %180 {offsets = [0, 0], sizes = [8, 239], strides = [1, 1]} : vector<8x256xf32> to vector<8x239xf32>
    %183 = tpu.concatenate %181, %182 in 1 : vector<8x17xf32>, vector<8x239xf32> -> vector<8x256xf32>
    %184 = arith.addf %179, %183 : vector<8x256xf32>
    %c0_60 = arith.constant 0 : index
    %c0_61 = arith.constant 0 : index
    %185 = vector.load %arg10[%c0_60, %c0_61] : memref<8x72xbf16, #tpu.memory_space<vmem>>, vector<8x72xbf16>
    %c0_62 = arith.constant 0 : index
    %c0_63 = arith.constant 0 : index
    %186 = vector.load %arg11[%c0_62, %c0_63] : memref<8x1xf32, #tpu.memory_space<vmem>>, vector<8x1xf32>
    %cst_64 = arith.constant 0.000000e+00 : f32
    %187 = vector.broadcast %cst_64 : f32 to vector<8x17xf32>
    %188 = tpu.concatenate %187, %184, %187 in 1 : vector<8x17xf32>, vector<8x256xf32>, vector<8x17xf32> -> vector<8x290xf32>
    %189 = tpu.iota {dimensions = array<i32: 1>} : vector<1x256xi32>
    %c16_i32_65 = arith.constant 16 : i32
    %c0_i32_66 = arith.constant 0 : i32
    %190 = arith.cmpi eq, %c16_i32_65, %c0_i32_66 : i32
    %c1_i32_67 = arith.constant 1 : i32
    %191 = arith.select %190, %c1_i32_67, %c16_i32_65 : i32
    %192 = vector.broadcast %191 : i32 to vector<1x256xi32>
    %193 = arith.remsi %189, %192 : vector<1x256xi32>
    %c0_i32_68 = arith.constant 0 : i32
    %194 = vector.broadcast %c0_i32_68 : i32 to vector<1x256xi32>
    %195 = arith.cmpi ne, %193, %194 : vector<1x256xi32>
    %c0_i32_69 = arith.constant 0 : i32
    %196 = vector.broadcast %c0_i32_69 : i32 to vector<1x256xi32>
    %197 = arith.cmpi slt, %193, %196 : vector<1x256xi32>
    %c0_i32_70 = arith.constant 0 : i32
    %198 = arith.cmpi slt, %191, %c0_i32_70 : i32
    %199 = vector.broadcast %198 : i1 to vector<1x256xi1>
    %200 = vector.broadcast %199 : vector<1x256xi1> to vector<1x256xi1>
    %201 = arith.xori %197, %200 : vector<1x256xi1>
    %202 = arith.andi %201, %195 : vector<1x256xi1>
    %203 = vector.broadcast %191 : i32 to vector<1x256xi32>
    %204 = arith.addi %193, %203 : vector<1x256xi32>
    %205 = arith.select %202, %204, %193 : vector<1x256xi1>, vector<1x256xi32>
    %206 = vector.extract_strided_slice %188 {offsets = [0, 0], sizes = [8, 256], strides = [1, 1]} : vector<8x290xf32> to vector<8x256xf32>
    %c1_i32_71 = arith.constant 1 : i32
    %207 = vector.broadcast %c1_i32_71 : i32 to vector<1x256xi32>
    %208 = arith.cmpi sge, %205, %207 : vector<1x256xi32>
    %cst_72 = arith.constant 0.000000e+00 : f32
    %209 = vector.shape_cast %208 : vector<1x256xi1> to vector<1x256xi1>
    %210 = vector.broadcast %209 : vector<1x256xi1> to vector<8x256xi1>
    %211 = vector.broadcast %cst_72 : f32 to vector<8x256xf32>
    %212 = arith.select %210, %206, %211 : vector<8x256xi1>, vector<8x256xf32>
    %213 = vector.extract_strided_slice %188 {offsets = [0, 1], sizes = [8, 256], strides = [1, 1]} : vector<8x290xf32> to vector<8x256xf32>
    %214 = vector.extract_strided_slice %188 {offsets = [0, 2], sizes = [8, 256], strides = [1, 1]} : vector<8x290xf32> to vector<8x256xf32>
    %c14_i32_73 = arith.constant 14 : i32
    %215 = vector.broadcast %c14_i32_73 : i32 to vector<1x256xi32>
    %216 = arith.cmpi sle, %205, %215 : vector<1x256xi32>
    %cst_74 = arith.constant 0.000000e+00 : f32
    %217 = vector.shape_cast %216 : vector<1x256xi1> to vector<1x256xi1>
    %218 = vector.broadcast %217 : vector<1x256xi1> to vector<8x256xi1>
    %219 = vector.broadcast %cst_74 : f32 to vector<8x256xf32>
    %220 = arith.select %218, %214, %219 : vector<8x256xi1>, vector<8x256xf32>
    %221 = vector.extract_strided_slice %188 {offsets = [0, 16], sizes = [8, 256], strides = [1, 1]} : vector<8x290xf32> to vector<8x256xf32>
    %c1_i32_75 = arith.constant 1 : i32
    %222 = vector.broadcast %c1_i32_75 : i32 to vector<1x256xi32>
    %223 = arith.cmpi sge, %205, %222 : vector<1x256xi32>
    %cst_76 = arith.constant 0.000000e+00 : f32
    %224 = vector.shape_cast %223 : vector<1x256xi1> to vector<1x256xi1>
    %225 = vector.broadcast %224 : vector<1x256xi1> to vector<8x256xi1>
    %226 = vector.broadcast %cst_76 : f32 to vector<8x256xf32>
    %227 = arith.select %225, %221, %226 : vector<8x256xi1>, vector<8x256xf32>
    %228 = vector.extract_strided_slice %188 {offsets = [0, 17], sizes = [8, 256], strides = [1, 1]} : vector<8x290xf32> to vector<8x256xf32>
    %229 = vector.extract_strided_slice %188 {offsets = [0, 18], sizes = [8, 256], strides = [1, 1]} : vector<8x290xf32> to vector<8x256xf32>
    %c14_i32_77 = arith.constant 14 : i32
    %230 = vector.broadcast %c14_i32_77 : i32 to vector<1x256xi32>
    %231 = arith.cmpi sle, %205, %230 : vector<1x256xi32>
    %cst_78 = arith.constant 0.000000e+00 : f32
    %232 = vector.shape_cast %231 : vector<1x256xi1> to vector<1x256xi1>
    %233 = vector.broadcast %232 : vector<1x256xi1> to vector<8x256xi1>
    %234 = vector.broadcast %cst_78 : f32 to vector<8x256xf32>
    %235 = arith.select %233, %229, %234 : vector<8x256xi1>, vector<8x256xf32>
    %236 = vector.extract_strided_slice %188 {offsets = [0, 32], sizes = [8, 256], strides = [1, 1]} : vector<8x290xf32> to vector<8x256xf32>
    %c1_i32_79 = arith.constant 1 : i32
    %237 = vector.broadcast %c1_i32_79 : i32 to vector<1x256xi32>
    %238 = arith.cmpi sge, %205, %237 : vector<1x256xi32>
    %cst_80 = arith.constant 0.000000e+00 : f32
    %239 = vector.shape_cast %238 : vector<1x256xi1> to vector<1x256xi1>
    %240 = vector.broadcast %239 : vector<1x256xi1> to vector<8x256xi1>
    %241 = vector.broadcast %cst_80 : f32 to vector<8x256xf32>
    %242 = arith.select %240, %236, %241 : vector<8x256xi1>, vector<8x256xf32>
    %243 = vector.extract_strided_slice %188 {offsets = [0, 33], sizes = [8, 256], strides = [1, 1]} : vector<8x290xf32> to vector<8x256xf32>
    %244 = vector.extract_strided_slice %188 {offsets = [0, 34], sizes = [8, 256], strides = [1, 1]} : vector<8x290xf32> to vector<8x256xf32>
    %c14_i32_81 = arith.constant 14 : i32
    %245 = vector.broadcast %c14_i32_81 : i32 to vector<1x256xi32>
    %246 = arith.cmpi sle, %205, %245 : vector<1x256xi32>
    %cst_82 = arith.constant 0.000000e+00 : f32
    %247 = vector.shape_cast %246 : vector<1x256xi1> to vector<1x256xi1>
    %248 = vector.broadcast %247 : vector<1x256xi1> to vector<8x256xi1>
    %249 = vector.broadcast %cst_82 : f32 to vector<8x256xf32>
    %250 = arith.select %248, %244, %249 : vector<8x256xi1>, vector<8x256xf32>
    %251 = tpu.concatenate %212, %213, %220, %227, %228, %235, %242, %243, %250 in 0 : vector<8x256xf32>, vector<8x256xf32>, vector<8x256xf32>, vector<8x256xf32>, vector<8x256xf32>, vector<8x256xf32>, vector<8x256xf32>, vector<8x256xf32>, vector<8x256xf32> -> vector<72x256xf32>
    %252 = arith.truncf %251 : vector<72x256xf32> to vector<72x256xbf16>
    %cst_83 = arith.constant dense<0.000000e+00> : vector<8x256xf32>
    %253 = tpu.matmul %185, %252, %cst_83 {dimension_numbers = #tpu.dot_dimension_numbers<[1], [0], [0], [1], [0, 0, 1, 1], [], []>} : vector<8x72xbf16>, vector<72x256xbf16>, vector<8x256xf32> -> vector<8x256xf32>
    %254 = vector.broadcast %186 : vector<8x1xf32> to vector<8x256xf32>
    %255 = arith.addf %253, %254 : vector<8x256xf32>
    %cst_84 = arith.constant 0.000000e+00 : f32
    %256 = vector.broadcast %cst_84 : f32 to vector<8x256xf32>
    %257 = arith.maximumf %255, %256 : vector<8x256xf32>
    %c0_85 = arith.constant 0 : index
    %c0_86 = arith.constant 0 : index
    %258 = vector.load %arg12[%c0_85, %c0_86] : memref<32x8xbf16, #tpu.memory_space<vmem>>, vector<32x8xbf16>
    %c0_87 = arith.constant 0 : index
    %c0_88 = arith.constant 0 : index
    %259 = vector.load %arg13[%c0_87, %c0_88] : memref<32x1xf32, #tpu.memory_space<vmem>>, vector<32x1xf32>
    %c0_89 = arith.constant 0 : index
    %c0_90 = arith.constant 0 : index
    %260 = vector.load %arg14[%c0_89, %c0_90] : memref<256x1024xbf16, #tpu.memory_space<vmem>>, vector<256x1024xbf16>
    %261 = arith.truncf %257 : vector<8x256xf32> to vector<8x256xbf16>
    %cst_91 = arith.constant dense<0.000000e+00> : vector<32x256xf32>
    %262 = tpu.matmul %258, %261, %cst_91 {dimension_numbers = #tpu.dot_dimension_numbers<[1], [0], [0], [1], [0, 0, 1, 1], [], []>} : vector<32x8xbf16>, vector<8x256xbf16>, vector<32x256xf32> -> vector<32x256xf32>
    %263 = vector.broadcast %259 : vector<32x1xf32> to vector<32x256xf32>
    %264 = arith.addf %262, %263 : vector<32x256xf32>
    %265 = arith.truncf %264 : vector<32x256xf32> to vector<32x256xbf16>
    %cst_92 = arith.constant dense<0.000000e+00> : vector<32x1024xf32>
    %266 = tpu.matmul %265, %260, %cst_92 {dimension_numbers = #tpu.dot_dimension_numbers<[1], [0], [0], [1], [0, 0, 1, 1], [], []>} : vector<32x256xbf16>, vector<256x1024xbf16>, vector<32x1024xf32> -> vector<32x1024xf32>
    %267 = vector.extract_strided_slice %266 {offsets = [0, 0], sizes = [8, 1024], strides = [1, 1]} : vector<32x1024xf32> to vector<8x1024xf32>
    %268 = vector.extract_strided_slice %266 {offsets = [8, 0], sizes = [8, 1024], strides = [1, 1]} : vector<32x1024xf32> to vector<8x1024xf32>
    %cst_93 = arith.constant 0.000000e+00 : f32
    %269 = vector.broadcast %cst_93 : f32 to vector<8x1xf32>
    %270 = vector.extract_strided_slice %268 {offsets = [0, 0], sizes = [8, 1023], strides = [1, 1]} : vector<8x1024xf32> to vector<8x1023xf32>
    %271 = tpu.concatenate %269, %270 in 1 : vector<8x1xf32>, vector<8x1023xf32> -> vector<8x1024xf32>
    %272 = arith.addf %267, %271 : vector<8x1024xf32>
    %273 = vector.extract_strided_slice %266 {offsets = [16, 0], sizes = [8, 1024], strides = [1, 1]} : vector<32x1024xf32> to vector<8x1024xf32>
    %cst_94 = arith.constant 0.000000e+00 : f32
    %274 = vector.broadcast %cst_94 : f32 to vector<8x32xf32>
    %275 = vector.extract_strided_slice %273 {offsets = [0, 0], sizes = [8, 992], strides = [1, 1]} : vector<8x1024xf32> to vector<8x992xf32>
    %276 = tpu.concatenate %274, %275 in 1 : vector<8x32xf32>, vector<8x992xf32> -> vector<8x1024xf32>
    %277 = arith.addf %272, %276 : vector<8x1024xf32>
    %278 = vector.extract_strided_slice %266 {offsets = [24, 0], sizes = [8, 1024], strides = [1, 1]} : vector<32x1024xf32> to vector<8x1024xf32>
    %cst_95 = arith.constant 0.000000e+00 : f32
    %279 = vector.broadcast %cst_95 : f32 to vector<8x33xf32>
    %280 = vector.extract_strided_slice %278 {offsets = [0, 0], sizes = [8, 991], strides = [1, 1]} : vector<8x1024xf32> to vector<8x991xf32>
    %281 = tpu.concatenate %279, %280 in 1 : vector<8x33xf32>, vector<8x991xf32> -> vector<8x1024xf32>
    %282 = arith.addf %277, %281 : vector<8x1024xf32>
    %c0_96 = arith.constant 0 : index
    %c0_97 = arith.constant 0 : index
    %283 = vector.load %arg15[%c0_96, %c0_97] : memref<8x72xbf16, #tpu.memory_space<vmem>>, vector<8x72xbf16>
    %c0_98 = arith.constant 0 : index
    %c0_99 = arith.constant 0 : index
    %284 = vector.load %arg16[%c0_98, %c0_99] : memref<8x1xf32, #tpu.memory_space<vmem>>, vector<8x1xf32>
    %cst_100 = arith.constant 0.000000e+00 : f32
    %285 = vector.broadcast %cst_100 : f32 to vector<8x33xf32>
    %286 = tpu.concatenate %285, %282, %285 in 1 : vector<8x33xf32>, vector<8x1024xf32>, vector<8x33xf32> -> vector<8x1090xf32>
    %287 = tpu.iota {dimensions = array<i32: 1>} : vector<1x1024xi32>
    %c32_i32 = arith.constant 32 : i32
    %c0_i32_101 = arith.constant 0 : i32
    %288 = arith.cmpi eq, %c32_i32, %c0_i32_101 : i32
    %c1_i32_102 = arith.constant 1 : i32
    %289 = arith.select %288, %c1_i32_102, %c32_i32 : i32
    %290 = vector.broadcast %289 : i32 to vector<1x1024xi32>
    %291 = arith.remsi %287, %290 : vector<1x1024xi32>
    %c0_i32_103 = arith.constant 0 : i32
    %292 = vector.broadcast %c0_i32_103 : i32 to vector<1x1024xi32>
    %293 = arith.cmpi ne, %291, %292 : vector<1x1024xi32>
    %c0_i32_104 = arith.constant 0 : i32
    %294 = vector.broadcast %c0_i32_104 : i32 to vector<1x1024xi32>
    %295 = arith.cmpi slt, %291, %294 : vector<1x1024xi32>
    %c0_i32_105 = arith.constant 0 : i32
    %296 = arith.cmpi slt, %289, %c0_i32_105 : i32
    %297 = vector.broadcast %296 : i1 to vector<1x1024xi1>
    %298 = vector.broadcast %297 : vector<1x1024xi1> to vector<1x1024xi1>
    %299 = arith.xori %295, %298 : vector<1x1024xi1>
    %300 = arith.andi %299, %293 : vector<1x1024xi1>
    %301 = vector.broadcast %289 : i32 to vector<1x1024xi32>
    %302 = arith.addi %291, %301 : vector<1x1024xi32>
    %303 = arith.select %300, %302, %291 : vector<1x1024xi1>, vector<1x1024xi32>
    %304 = vector.extract_strided_slice %286 {offsets = [0, 0], sizes = [8, 1024], strides = [1, 1]} : vector<8x1090xf32> to vector<8x1024xf32>
    %c1_i32_106 = arith.constant 1 : i32
    %305 = vector.broadcast %c1_i32_106 : i32 to vector<1x1024xi32>
    %306 = arith.cmpi sge, %303, %305 : vector<1x1024xi32>
    %cst_107 = arith.constant 0.000000e+00 : f32
    %307 = vector.shape_cast %306 : vector<1x1024xi1> to vector<1x1024xi1>
    %308 = vector.broadcast %307 : vector<1x1024xi1> to vector<8x1024xi1>
    %309 = vector.broadcast %cst_107 : f32 to vector<8x1024xf32>
    %310 = arith.select %308, %304, %309 : vector<8x1024xi1>, vector<8x1024xf32>
    %311 = vector.extract_strided_slice %286 {offsets = [0, 1], sizes = [8, 1024], strides = [1, 1]} : vector<8x1090xf32> to vector<8x1024xf32>
    %312 = vector.extract_strided_slice %286 {offsets = [0, 2], sizes = [8, 1024], strides = [1, 1]} : vector<8x1090xf32> to vector<8x1024xf32>
    %c30_i32 = arith.constant 30 : i32
    %313 = vector.broadcast %c30_i32 : i32 to vector<1x1024xi32>
    %314 = arith.cmpi sle, %303, %313 : vector<1x1024xi32>
    %cst_108 = arith.constant 0.000000e+00 : f32
    %315 = vector.shape_cast %314 : vector<1x1024xi1> to vector<1x1024xi1>
    %316 = vector.broadcast %315 : vector<1x1024xi1> to vector<8x1024xi1>
    %317 = vector.broadcast %cst_108 : f32 to vector<8x1024xf32>
    %318 = arith.select %316, %312, %317 : vector<8x1024xi1>, vector<8x1024xf32>
    %319 = vector.extract_strided_slice %286 {offsets = [0, 32], sizes = [8, 1024], strides = [1, 1]} : vector<8x1090xf32> to vector<8x1024xf32>
    %c1_i32_109 = arith.constant 1 : i32
    %320 = vector.broadcast %c1_i32_109 : i32 to vector<1x1024xi32>
    %321 = arith.cmpi sge, %303, %320 : vector<1x1024xi32>
    %cst_110 = arith.constant 0.000000e+00 : f32
    %322 = vector.shape_cast %321 : vector<1x1024xi1> to vector<1x1024xi1>
    %323 = vector.broadcast %322 : vector<1x1024xi1> to vector<8x1024xi1>
    %324 = vector.broadcast %cst_110 : f32 to vector<8x1024xf32>
    %325 = arith.select %323, %319, %324 : vector<8x1024xi1>, vector<8x1024xf32>
    %326 = vector.extract_strided_slice %286 {offsets = [0, 33], sizes = [8, 1024], strides = [1, 1]} : vector<8x1090xf32> to vector<8x1024xf32>
    %327 = vector.extract_strided_slice %286 {offsets = [0, 34], sizes = [8, 1024], strides = [1, 1]} : vector<8x1090xf32> to vector<8x1024xf32>
    %c30_i32_111 = arith.constant 30 : i32
    %328 = vector.broadcast %c30_i32_111 : i32 to vector<1x1024xi32>
    %329 = arith.cmpi sle, %303, %328 : vector<1x1024xi32>
    %cst_112 = arith.constant 0.000000e+00 : f32
    %330 = vector.shape_cast %329 : vector<1x1024xi1> to vector<1x1024xi1>
    %331 = vector.broadcast %330 : vector<1x1024xi1> to vector<8x1024xi1>
    %332 = vector.broadcast %cst_112 : f32 to vector<8x1024xf32>
    %333 = arith.select %331, %327, %332 : vector<8x1024xi1>, vector<8x1024xf32>
    %334 = vector.extract_strided_slice %286 {offsets = [0, 64], sizes = [8, 1024], strides = [1, 1]} : vector<8x1090xf32> to vector<8x1024xf32>
    %c1_i32_113 = arith.constant 1 : i32
    %335 = vector.broadcast %c1_i32_113 : i32 to vector<1x1024xi32>
    %336 = arith.cmpi sge, %303, %335 : vector<1x1024xi32>
    %cst_114 = arith.constant 0.000000e+00 : f32
    %337 = vector.shape_cast %336 : vector<1x1024xi1> to vector<1x1024xi1>
    %338 = vector.broadcast %337 : vector<1x1024xi1> to vector<8x1024xi1>
    %339 = vector.broadcast %cst_114 : f32 to vector<8x1024xf32>
    %340 = arith.select %338, %334, %339 : vector<8x1024xi1>, vector<8x1024xf32>
    %341 = vector.extract_strided_slice %286 {offsets = [0, 65], sizes = [8, 1024], strides = [1, 1]} : vector<8x1090xf32> to vector<8x1024xf32>
    %342 = vector.extract_strided_slice %286 {offsets = [0, 66], sizes = [8, 1024], strides = [1, 1]} : vector<8x1090xf32> to vector<8x1024xf32>
    %c30_i32_115 = arith.constant 30 : i32
    %343 = vector.broadcast %c30_i32_115 : i32 to vector<1x1024xi32>
    %344 = arith.cmpi sle, %303, %343 : vector<1x1024xi32>
    %cst_116 = arith.constant 0.000000e+00 : f32
    %345 = vector.shape_cast %344 : vector<1x1024xi1> to vector<1x1024xi1>
    %346 = vector.broadcast %345 : vector<1x1024xi1> to vector<8x1024xi1>
    %347 = vector.broadcast %cst_116 : f32 to vector<8x1024xf32>
    %348 = arith.select %346, %342, %347 : vector<8x1024xi1>, vector<8x1024xf32>
    %349 = tpu.concatenate %310, %311, %318, %325, %326, %333, %340, %341, %348 in 0 : vector<8x1024xf32>, vector<8x1024xf32>, vector<8x1024xf32>, vector<8x1024xf32>, vector<8x1024xf32>, vector<8x1024xf32>, vector<8x1024xf32>, vector<8x1024xf32>, vector<8x1024xf32> -> vector<72x1024xf32>
    %350 = arith.truncf %349 : vector<72x1024xf32> to vector<72x1024xbf16>
    %cst_117 = arith.constant dense<0.000000e+00> : vector<8x1024xf32>
    %351 = tpu.matmul %283, %350, %cst_117 {dimension_numbers = #tpu.dot_dimension_numbers<[1], [0], [0], [1], [0, 0, 1, 1], [], []>} : vector<8x72xbf16>, vector<72x1024xbf16>, vector<8x1024xf32> -> vector<8x1024xf32>
    %352 = vector.broadcast %284 : vector<8x1xf32> to vector<8x1024xf32>
    %353 = arith.addf %351, %352 : vector<8x1024xf32>
    %cst_118 = arith.constant 0.000000e+00 : f32
    %354 = vector.broadcast %cst_118 : f32 to vector<8x1024xf32>
    %355 = arith.maximumf %353, %354 : vector<8x1024xf32>
    %c0_119 = arith.constant 0 : index
    %c0_120 = arith.constant 0 : index
    %c0_121 = arith.constant 0 : index
    %356 = vector.load %arg17[%c0_119, %c0_120, %c0_121] : memref<1x8x1024xf32, #tpu.memory_space<vmem>>, vector<1x8x1024xf32>
    %357 = vector.shape_cast %356 : vector<1x8x1024xf32> to vector<8x1024xf32>
    %358 = vector.shape_cast %355 : vector<8x1024xf32> to vector<1x8x1024xf32>
    tpu.vector_store %arg17[%c0_119, %c0_120, %c0_121], %358 {strides = array<i32>} : memref<1x8x1024xf32, #tpu.memory_space<vmem>>, vector<1x8x1024xf32>,
    return
  }
  func.func @transform_0(%arg0: i32) -> (i32, i32, i32) {
    %c0_i32 = arith.constant 0 : i32
    %c0_i32_0 = arith.constant 0 : i32
    %c0_i32_1 = arith.constant 0 : i32
    return %arg0, %c0_i32, %c0_i32_0 : i32, i32, i32
  }
  func.func @transform_1(%arg0: i32) -> (i32, i32) {
    %c0_i32 = arith.constant 0 : i32
    %c0_i32_0 = arith.constant 0 : i32
    %c0_i32_1 = arith.constant 0 : i32
    return %c0_i32, %c0_i32_0 : i32, i32
  }
  func.func @transform_2(%arg0: i32) -> (i32, i32) {
    %c0_i32 = arith.constant 0 : i32
    %c0_i32_0 = arith.constant 0 : i32
    %c0_i32_1 = arith.constant 0 : i32
    return %c0_i32, %c0_i32_0 : i32, i32
  }
  func.func @transform_3(%arg0: i32) -> (i32, i32) {
    %c0_i32 = arith.constant 0 : i32
    %c0_i32_0 = arith.constant 0 : i32
    %c0_i32_1 = arith.constant 0 : i32
    return %c0_i32, %c0_i32_0 : i32, i32
  }
  func.func @transform_4(%arg0: i32) -> (i32, i32) {
    %c0_i32 = arith.constant 0 : i32
    %c0_i32_0 = arith.constant 0 : i32
    %c0_i32_1 = arith.constant 0 : i32
    return %c0_i32, %c0_i32_0 : i32, i32
  }
  func.func @transform_5(%arg0: i32) -> (i32, i32) {
    %c0_i32 = arith.constant 0 : i32
    %c0_i32_0 = arith.constant 0 : i32
    %c0_i32_1 = arith.constant 0 : i32
    return %c0_i32, %c0_i32_0 : i32, i32
  }
  func.func @transform_6(%arg0: i32) -> (i32, i32) {
    %c0_i32 = arith.constant 0 : i32
    %c0_i32_0 = arith.constant 0 : i32
    %c0_i32_1 = arith.constant 0 : i32
    return %c0_i32, %c0_i32_0 : i32, i32
  }
  func.func @transform_7(%arg0: i32) -> (i32, i32) {
    %c0_i32 = arith.constant 0 : i32
    %c0_i32_0 = arith.constant 0 : i32
    %c0_i32_1 = arith.constant 0 : i32
    return %c0_i32, %c0_i32_0 : i32, i32
  }
  func.func @transform_8(%arg0: i32) -> (i32, i32) {
    %c0_i32 = arith.constant 0 : i32
    %c0_i32_0 = arith.constant 0 : i32
    %c0_i32_1 = arith.constant 0 : i32
    return %c0_i32, %c0_i32_0 : i32, i32
  }
  func.func @transform_9(%arg0: i32) -> (i32, i32) {
    %c0_i32 = arith.constant 0 : i32
    %c0_i32_0 = arith.constant 0 : i32
    %c0_i32_1 = arith.constant 0 : i32
    return %c0_i32, %c0_i32_0 : i32, i32
  }
  func.func @transform_10(%arg0: i32) -> (i32, i32) {
    %c0_i32 = arith.constant 0 : i32
    %c0_i32_0 = arith.constant 0 : i32
    %c0_i32_1 = arith.constant 0 : i32
    return %c0_i32, %c0_i32_0 : i32, i32
  }
  func.func @transform_11(%arg0: i32) -> (i32, i32) {
    %c0_i32 = arith.constant 0 : i32
    %c0_i32_0 = arith.constant 0 : i32
    %c0_i32_1 = arith.constant 0 : i32
    return %c0_i32, %c0_i32_0 : i32, i32
  }
  func.func @transform_12(%arg0: i32) -> (i32, i32) {
    %c0_i32 = arith.constant 0 : i32
    %c0_i32_0 = arith.constant 0 : i32
    %c0_i32_1 = arith.constant 0 : i32
    return %c0_i32, %c0_i32_0 : i32, i32
  }
  func.func @transform_13(%arg0: i32) -> (i32, i32) {
    %c0_i32 = arith.constant 0 : i32
    %c0_i32_0 = arith.constant 0 : i32
    %c0_i32_1 = arith.constant 0 : i32
    return %c0_i32, %c0_i32_0 : i32, i32
  }
  func.func @transform_14(%arg0: i32) -> (i32, i32) {
    %c0_i32 = arith.constant 0 : i32
    %c0_i32_0 = arith.constant 0 : i32
    %c0_i32_1 = arith.constant 0 : i32
    return %c0_i32, %c0_i32_0 : i32, i32
  }
  func.func @transform_15(%arg0: i32) -> (i32, i32) {
    %c0_i32 = arith.constant 0 : i32
    %c0_i32_0 = arith.constant 0 : i32
    %c0_i32_1 = arith.constant 0 : i32
    return %c0_i32, %c0_i32_0 : i32, i32
  }
  func.func @transform_16(%arg0: i32) -> (i32, i32, i32) {
    %c0_i32 = arith.constant 0 : i32
    %c0_i32_0 = arith.constant 0 : i32
    %c0_i32_1 = arith.constant 0 : i32
    return %arg0, %c0_i32, %c0_i32_0 : i32, i32, i32
  }
}

</mosaic_0001>

<bundles_post_ra>
// kernel: tile.10
= control target key start
LH: loop header
LB: loop body
LE: loop exit
PB: predicated region body
PF: predicated region fallthrough
CT: control target
= control target key end

     0   :  { %2 = vsyncpa [#allocation1], 0  ;;  %s42_s6 = smov [#allocation0]   ;;  %s59_s0 = inlined_call_operand.hbm [shape: f32[8], index: 0, kind: input, shape index: {}]   ;;  %s60_s1 = inlined_call_operand.vmem [shape: f32[4,1,1,8], index: 1, kind: output, shape index: {}]  }
   0x1   :  { %s9_s7 = sshll.u32 %s42_s6, 4  ;;  %s10_s7 = int_to_ptr.vmem [resolvable:$true] %s9_s7 }
   0x2   :  { %s28_s8 = scalar_lea.vmem %s10_s7, 16  ;;  %s32_s9 = scalar_lea.vmem %s10_s7, 32 }
   0x3   :  { %p29_p0 = scmp.ne.s32.totalorder %s10_s7, %s28_s8  ;;  %p33_p1 = scmp.lt.s32.totalorder %s10_s7, %s10_s7 }
   0x4   :  { %p34_p2 = scmp.lt.s32.totalorder %s32_s9, %s28_s8 }
   0x6   :  { %p35_p3 = por %p34_p2, %p33_p1 }
   0x8   :  { %p36_p4 = pnand %p35_p3, %p29_p0 }
   0xa   :  { %39 = shalt.err (!%p36_p4)
}
   0xb   :  { %12 = dma.hbm_to_vmem [thread:$0]  %s59_s0, 16, %s10_s7, [#allocation1]  }
   0xc   :  { %40 = dma.done.wait [#allocation1], 16  }
   0xd   :  { %41 = vsyncadd [#allocation1], 4294967280  ;;  %v16_v0 = vld [vmem:[#allocation0] ss:$0 sm:$0xff] }
   0xe   :  { %17 = vst [vmem:[%s60_s1] sm:$0xf] %v16_v0 }
   0xf   :  { %18 = vsyncpa [#allocation1], 1 }

// kernel: tile.1
= control target key start
LH: loop header
LB: loop body
LE: loop exit
PB: predicated region body
PF: predicated region fallthrough
CT: control target
= control target key end

     0   :  { %s67_s8 = smov 125   ;;  %vm8_vm0 = vcmask 7168   ;;  %s68_s11 = smov 126   ;;  %s118_s0 = inlined_call_operand.vmem [shape: f32[4,1,1,8], index: 0, kind: input, shape index: {}]   ;;  %s119_s1 = inlined_call_operand.vmem [shape: f32[32,1], index: 1, kind: output, shape index: {}]  }
   0x1   :  { %v5_v0 = vld [vmem:[%s118_s0] sm:$0xf]  ;;  %s66_s0 = smov 127   ;;  %s69_s12 = smov 124  }
   0x2   :  { %6 = vst [vmem:[#allocation0] sm:$0xf] %v5_v0  ;;  %s70_s13 = smov 123   ;;  %s71_s14 = smov 122  }
   0x3   :  { %s72_s15 = smov 121  }
   0x9   :  { %v10_v1 = vld [vmem:[#allocation0] sm:$0xf]  }
   0xa   :  { %v22_v2 = vld [vmem:[#allocation0] sm:$0xf]   ;;  %11 = vrot.lane.b32.xlu0 %v10_v1, %s66_s0 }
   0xb   :  { %23 = vrot.lane.b32.xlu1 %v22_v2, %s67_s8  ;;  %v16_v3 = vld [vmem:[#allocation0] sm:$0xf]  }
   0xc   :  { %v28_v4 = vld [vmem:[#allocation0] sm:$0xf]  }
   0xd   :  { %v7_v5 = vld [vmem:[#allocation0] sm:$0xf]  }
   0xe   :  { %9 = vst.msk [vmem:[%s119_s1] ss:$8 sm:$0xf] %vm8_vm0, %v7_v5   ;;  %17 = vrot.lane.b32.xlu0 %v16_v3, %s68_s11  ;;  %v34_v6 = vld [vmem:[#allocation0] sm:$0xf]  }
   0xf   :  { %29 = vrot.lane.b32.xlu1 %v28_v4, %s69_s12  ;;  %v40_v7 = vld [vmem:[#allocation0] sm:$0xf]  }
  0x10   :  { %v46_v8 = vld [vmem:[#allocation0] sm:$0xf]  }
  0x12   :  { %35 = vrot.lane.b32.xlu0 %v34_v6, %s70_s13 }
  0x13   :  { %41 = vrot.lane.b32.xlu1 %v40_v7, %s71_s14 }
  0x16   :  { %47 = vrot.lane.b32.xlu0 %v46_v8, %s72_s15 }
  0x7c   :  { %v12_v9 = vpop.permute.xlu0 %11  }
  0x7d   :  { %v24_v10 = vpop.permute.xlu1 %23   ;;  %52 = vst.msk [vmem:[%s119_s1 + $0x1] ss:$8 sm:$0xf] %vm8_vm0, %v12_v9  }
  0x7e   :  { %54 = vst.msk [vmem:[%s119_s1 + $0x3] ss:$8 sm:$0xf] %vm8_vm0, %v24_v10  }
  0x80   :  { %v18_v11 = vpop.permute.xlu0 %17  }
  0x81   :  { %v30_v12 = vpop.permute.xlu1 %29   ;;  %53 = vst.msk [vmem:[%s119_s1 + $0x2] ss:$8 sm:$0xf] %vm8_vm0, %v18_v11  }
  0x82   :  { %55 = vst.msk [vmem:[%s119_s1 + $0x4] ss:$8 sm:$0xf] %vm8_vm0, %v30_v12  }
  0x84   :  { %v36_v13 = vpop.permute.xlu0 %35  }
  0x85   :  { %v42_v14 = vpop.permute.xlu1 %41   ;;  %56 = vst.msk [vmem:[%s119_s1 + $0x5] ss:$8 sm:$0xf] %vm8_vm0, %v36_v13  }
  0x86   :  { %57 = vst.msk [vmem:[%s119_s1 + $0x6] ss:$8 sm:$0xf] %vm8_vm0, %v42_v14  }
  0x88   :  { %v48_v15 = vpop.permute.xlu0 %47  }
  0x89   :  { %58 = vst.msk [vmem:[%s119_s1 + $0x7] ss:$8 sm:$0xf] %vm8_vm0, %v48_v15  }

// kernel: forward.1
= control target key start
LH: loop header
LB: loop body
LE: loop exit
PB: predicated region body
PF: predicated region fallthrough
CT: control target
= control target key end

     0   :  { %s6159_s0 = inlined_call_operand.vmem [shape: f32[2,2,256], index: 0, kind: input, shape index: {}]   ;;  %s6160_s1 = inlined_call_operand.vmem [shape: bf16[4,18], index: 1, kind: input, shape index: {}]   ;;  %s6161_s2 = inlined_call_operand.vmem [shape: f32[4,1], index: 2, kind: input, shape index: {}]   ;;  %s6162_s3 = inlined_call_operand.hbm [shape: bf16[256,64], index: 3, kind: input, shape index: {}]   ;;  %s6163_s4 = inlined_call_operand.vmem [shape: bf16[8,36], index: 4, kind: input, shape index: {}]   ;;  %s6164_s5 = inlined_call_operand.vmem [shape: f32[8,1], index: 5, kind: input, shape index: {}]   ;;  %s6165_s6 = inlined_call_operand.vmem [shape: bf16[32,8], index: 6, kind: input, shape index: {}]   ;;  %s6166_s7 = inlined_call_operand.vmem [shape: f32[32,1], index: 7, kind: input, shape index: {}]   ;;  %s6167_s8 = inlined_call_operand.hbm [shape: bf16[64,256], index: 8, kind: input, shape index: {}]   ;;  %s6168_s9 = inlined_call_operand.vmem [shape: bf16[8,72], index: 9, kind: input, shape index: {}]   ;;  %s6169_s10 = inlined_call_operand.vmem [shape: f32[8,1], index: 10, kind: input, shape index: {}]   ;;  %s6170_s11 = inlined_call_operand.vmem [shape: bf16[32,8], index: 11, kind: input, shape index: {}]   ;;  %s6171_s12 = inlined_call_operand.vmem [shape: f32[32,1], index: 12, kind: input, shape index: {}]   ;;  %s6172_s13 = inlined_call_operand.vmem [shape: bf16[256,1024], index: 13, kind: input, shape index: {}]   ;;  %s6173_s14 = inlined_call_operand.vmem [shape: bf16[8,72], index: 14, kind: input, shape index: {}]   ;;  %s6174_s15 = inlined_call_operand.vmem [shape: f32[8,1], index: 15, kind: input, shape index: {}]   ;;  %s6175_s16 = inlined_call_operand.vmem [shape: f32[2,8,1024], index: 16, kind: output, shape index: {}]  }
   0x1   :  { %6231 = sst [smem:[#allocation18_spill]] %s6159_s0 }
   0x2   :  { %21 = vsyncpa [#allocation3], 0 }
   0x3   :  { %22 = vsyncpa [#allocation5], 0  ;;  %s4571_s21 = smov 0  }
   0x4 LB: > { %s4456_s22 = smov [#allocation2]   ;;  %s4577_s24 = sadd.s32 4294967295, %s4454_s21   ;;  %s4454_s21 = sphi %s4571_s21, %s28_s21  }
   0x5   : > { %s418_s23 = sshll.u32 %s4456_s22, 4  ;;  %p3659_p0 = scmp.ge.s32.totalorder %s4454_s21, 1  ;;  %s419_s23 = int_to_ptr.vmem [resolvable:$true] %s418_s23 }
   0x6   : > { %p400_p1 = scmp.lt.s32.totalorder %s4454_s21, 3  ;;  %p4032_p3 = scmp.eq.s32.totalorder %s4577_s24, 0 }
   0x7   : > { %s4457_s26 = smov [#allocation4]   ;;  %s4399_s29 = scalar_lea.vmem %s419_s23, 2048 }
   0x8   : > { %p4581_p2 = pnand %p3659_p0, %p400_p1  ;;  %s443_s27 = sshll.u32 %s4457_s26, 4  ;;  %s444_s27 = int_to_ptr.vmem [resolvable:$true] %s443_s27 }
   0x9   : > { %p4400_p7 = scmp.ne.s32.totalorder %s419_s23, %s4399_s29  ;;  %p4407_p10 = scmp.lt.s32.totalorder %s419_s23, %s419_s23 }
   0xa   : > { %p4025_p4 = pneg %p4581_p2  ;;  %p4408_p11 = scmp.lt.s32.totalorder %s4399_s29, %s4399_s29 }
   0xc   : > { %p4590_p5 = pnand %p4032_p3, %p4025_p4  ;;  %p4409_p12 = por %p4408_p11, %p4407_p10 }
   0xe   : > { %p4390_p6 = pneg %p4590_p5 }
  0x10   : > { %p4402_p8 = pnand %p4400_p7, %p4390_p6 }
  0x12   : > { %p4403_p9 = pneg %p4402_p8 }
  0x14   : > { %p4410_p13 = pnand %p4409_p12, %p4403_p9 }
  0x16   : > { %4413 = shalt.err (!%p4410_p13)
}
  0x17   : > { %s4458_s30 = smov 64   ;;  %s4459_s0 = smov 4  }
  0x18   : > { %4028 = dma.hbm_to_vmem [thread:$0]  (!%p4590_p5), %s6162_s3, 2048, %s419_s23, [#allocation3], %s4458_s30, %s4458_s30, %s4459_s0  }
  0x19   : > { %s4425_s19 = scalar_lea.vmem %s444_s27, 1024  ;;  %p4433_p7 = scmp.lt.s32.totalorder %s444_s27, %s444_s27 }
  0x1a   : > { %p4426_p0 = scmp.ne.s32.totalorder %s444_s27, %s4425_s19  ;;  %p4434_p8 = scmp.lt.s32.totalorder %s4425_s19, %s4425_s19 }
  0x1c   : > { %p4428_p1 = pnand %p4426_p0, %p4390_p6  ;;  %p4435_p10 = por %p4434_p8, %p4433_p7 }
  0x1e   : > { %p4429_p4 = pneg %p4428_p1 }
  0x20   : > { %p4436_p9 = pnand %p4435_p10, %p4429_p4 }
  0x22   : > { %4439 = shalt.err (!%p4436_p9)
}
  0x23   : > { %s4460_s20 = smov 128   ;;  %s4461_s22 = smov 8  }
  0x24   : > { %4031 = dma.hbm_to_vmem [thread:$0]  (!%p4590_p5), %s6167_s8, 1024, %s444_s27, [#allocation5], %s4460_s20, %s4460_s20, %s4461_s22  }
  0x25   : > { %488 = sbr.rel (%p4581_p2) target bundleno = 3571 (0xdf3), region = 84 }
  0x2a   : > { %4445 = dma.done.wait (%p4032_p3), [#allocation3], 2048  }
  0x2b   : > { %4447 = vsyncadd (%p4032_p3), [#allocation3], 4294965248 }
  0x2c   : > { %4449 = dma.done.wait (%p4032_p3), [#allocation5], 1024  }
  0x2d   : > { %4451 = vsyncadd (%p4032_p3), [#allocation5], 4294966272  ;;  %p542_p6 = scmp.lt.s32.totalorder %s4577_s24, 1  ;;  %s6234_s28 = sld [smem:[#allocation18_spill]]  ;;  %vm569_vm0 = vcmask 138240   ;;  %v6196_v17 = vmov 0   ;;  %v576_v21 = vlaneseq }
  0x2e   : > { %s4462_s0 = smov 17   ;;  %s6180_s17 = smov 112   ;;  %814 = vmatprep.mubr.bf16.mxu0 %v6196_v17  ;;  %4119 = vset.pattern.permute.xlu1 %v6196_v17  ;;  %v555_v20 = vld [vmem:[%s6161_s2] sm:$0xf]  ;;  %vm651_vm3 = vcmask 900096   ;;  %vm6176_vm6 = vcmask 1031168  }
  0x2f   : > { %s6450_s24 = smov (!%p542_p6, %s4577_s24), 1  ;;  %s6182_s18 = smov 110   ;;  %4130 = vset.pattern.permute.xlu0 %v6196_v17  ;;  %v4672_v24 = vand.u32 127, %v576_v21  ;;  %vm6193_vm7 = vcmask 785408   ;;  %vm6194_vm8 = vcmask 769024   ;;  %vm638_vm9 = vcmask 916480  }
  0x30   : > { %s3969_s23 = sshll.u32 %s6450_s24, 2  ;;  %s4465_s19 = smov 111   ;;  %vm775_vm10 = vcmask 1040384   ;;  %vm716_vm11 = vcmask 908288   ;;  %vm6177_vm12 = vcmask 1039360   ;;  %vm747_vm13 = vcmask 1041408  }
  0x31   : > { %s6186_s20 = smov 126   ;;  %s6190_s22 = smov 96   ;;  %v4677_v27 = vadd.s32 128, %v4672_v24  ;;  %v583_v29 = vand.u32 15, %v4672_v24  ;;  %vm6209_vm14 = vcmask 1043456   ;;  %vm6192_vm15 = vcmask 777216  }
  0x32   : > { %s6178_s26 = smov 94   ;;  %s6184_s29 = smov 127   ;;  %v1399_v35 = vld [vmem:[%s6168_s9] sm:$0xf] }
  0x33   : > { %s546_s30 = scalar_lea.vmem %s6234_s28, %s3969_s23  ;;  %s6188_s23 = smov 95   ;;  %v590_v30 = vand.u32 15, %v4677_v27  ;;  %vm4681_vm1 = vcmp.ge.s32.totalorder %v583_v29, 1  ;;  %vm4689_vm4 = vcmp.le.s32.totalorder %v583_v29, 14  ;;  %v1639_v38 = vld [vmem:[%s6172_s13 + $0x1c0] sm:$0xff] }
  0x34   : > { %v3670_v0 = vld.sshfl [vmem:[%s546_s30] sm:$0x33 pattern:$0x76325410]  ;;  %s4473_s25 = smov 9   ;;  %s4474_s27 = smov 118  }
  0x35   : > { %v564_v1 = vcombine.high %v3670_v0, %v3670_v0  ;;  %vm4685_vm2 = vcmp.ge.s32.totalorder %v590_v30, 1  ;;  %vm4693_vm5 = vcmp.le.s32.totalorder %v590_v30, 14  ;;  %s4475_s28 = smov 119   ;;  %s4477_s30 = smov 120  }
  0x37   : > { %v4074_v2 = vpack.i.bf16 %v564_v1, %v3670_v0 }
  0x39   : > { %4075 = vrot.lane.b32.xlu0 %v4074_v2, %s4462_s0 }
  0xab   : > { %v4076_v3 = vpop.permute.xlu0 %4075 }
  0xac   : > { %v4077_v4 = vunpack.i.l.bf16 %v4076_v3  ;;  %v4078_v5 = vunpack.i.h.bf16 %v4076_v3 }
  0xae   : > { %v4632_v6 = vsel %vm569_vm0, 0.0, %v4077_v4  ;;  %v575_v7 = vsel %vm569_vm0, %v4078_v5, 0.0  ;;  %v4640_v8 = vsel %vm569_vm0, %v4077_v4, %v4078_v5 }
  0xaf   : > { %632 = vrot.lane.b32.xlu0 %v4632_v6, %s6180_s17  ;;  %645 = vrot.lane.b32.xlu1 %v4632_v6, %s6182_s18  ;;  %v4079_v9 = vpack.i.bf16 %v575_v7, %v4640_v8  ;;  %v4094_v10 = vpack.i.bf16 %v4640_v8, %v4632_v6  ;;  %v684_v11 = vrot.slane %v4632_v6, 6  ;;  %v685_v12 = vrot.slane %v4640_v8, 6 }
  0xb0   : > { %v686_v13 = vrot.slane %v575_v7, 6  ;;  %v734_v15 = vrot.slane %v4640_v8, 2  ;;  %v735_v16 = vrot.slane %v575_v7, 2  ;;  %v733_v18 = vrot.slane %v4632_v6, 2 }
  0xb1   : > { %v610_v42 = vsel %vm4685_vm2, %v4640_v8, 0.0  ;;  %v609_v43 = vsel %vm4681_vm1, %v4632_v6, 0.0 }
  0xb2   : > { %v4109_v14 = vpack.i.bf16 %v686_v13, %v685_v12  ;;  %v4114_v19 = vpack.i.bf16 %v735_v16, %v734_v15 }
  0xb3   : > { %710 = vrot.lane.b32.xlu0 %v4632_v6, %s4465_s19  ;;  %619 = vrot.lane.b32.xlu1 %v4632_v6, %s6186_s20 }
  0xb7   : > { %658 = vrot.lane.b32.xlu1 %v4632_v6, %s6190_s22  ;;  %4080 = vrot.lane.b32.xlu0 %v4079_v9, %s6182_s18 }
  0xbb   : > { %4085 = vrot.lane.b32.xlu1 %v4079_v9, %s6186_s20  ;;  %4090 = vrot.lane.b32.xlu0 %v4079_v9, %s6190_s22 }
  0xbf   : > { %4095 = vrot.lane.b32.xlu1 %v4094_v10, %s6178_s26  ;;  %675 = vrot.lane.b32.xlu0 %v575_v7, %s6178_s26  ;;  %s4479_s26 = smov 16  }
  0xc3   : > { %687 = vrot.lane.b32.xlu1 %v684_v11, %s6184_s29  ;;  %4100 = vrot.lane.b32.xlu0 %v4079_v9, %s6180_s17 }
  0xc7   : > { %4105 = vrot.lane.b32.xlu0 %v4079_v9, %s4465_s19  ;;  %4110 = vrot.lane.b32.xlu1 %v4109_v14, %s6184_s29 }
  0xcb   : > { %736 = vrot.lane.b32.xlu0 %v733_v18, %s6188_s23  ;;  %4115 = vrot.lane.b32.xlu1 %v4114_v19, %s6188_s23 }
  0xcf   : > { %768 = vperm.xlu1 %4119, %v555_v20  }
 0x121   : > { %v633_v22 = vpop.permute.xlu0 %632  ;;  %v646_v23 = vpop.permute.xlu1 %645 }
 0x125   : > { %v4674_v25 = vpop.permute.xlu0 %710  ;;  %v620_v26 = vpop.permute.xlu1 %619 }
 0x129   : > { %v659_v28 = vpop.permute.xlu1 %658  ;;  %v4081_v31 = vpop.permute.xlu0 %4080 }
 0x12a   : > { %v4083_v32 = vunpack.i.h.bf16 %v4081_v31  ;;  %v4082_v33 = vunpack.i.l.bf16 %v4081_v31 }
 0x12c   : > { %v652_v44 = vsel %vm651_vm3, %v646_v23, %v4082_v33  ;;  %v653_v45 = vsel %vm651_vm3, %v4082_v33, %v4083_v32 }
 0x12d   : > { %v4086_v34 = vpop.permute.xlu1 %4085  ;;  %v4091_v37 = vpop.permute.xlu0 %4090  ;;  %v656_v52 = vsel %vm4689_vm4, %v652_v44, 0.0  ;;  %v657_v53 = vsel %vm4693_vm5, %v653_v45, 0.0 }
 0x12e   : > { %v4088_v40 = vunpack.i.h.bf16 %v4086_v34  ;;  %v4087_v41 = vunpack.i.l.bf16 %v4086_v34  ;;  %v4093_v46 = vunpack.i.h.bf16 %v4091_v37  ;;  %v4092_v47 = vunpack.i.l.bf16 %v4091_v37 }
 0x12f   : > { %v723_v7 = vrot.slane %v656_v52, 6  ;;  %v724_v11 = vrot.slane %v657_v53, 6 }
 0x130   : > { %v626_v54 = vsel %vm6176_vm6, %v620_v26, %v4087_v41  ;;  %v627_v55 = vsel %vm6176_vm6, %v4087_v41, %v4088_v40  ;;  %v665_v56 = vsel %vm6193_vm7, %v659_v28, %v4092_v47  ;;  %v666_v57 = vsel %vm6193_vm7, %v4092_v47, %v4093_v46 }
 0x131   : > { %v4096_v48 = vpop.permute.xlu1 %4095  ;;  %v676_v49 = vpop.permute.xlu0 %675  ;;  %v630_v2 = vsel %vm4689_vm4, %v626_v54, 0.0  ;;  %v631_v3 = vsel %vm4693_vm5, %v627_v55, 0.0  ;;  %v669_v9 = vsel %vm4681_vm1, %v665_v56, 0.0  ;;  %vm753_vm6 = vcmask 1045504  }
 0x132   : > { %v4098_v50 = vunpack.i.h.bf16 %v4096_v48  ;;  %v4097_v51 = vunpack.i.l.bf16 %v4096_v48  ;;  %v670_v12 = vsel %vm4685_vm2, %v666_v57, 0.0  ;;  %v700_v18 = vrot.slane %v630_v2, 4  ;;  %v4356_v2 = vld [vmem:[#allocation2 + $0x78] sm:$0xff]  }
 0x133   : > { %v701_v19 = vrot.slane %v631_v3, 4  ;;  %v729_v23 = vrot.slane %v669_v9, 4  ;;  %v730_v29 = vrot.slane %v670_v12, 4  ;;  %v4357_v3 = vld [vmem:[#allocation2 + $0x38] sm:$0xff]   ;;  %3971 = vmatprep.subr.bf16.mxu1 %v4356_v2  ;;  %v4360_v12 = vld [vmem:[#allocation2 + $0x68] sm:$0xff]  }
 0x134   : > { %v679_v58 = vsel %vm6194_vm8, %v4098_v50, %v676_v49  ;;  %v678_v61 = vsel %vm6194_vm8, %v4097_v51, %v4098_v50  ;;  %3972 = vmatpush3.bf16.msra.mxu1 %v4357_v3 }
 0x135   : > { %v688_v59 = vpop.permute.xlu1 %687  ;;  %v4101_v60 = vpop.permute.xlu0 %4100  ;;  %v683_v0 = vsel %vm4693_vm5, %v679_v58, 0.0  ;;  %v682_v1 = vsel %vm4689_vm4, %v678_v61, 0.0 }
 0x136   : > { %v4103_v62 = vunpack.i.h.bf16 %v4101_v60  ;;  %v4102_v63 = vunpack.i.l.bf16 %v4101_v60  ;;  %v765_v4 = vpack.c.bf16 %v683_v0, %v683_v0  ;;  %v764_v5 = vpack.c.bf16 %v682_v1, %v682_v1 }
 0x138   : > { %v639_v10 = vsel %vm638_vm9, %v633_v22, %v4102_v63  ;;  %v640_v13 = vsel %vm638_vm9, %v4102_v63, %v4103_v62  ;;  %3671 = vmatprep.subr.msk.bf16.mxu0 %vm775_vm10, %v765_v4  ;;  %v777_v14 = vsel %vm775_vm10, %v764_v5, 0  ;;  %vm771_vm10 = vcmask 146432   ;;  %v4358_v4 = vld [vmem:[#allocation2 + $0x70] sm:$0xff]  }
 0x139   : > { %v4106_v15 = vpop.permute.xlu0 %4105  ;;  %v4111_v16 = vpop.permute.xlu1 %4110  ;;  %795 = vmatpush1.bf16.msra.mxu0 %v777_v14  ;;  %v643_v22 = vsel %vm4681_vm1, %v639_v10, 0.0  ;;  %v644_v30 = vsel %vm4685_vm2, %v640_v13, 0.0  ;;  %v4359_v10 = vld [vmem:[#allocation2 + $0x30] sm:$0xff]   ;;  %3973 = vmatprep.subr.bf16.mxu1 %v4358_v4  ;;  %v4361_v13 = vld [vmem:[#allocation2 + $0x28] sm:$0xff]   ;;  %v4362_v14 = vld [vmem:[#allocation2 + $0x60] sm:$0xff]  }
 0x13a   : > { %v4108_v20 = vunpack.i.h.bf16 %v4106_v15  ;;  %v4107_v21 = vunpack.i.l.bf16 %v4106_v15  ;;  %v4113_v26 = vunpack.i.h.bf16 %v4111_v16  ;;  %v4112_v28 = vunpack.i.l.bf16 %v4111_v16  ;;  %3974 = vmatpush3.bf16.msra.mxu1 %v4359_v10  ;;  %v4363_v15 = vld [vmem:[#allocation2 + $0x20] sm:$0xff]   ;;  %v4364_v16 = vld [vmem:[#allocation2 + $0x58] sm:$0xff]  }
 0x13b   : > { %v706_v44 = vrot.slane %v643_v22, 2  ;;  %v707_v47 = vrot.slane %v644_v30, 2  ;;  %3975 = vmatprep.subr.bf16.mxu1 %v4360_v12  ;;  %v4370_v22 = vld [vmem:[#allocation2 + $0x40] sm:$0xff]  }
 0x13c   : > { %v717_v31 = vsel %vm716_vm11, %v4674_v25, %v4107_v21  ;;  %v718_v32 = vsel %vm716_vm11, %v4107_v21, %v4108_v20  ;;  %v694_v33 = vsel %vm6177_vm12, %v688_v59, %v4112_v28  ;;  %v695_v34 = vsel %vm6177_vm12, %v4112_v28, %v4113_v26  ;;  %v4367_v20 = vld [vmem:[#allocation2 + $0x10] sm:$0xff]   ;;  %v4368_v21 = vld [vmem:[#allocation2 + $0x48] sm:$0xff]   ;;  %v4371_v26 = vld [vmem:[#allocation2] sm:$0xff]  }
 0x13d   : > { %v4116_v37 = vpop.permute.xlu1 %4115  ;;  %v757_v40 = vsel %vm747_vm13, %v718_v32, %v724_v11  ;;  %v756_v41 = vsel %vm747_vm13, %v717_v31, %v723_v7  ;;  %v749_v25 = vsel %vm747_vm13, %v610_v42, %v695_v34  ;;  %v737_v48 = vpop.permute.xlu0 %736  ;;  %v748_v51 = vsel %vm747_vm13, %v609_v43, %v694_v33  ;;  %v554_v43 = vld [vmem:[%s6160_s1] sm:$0x3] }
 0x13e   : > { %v4118_v45 = vunpack.i.h.bf16 %v4116_v37  ;;  %v4117_v46 = vunpack.i.l.bf16 %v4116_v37  ;;  %v752_v49 = vsel %vm6209_vm14, %v749_v25, %v701_v19  ;;  %v759_v50 = vsel %vm6209_vm14, %v757_v40, %v730_v29  ;;  %3976 = vmatpush3.bf16.msra.mxu1 %v4361_v13  ;;  %v4366_v19 = vld [vmem:[#allocation2 + $0x50] sm:$0xff]  }
 0x13f   : > { %v751_v8 = vsel %vm6209_vm14, %v748_v51, %v700_v18  ;;  %v758_v42 = vsel %vm6209_vm14, %v756_v41, %v729_v23  ;;  %v755_v54 = vsel %vm753_vm6, %v752_v49, %v707_v47  ;;  %v4472_v59 = vmov 0.0   ;;  %3977 = vmatprep.subr.bf16.mxu1 %v4362_v14  ;;  %v4365_v18 = vld [vmem:[#allocation2 + $0x18] sm:$0xff]   ;;  %v4369_v23 = vld [vmem:[#allocation2 + $0x8] sm:$0xff]  }
 0x140   : > { %v744_v52 = vsel %vm6192_vm15, %v4117_v46, %v4118_v45  ;;  %v743_v53 = vsel %vm6192_vm15, %v737_v48, %v4117_v46  ;;  %v754_v56 = vsel %vm753_vm6, %v751_v8, %v706_v44 }
 0x141   : > { %v761_v55 = vsel %vm753_vm6, %v759_v50, %v744_v52  ;;  %v760_v57 = vsel %vm753_vm6, %v758_v42, %v743_v53  ;;  %vm1033_vm6 = vcmask 72704  }
 0x142   : > { %v763_v58 = vpack.c.bf16 %v761_v55, %v755_v54  ;;  %v762_v6 = vpack.c.bf16 %v760_v57, %v754_v56  ;;  %3978 = vmatpush3.bf16.msra.mxu1 %v4363_v15 }
 0x143   : > { %3979 = vmatprep.subr.bf16.mxu1 %v4364_v16 }
 0x144   : > { %796 = vmatprep.subr.bf16.mxu0 %v763_v58 }
 0x145   : > { %797 = vmatpush1.bf16.msra.mxu0 %v762_v6 }
 0x146   : > { %4000 = vmatprep.subr.bf16.mxu0 %v4472_v59  ;;  %3980 = vmatpush3.bf16.msra.mxu1 %v4365_v18 }
 0x147   : > { %3981 = vmatprep.subr.bf16.mxu1 %v4366_v19 }
 0x148   : > { %3672 = vmatmul.mubr.msk.bf16.vlgmr.msra.gmra.mxu0 %vm771_vm10, %v554_v43  ;;  %vm1035_vm10 = vcmask 596992   ;;  %v1028_v43 = vld [vmem:[%s6164_s5] sm:$0xff] }
 0x14a   : > { %v769_v60 = vpop.permute.xlu1 %768  ;;  %3982 = vmatpush3.bf16.msra.mxu1 %v4367_v20 }
 0x14b   : > { %3983 = vmatprep.subr.bf16.mxu1 %v4368_v21 }
 0x14e   : > { %3984 = vmatpush3.bf16.msra.mxu1 %v4369_v23 }
 0x14f   : > { %3985 = vmatprep.subr.bf16.mxu1 %v4370_v22 }
 0x152   : > { %3986 = vmatpush3.bf16.msra.mxu1 %v4371_v26 }
 0x208   : > { %v816_v61 = vpop.f32.mrf.mxu0 }
 0x209   : > { %v817_v62 = vadd.f32 %v816_v61, %v769_v60  ;;  %v1159_v61 = vld [vmem:[%s6166_s7 + $0x10] sm:$0xff] }
 0x20a   : > { %v818_v63 = vpop.f32.mrf.mxu0 }
 0x20b   : > { %v823_v0 = vmax.f32 %v817_v62, 0.0  ;;  %v819_v1 = vadd.f32 %v818_v63, %v769_v60  ;;  %v1158_v60 = vld [vmem:[%s6166_s7 + $0x8] sm:$0xff]  ;;  %v1041_v62 = vand.u32 7, %v4672_v24 }
 0x20c   : > { %v820_v5 = vpop.f32.mrf.mxu0 }
 0x20d   : > { %v824_v7 = vmax.f32 %v819_v1, 0.0  ;;  %860 = vrot.lane.b32.xlu1 %v823_v0, %s6184_s29 }
 0x20e   : > { %v821_v9 = vpop.f32.mrf.mxu0 }
 0x20f   : > { %v4120_v11 = vpack.i.bf16 %v4472_v59, %v824_v7 }
 0x211   : > { %4121 = vrot.lane.b32.xlu0 %v4120_v11, %s6184_s29 }
 0x27f   : > { %v861_v31 = vpop.permute.xlu1 %860 }
 0x283   : > { %v4122_v28 = vpop.permute.xlu0 %4121 }
 0x284   : > { %v4124_v29 = vunpack.i.h.bf16 %v4122_v28  ;;  %v4123_v30 = vunpack.i.l.bf16 %v4122_v28 }
 0x286   : > { %v873_v32 = vmax.f32 %v4124_v29, 0.0  ;;  %v866_v33 = vsel %vm6177_vm12, %v861_v31, %v4123_v30  ;;  %v867_v34 = vsel %vm6177_vm12, %v4123_v30, %v4124_v29  ;;  %vm4476_vm12 = vmmov 0   ;;  %v1027_v30 = vld [vmem:[%s6163_s4] sm:$0xf] }
 0x287   : > { %v870_v37 = vmax.f32 %v823_v0, %v866_v33  ;;  %v871_v40 = vmax.f32 %v824_v7, %v867_v34  ;;  %4006 = vmatprep.mubr.msk.bf16.mxu0 %vm4476_vm12, %v4472_v59  ;;  %vm4792_vm12 = vcmp.le.s32.totalorder %v1041_v62, 6  ;;  %v4372_v31 = vld [vmem:[%s6165_s6] sm:$0xff]  }
 0x289   : > { %877 = vrot.lane.b32.xlu1 %v870_v37, %s6180_s17  ;;  %v4125_v41 = vpack.i.bf16 %v873_v32, %v871_v40  ;;  %v1160_v32 = vld [vmem:[%s6166_s7 + $0x18] sm:$0xff] }
 0x28b   : > { %4126 = vrot.lane.b32.xlu0 %v4125_v41, %s6180_s17 }
 0x2fb   : > { %v878_v25 = vpop.permute.xlu1 %877 }
 0x2fd   : > { %v4127_v44 = vpop.permute.xlu0 %4126 }
 0x2fe   : > { %v4129_v45 = vunpack.i.h.bf16 %v4127_v44  ;;  %v4128_v46 = vunpack.i.l.bf16 %v4127_v44 }
 0x300   : > { %v884_v47 = vsel %vm638_vm9, %v4128_v46, %v4129_v45  ;;  %v883_v48 = vsel %vm638_vm9, %v878_v25, %v4128_v46  ;;  %v4376_v46 = vld [vmem:[#allocation4 + $0x34] ss:$8 sps:$4 sm:$0xff]  }
 0x301   : > { %v888_v49 = vmax.f32 %v871_v40, %v884_v47  ;;  %v887_v50 = vmax.f32 %v870_v37, %v883_v48  ;;  %v4373_v48 = vld [vmem:[%s6165_s6 + $0x8] sm:$0xff]  }
 0x303   : > { %v890_v51 = vpack.c.bf16 %v888_v49, %v888_v49  ;;  %v889_v52 = vpack.c.bf16 %v887_v50, %v887_v50  ;;  %v4374_v49 = vld [vmem:[#allocation4 + $0x30] ss:$8 sps:$4 sm:$0xff]   ;;  %v4379_v50 = vld [vmem:[#allocation4 + $0x24] ss:$8 sps:$4 sm:$0xff]  }
 0x305   : > { %1019 = vmatprep.mubr.bf16.mxu1 %v890_v51  ;;  %v4377_v51 = vld [vmem:[#allocation4 + $0x20] ss:$8 sps:$4 sm:$0xff]  }
 0x306   : > { %1020 = vmatmul.mubr.bf16.vlgmr.msra.gmra.mxu1 %v889_v52  ;;  %v4380_v52 = vld [vmem:[#allocation4 + $0x10] ss:$8 sps:$4 sm:$0xff]  }
 0x307   : > { %1564 = vmatprep.mubr.bf16.mxu1 %v6196_v17 }
 0x3c6   : > { %v3987_v53 = vpop.f32.mrf.mxu1 }
 0x3c8   : > { %v3988_v8 = vpop.f32.mrf.mxu1 }
 0x3c9   : > { %v3989_v42 = vadd.f32 %v3988_v8, %v3987_v53  ;;  %v4382_v53 = vld [vmem:[#allocation4 + $0x14] ss:$8 sps:$4 sm:$0xff]   ;;  %v4385_v8 = vld [vmem:[#allocation4 + $0x4] ss:$8 sps:$4 sm:$0xff]  }
 0x3ca   : > { %v3990_v54 = vpop.f32.mrf.mxu1 }
 0x3cb   : > { %1030 = vrot.lane.b32.xlu0 %v3989_v42, %s4473_s25  ;;  %v4383_v42 = vld [vmem:[#allocation4] ss:$8 sps:$4 sm:$0xff]   ;;  %s6247_s25 = smov 112  }
 0x3cc   : > { %v3991_v55 = vpop.f32.mrf.mxu1 }
 0x43d   : > { %v1031_v56 = vpop.permute.xlu0 %1030 }
 0x43e   : > { %v1034_v57 = vsel %vm1033_vm6, 0.0, %v1031_v56  ;;  %vm1049_vm6 = vcmp.ge.s32.totalorder %v1041_v62, 1 }
 0x43f   : > { %v1036_v58 = vsel %vm1035_vm10, %v1034_v57, 0.0  ;;  %vm1200_vm10 = vcmask 64512  }
 0x440   : > { %1065 = vrot.lane.b32.xlu0 %v1036_v58, %s4474_s27  ;;  %1073 = vrot.lane.b32.xlu1 %v1036_v58, %s6182_s18  ;;  %v1077_v6 = vrot.slane %v1036_v58, 4  ;;  %v1052_v21 = vsel %vm1049_vm6, %v1036_v58, 0.0  ;;  %s6248_s27 = smov 127   ;;  %s4485_s18 = smov 63  }
 0x444   : > { %1084 = vrot.lane.b32.xlu0 %v1036_v58, %s4475_s28  ;;  %1069 = vrot.lane.b32.xlu1 %v1036_v58, %s6180_s17  ;;  %s4482_s28 = smov 33   ;;  %s4483_s17 = smov 62  }
 0x448   : > { %1061 = vrot.lane.b32.xlu0 %v1036_v58, %s4477_s30  ;;  %1090 = vrot.lane.b32.xlu1 %v1077_v6, %s4465_s19  ;;  %s6245_s30 = smov 110  }
 0x44c   : > { %1078 = vrot.lane.b32.xlu0 %v1077_v6, %s6184_s29  ;;  %1057 = vrot.lane.b32.xlu1 %v1036_v58, %s6186_s20  ;;  %s4478_s29 = smov 1  }
 0x450   : > { %1102 = vperm.xlu1 %4119, %v1028_v43  }
 0x454   : > { %1177 = vperm.xlu1 %4119, %v1158_v60  }
 0x458   : > { %1182 = vperm.xlu1 %4119, %v1159_v61  }
 0x4b2   : > { %v1066_v0 = vpop.permute.xlu0 %1065  ;;  %v1074_v1 = vpop.permute.xlu1 %1073 }
 0x4b3   : > { %v1076_v2 = vsel %vm4792_vm12, %v1074_v1, 0.0  ;;  %v1068_v3 = vsel %vm4792_vm12, %v1066_v0, 0.0 }
 0x4b4   : > { %v1099_v4 = vpack.c.bf16 %v1076_v2, %v1076_v2  ;;  %v1088_v10 = vrot.slane %v1068_v3, 4 }
 0x4b6   : > { %v1085_v5 = vpop.permute.xlu0 %1084  ;;  %v1070_v7 = vpop.permute.xlu1 %1069  ;;  %v1110_v9 = vsel %vm747_vm13, %v1099_v4, 0  ;;  %vm1105_vm13 = vcmask 293888  }
 0x4b7   : > { %4001 = vmatpush3.bf16.msra.mxu0 %v1110_v9  ;;  %v1072_v11 = vsel %vm1049_vm6, %v1070_v7, 0.0  ;;  %v1095_v14 = vsel %vm6209_vm14, %v1085_v5, %v1088_v10 }
 0x4b8   : > { %4002 = vmatprep.subr.bf16.mxu0 %v4472_v59 }
 0x4ba   : > { %v1062_v12 = vpop.permute.xlu0 %1061  ;;  %v1091_v13 = vpop.permute.xlu1 %1090 }
 0x4bb   : > { %v1064_v15 = vsel %vm1049_vm6, %v1062_v12, 0.0  ;;  %v1096_v16 = vsel %vm6209_vm14, %v1072_v11, %v1091_v13  ;;  %vm1367_vm6 = vcmask 7168  }
 0x4bc   : > { %v1098_v18 = vpack.c.bf16 %v1096_v16, %v1095_v14  ;;  %v1082_v19 = vrot.slane %v1064_v15, 4 }
 0x4be   : > { %v1079_v20 = vpop.permute.xlu0 %1078  ;;  %4003 = vmatpush3.bf16.msra.mxu0 %v1098_v18  ;;  %v1058_v23 = vpop.permute.xlu1 %1057 }
 0x4bf   : > { %v1093_v22 = vsel %vm6209_vm14, %v1052_v21, %v1079_v20  ;;  %v1060_v26 = vsel %vm4792_vm12, %v1058_v23, 0.0  ;;  %4004 = vmatprep.subr.bf16.mxu0 %v4472_v59  ;;  %v1157_v59 = vld [vmem:[%s6166_s7] sm:$0xff]  ;;  %vm6195_vm12 = vcmask 523264  }
 0x4c0   : > { %v1094_v28 = vsel %vm6209_vm14, %v1060_v26, %v1082_v19  ;;  %1172 = vperm.xlu0 %4130, %v1157_v59  }
 0x4c1   : > { %v1097_v29 = vpack.c.bf16 %v1094_v28, %v1093_v22 }
 0x4c3   : > { %4005 = vmatpush3.bf16.msra.mxu0 %v1097_v29 }
 0x4c4   : > { %1187 = vperm.xlu0 %4130, %v1160_v32  }
 0x4c6   : > { %4007 = vmatmul.mubr.msk.bf16.vlgmr.msra.gmra.mxu0 %vm1105_vm13, %v1027_v30  ;;  %vm1380_vm13 = vcmask 130048  }
 0x4c7   : > { %4012 = vmatprep.mubr.msk.bf16.mxu0 %vm1200_vm10, %v4372_v31 }
 0x4cb   : > { %v1103_v33 = vpop.permute.xlu1 %1102 }
 0x4cf   : > { %v1178_v58 = vpop.permute.xlu1 %1177 }
 0x4d3   : > { %v1183_v0 = vpop.permute.xlu1 %1182 }
 0x53b   : > { %v1173_v56 = vpop.permute.xlu0 %1172 }
 0x53f   : > { %v1188_v62 = vpop.permute.xlu0 %1187 }
 0x586   : > { %v1146_v34 = vpop.f32.mrf.mxu0 }
 0x587   : > { %v1147_v37 = vadd.f32 %v1146_v34, %v1103_v33 }
 0x588   : > { %v4008_v40 = vpop.f32.mrf.mxu0 }
 0x589   : > { %v1152_v41 = vmax.f32 %v1147_v37, 0.0 }
 0x58a   : > { %v1149_v44 = vpop.f32.mrf.mxu0 }
 0x58b   : > { %v1169_v45 = vpack.c.bf16 %v1152_v41, %v1152_v41 }
 0x58c   : > { %v4009_v25 = vpop.f32.mrf.mxu0 }
 0x58d   : > { %4016 = vmatprep.subr.msk.bf16.mxu0 %vm6209_vm14, %v1169_v45  ;;  %v1208_v47 = vsel %vm6209_vm14, %v1169_v45, 0 }
 0x58e   : > { %4011 = vmatpush3.bf16.msra.mxu0 %v1208_v47 }
 0x58f   : > { %1316 = vmatprep.subr.bf16.mxu0 %v4376_v46 }
 0x591   : > { %4013 = vmatmul.mubr.msk.bf16.vlgmr.msra.gmra.mxu0 %vm1200_vm10, %v4373_v48  ;;  %v1579_v48 = vld [vmem:[%s6171_s12] sm:$0xff] }
 0x592   : > { %1317 = vmatpush1.bf16.msra.mxu0 %v4374_v49  ;;  %1340 = vmatprep.mubr.bf16.mxu0 %v6196_v17  ;;  %v1400_v49 = vld [vmem:[%s6169_s10] sm:$0xff] }
 0x593   : > { %1318 = vmatprep.subr.bf16.mxu0 %v4379_v50  ;;  %v1581_v50 = vld [vmem:[%s6171_s12 + $0x10] sm:$0xff] }
 0x596   : > { %1319 = vmatpush1.bf16.msra.mxu0 %v4377_v51  ;;  %v1580_v51 = vld [vmem:[%s6171_s12 + $0x8] sm:$0xff] }
 0x597   : > { %1320 = vmatprep.subr.bf16.mxu0 %v4382_v53 }
 0x59a   : > { %1321 = vmatpush1.bf16.msra.mxu0 %v4380_v52  ;;  %v1582_v52 = vld [vmem:[%s6171_s12 + $0x18] sm:$0xff] }
 0x59b   : > { %1322 = vmatprep.subr.bf16.mxu0 %v4385_v8 }
 0x59e   : > { %1323 = vmatpush1.bf16.msra.mxu0 %v4383_v42 }
 0x651   : > { %v4014_v54 = vpop.f32.mrf.mxu0 }
 0x652   : > { %v1253_v1 = vadd.f32 %v4014_v54, %v1183_v0 }
 0x653   : > { %v1244_v55 = vpop.f32.mrf.mxu0 }
 0x654   : > { %v1245_v43 = vadd.f32 %v1244_v55, %v1173_v56 }
 0x655   : > { %v4015_v57 = vpop.f32.mrf.mxu0 }
 0x656   : > { %v1256_v63 = vadd.f32 %v4015_v57, %v1188_v62 }
 0x657   : > { %v1247_v6 = vpop.f32.mrf.mxu0 }
 0x658   : > { %v1248_v60 = vadd.f32 %v1247_v6, %v1178_v58  ;;  %v1260_v2 = vpack.c.bf16 %v1256_v63, %v1253_v1 }
 0x65a   : > { %v1259_v61 = vpack.c.bf16 %v1248_v60, %v1245_v43 }
 0x65c   : > { %3702 = vmatmul.mubr.msk.bf16.vlgmr.msra.gmra.mxu0 %vm6195_vm12, %v1259_v61 }
 0x65d   : > { %1350 = vmatprep.mubr.bf16.mxu0 %v6196_v17 }
 0x664   : > { %3703 = vmatmul.mubr.msk.bf16.gmra.mxu0 %vm6195_vm12, %v1260_v2  ;;  %vm3717_vm12 = vmpackc.low %vm4685_vm2, %vm4693_vm5 }
 0x665   : > { %1787 = vmatprep.mubr.bf16.mxu0 %v6196_v17 }
 0x71c   : > { %v1342_v3 = vpop.f32.mrf.mxu0 }
 0x71e   : > { %v1344_v4 = vpop.f32.mrf.mxu0 }
 0x720   : > { %v1346_v5 = vpop.f32.mrf.mxu0 }
 0x721   : > { %1363 = vrot.lane.b32.xlu1 %v1346_v5, %s4478_s29 }
 0x722   : > { %v1348_v7 = vpop.f32.mrf.mxu0 }
 0x723   : > { %1365 = vrot.lane.b32.xlu0 %v1348_v7, %s4478_s29 }
 0x724   : > { %v1352_v9 = vpop.f32.mrf.mxu0 }
 0x725   : > { %1376 = vrot.lane.b32.xlu1 %v1352_v9, %s4479_s26 }
 0x726   : > { %v1354_v10 = vpop.f32.mrf.mxu0 }
 0x727   : > { %1378 = vrot.lane.b32.xlu0 %v1354_v10, %s4479_s26  ;;  %s6259_s26 = smov 95  }
 0x728   : > { %v1356_v11 = vpop.f32.mrf.mxu0 }
 0x729   : > { %1389 = vrot.lane.b32.xlu1 %v1356_v11, %s4462_s0 }
 0x72a   : > { %v1358_v12 = vpop.f32.mrf.mxu0 }
 0x72b   : > { %1391 = vrot.lane.b32.xlu0 %v1358_v12, %s4462_s0 }
 0x793   : > { %v1364_v13 = vpop.permute.xlu1 %1363 }
 0x794   : > { %v1371_v16 = vsel %vm1367_vm6, 0.0, %v1364_v13 }
 0x795   : > { %v1366_v14 = vpop.permute.xlu0 %1365  ;;  %v1372_v23 = vadd.f32 %v1371_v16, %v1342_v3 }
 0x796   : > { %v1368_v18 = vsel %vm1367_vm6, %v1364_v13, %v1366_v14 }
 0x797   : > { %v1377_v15 = vpop.permute.xlu1 %1376  ;;  %v1373_v22 = vadd.f32 %v1368_v18, %v1344_v4 }
 0x798   : > { %v1384_v20 = vsel %vm1380_vm13, 0.0, %v1377_v15 }
 0x799   : > { %v1379_v19 = vpop.permute.xlu0 %1378  ;;  %v1385_v29 = vadd.f32 %v1384_v20, %v1372_v23 }
 0x79a   : > { %v1381_v21 = vsel %vm1380_vm13, %v1377_v15, %v1379_v19 }
 0x79b   : > { %v1390_v26 = vpop.permute.xlu1 %1389  ;;  %v1386_v30 = vadd.f32 %v1381_v21, %v1373_v22  ;;  %v1703_v22 = vld [vmem:[%s6172_s13 + $0x3c0] sm:$0xff] }
 0x79c   : > { %v1396_v28 = vsel %vm569_vm0, 0.0, %v1390_v26 }
 0x79d   : > { %v1392_v31 = vpop.permute.xlu0 %1391  ;;  %v1397_v32 = vadd.f32 %v1396_v28, %v1385_v29 }
 0x79e   : > { %v1393_v59 = vsel %vm569_vm0, %v1390_v26, %v1392_v31 }
 0x79f   : > { %v1398_v33 = vadd.f32 %v1393_v59, %v1386_v30 }
 0x7a1   : > { %v4131_v34 = vpack.i.bf16 %v1398_v33, %v1397_v32 }
 0x7a3   : > { %4132 = vrot.lane.b32.xlu1 %v4131_v34, %s4462_s0  ;;  %s6246_s0 = smov 94  }
 0x815   : > { %v4133_v37 = vpop.permute.xlu1 %4132 }
 0x816   : > { %v4134_v40 = vunpack.i.l.bf16 %v4133_v37  ;;  %v4135_v41 = vunpack.i.h.bf16 %v4133_v37 }
 0x818   : > { %v4843_v44 = vsel %vm569_vm0, 0.0, %v4134_v40  ;;  %v4850_v45 = vsel %vm569_vm0, %v4134_v40, %v4135_v41  ;;  %v1412_v25 = vsel %vm569_vm0, %v4135_v41, 0.0  ;;  %vm6225_vm0 = vmmov 1  }
 0x819   : > { %1497 = vrot.lane.b32.xlu1 %v4843_v44, %s6188_s23  ;;  %1453 = vrot.lane.b32.xlu0 %v4843_v44, %s6190_s22  ;;  %v4136_v46 = vpack.i.bf16 %v4850_v45, %v4843_v44  ;;  %v4146_v47 = vpack.i.bf16 %v1412_v25, %v4850_v45  ;;  %vm4905_vm13 = vmpackc.low %vm6225_vm0, %vm4685_vm2  ;;  %vm2736_vm2 = vcmask 261120  }
 0x81d   : > { %1487 = vrot.lane.b32.xlu1 %v4843_v44, %s4465_s19  ;;  %1441 = vrot.lane.b32.xlu0 %v4843_v44, %s6245_s30 }
 0x821   : > { %1469 = vrot.lane.b32.xlu1 %v1412_v25, %s6246_s0  ;;  %4137 = vrot.lane.b32.xlu0 %v4136_v46, %s6246_s0 }
 0x825   : > { %4147 = vrot.lane.b32.xlu1 %v4146_v47, %s6188_s23  ;;  %1417 = vrot.lane.b32.xlu0 %v4843_v44, %s6186_s20  ;;  %s4481_s23 = smov 32  }
 0x829   : > { %4157 = vrot.lane.b32.xlu1 %v4146_v47, %s4465_s19  ;;  %4142 = vrot.lane.b32.xlu0 %v4146_v47, %s6190_s22  ;;  %s4484_s19 = smov 64   ;;  %s3970_s22 = sshll.u32 %s6450_s24, 6 }
 0x82d   : > { %4167 = vrot.lane.b32.xlu1 %v4146_v47, %s6247_s25  ;;  %4152 = vrot.lane.b32.xlu0 %v4146_v47, %s6245_s30  ;;  %s6260_s30 = smov 126  }
 0x831   : > { %1429 = vrot.lane.b32.xlu1 %v4843_v44, %s6247_s25  ;;  %4162 = vrot.lane.b32.xlu0 %v4146_v47, %s6186_s20 }
 0x835   : > { %1477 = vrot.lane.b32.xlu1 %v4843_v44, %s6248_s27  ;;  %4172 = vrot.lane.b32.xlu0 %v4146_v47, %s6248_s27 }
 0x839   : > { %1715 = vperm.xlu1 %4119, %v1579_v48   ;;  %1519 = vperm.xlu0 %4130, %v1400_v49  }
 0x83d   : > { %1725 = vperm.xlu1 %4119, %v1581_v50   ;;  %1720 = vperm.xlu0 %4130, %v1580_v51  }
 0x841   : > { %1730 = vperm.xlu0 %4130, %v1582_v52  }
 0x88b   : > { %v1498_v53 = vpop.permute.xlu1 %1497  ;;  %v1454_v8 = vpop.permute.xlu0 %1453 }
 0x88f   : > { %v1488_v42 = vpop.permute.xlu1 %1487  ;;  %v1442_v54 = vpop.permute.xlu0 %1441 }
 0x893   : > { %v1470_v55 = vpop.permute.xlu1 %1469  ;;  %v4138_v56 = vpop.permute.xlu0 %4137 }
 0x894   : > { %v4140_v57 = vunpack.i.h.bf16 %v4138_v56  ;;  %v4139_v58 = vunpack.i.l.bf16 %v4138_v56 }
 0x896   : > { %v1472_v6 = vsel %vm6194_vm8, %v4140_v57, %v1470_v55  ;;  %v1471_v43 = vsel %vm6194_vm8, %v4139_v58, %v4140_v57  ;;  %v1631_v58 = vld [vmem:[%s6172_s13 + $0x180] sm:$0xff] }
 0x897   : > { %v1476_v60 = vsel %vm4693_vm5, %v1472_v6, 0.0  ;;  %v4148_v61 = vpop.permute.xlu1 %4147  ;;  %v1418_v62 = vpop.permute.xlu0 %1417  ;;  %v1475_v63 = vsel %vm4689_vm4, %v1471_v43, 0.0  ;;  %v1635_v6 = vld [vmem:[%s6172_s13 + $0x1a0] sm:$0xff] }
 0x898   : > { %v1516_v0 = vpack.c.bf16 %v1476_v60, %v1476_v60  ;;  %v1515_v1 = vpack.c.bf16 %v1475_v63, %v1475_v63  ;;  %v4150_v2 = vunpack.i.h.bf16 %v4148_v61  ;;  %v4149_v3 = vunpack.i.l.bf16 %v4148_v61  ;;  %v1623_v60 = vld [vmem:[%s6172_s13 + $0x140] sm:$0xff] }
 0x899   : > { %v3784_v43 = vcombine.high %v1631_v58, %v1635_v6  ;;  %v1627_v61 = vld [vmem:[%s6172_s13 + $0x160] sm:$0xff] }
 0x89a   : > { %3704 = vmatprep.subr.msk.bf16.mxu1 %vm6209_vm14, %v1516_v0  ;;  %v1527_v4 = vsel %vm6209_vm14, %v1515_v1, 0  ;;  %v1503_v13 = vsel %vm6192_vm15, %v1498_v53, %v4149_v3  ;;  %v1504_v14 = vsel %vm6192_vm15, %v4149_v3, %v4150_v2  ;;  %vm4912_vm15 = vmpackc.low %vm6225_vm0, %vm4681_vm1  ;;  %v3776_v63 = vcombine.high %v1623_v60, %v1627_v61  ;;  %v1615_v0 = vld [vmem:[%s6172_s13 + $0x100] sm:$0xff] }
 0x89b   : > { %v4158_v5 = vpop.permute.xlu1 %4157  ;;  %v4143_v7 = vpop.permute.xlu0 %4142  ;;  %1539 = vmatpush1.bf16.msra.mxu1 %v1527_v4  ;;  %v1619_v1 = vld [vmem:[%s6172_s13 + $0x120] sm:$0xff]  ;;  %v3775_v2 = vcombine.low %v1623_v60, %v1627_v61 }
 0x89c   : > { %v4145_v9 = vunpack.i.h.bf16 %v4143_v7  ;;  %v4144_v10 = vunpack.i.l.bf16 %v4143_v7  ;;  %v4160_v11 = vunpack.i.h.bf16 %v4158_v5  ;;  %v4159_v12 = vunpack.i.l.bf16 %v4158_v5  ;;  %v1607_v4 = vld [vmem:[%s6172_s13 + $0xc0] sm:$0xff] }
 0x89d   : > { %v3768_v3 = vcombine.high %v1615_v0, %v1619_v1  ;;  %v1611_v5 = vld [vmem:[%s6172_s13 + $0xe0] sm:$0xff]  ;;  %v3767_v7 = vcombine.low %v1615_v0, %v1619_v1 }
 0x89e   : > { %v1459_v15 = vsel %vm6193_vm7, %v1454_v8, %v4144_v10  ;;  %v1460_v16 = vsel %vm6193_vm7, %v4144_v10, %v4145_v9  ;;  %v1493_v29 = vsel %vm716_vm11, %v1488_v42, %v4159_v12  ;;  %v1494_v30 = vsel %vm716_vm11, %v4159_v12, %v4160_v11  ;;  %vm3711_vm7 = vmpackc.low %vm4693_vm5, %vm6225_vm0  ;;  %v1599_v10 = vld [vmem:[%s6172_s13 + $0x80] sm:$0xff] }
 0x89f   : > { %v3706_v19 = vpack.c.bf16 %v1504_v14, %v1460_v16  ;;  %v3709_v20 = vpack.c.bf16 %v1503_v13, %v1459_v15  ;;  %v4168_v21 = vpop.permute.xlu1 %4167  ;;  %v4153_v23 = vpop.permute.xlu0 %4152  ;;  %vm3714_vm11 = vmpackc.low %vm4689_vm4, %vm6225_vm0  ;;  %v3760_v9 = vcombine.high %v1607_v4, %v1611_v5  ;;  %v1603_v11 = vld [vmem:[%s6172_s13 + $0xa0] sm:$0xff]  ;;  %v3759_v12 = vcombine.low %v1607_v4, %v1611_v5  ;;  %v1624_v4 = vld [vmem:[%s6172_s13 + $0x148] sm:$0xff] }
 0x8a0   : > { %v4155_v26 = vunpack.i.h.bf16 %v4153_v23  ;;  %v4154_v28 = vunpack.i.l.bf16 %v4153_v23  ;;  %v4170_v31 = vunpack.i.h.bf16 %v4168_v21  ;;  %v4169_v59 = vunpack.i.l.bf16 %v4168_v21  ;;  %v1591_v14 = vld [vmem:[%s6172_s13 + $0x40] sm:$0xff]  ;;  %v1628_v5 = vld [vmem:[%s6172_s13 + $0x168] sm:$0xff] }
 0x8a1   : > { %3707 = vmatprep.subr.msk.bf16.mxu1 %vm4905_vm13, %v3706_v19  ;;  %v3752_v13 = vcombine.high %v1599_v10, %v1603_v11  ;;  %v1595_v15 = vld [vmem:[%s6172_s13 + $0x60] sm:$0xff]  ;;  %v3751_v16 = vcombine.low %v1599_v10, %v1603_v11  ;;  %v1616_v10 = vld [vmem:[%s6172_s13 + $0x108] sm:$0xff]  ;;  %vm6208_vm5 = vcmask 506880  }
 0x8a2   : > { %v1447_v32 = vsel %vm651_vm3, %v1442_v54, %v4154_v28  ;;  %v1448_v33 = vsel %vm651_vm3, %v4154_v28, %v4155_v26  ;;  %3710 = vmatpush1.bf16.msk.msra.mxu1 %vm4912_vm15, %v3709_v20  ;;  %v1436_v47 = vsel %vm638_vm9, %v4169_v59, %v4170_v31  ;;  %vm6253_vm3 = vcmask 1031168   ;;  %v1583_v19 = vld [vmem:[%s6172_s13] sm:$0xff]  ;;  %v1620_v11 = vld [vmem:[%s6172_s13 + $0x128] sm:$0xff] }
 0x8a3   : > { %v3712_v34 = vpack.c.bf16 %v1448_v33, %v1494_v30  ;;  %v3715_v37 = vpack.c.bf16 %v1447_v32, %v1493_v29  ;;  %v1430_v40 = vpop.permute.xlu1 %1429  ;;  %v4163_v41 = vpop.permute.xlu0 %4162  ;;  %vm6254_vm8 = vmmov %vm6253_vm3  ;;  %v3744_v18 = vcombine.high %v1591_v14, %v1595_v15  ;;  %v1587_v20 = vld [vmem:[%s6172_s13 + $0x20] sm:$0xff]  ;;  %v3743_v21 = vcombine.low %v1591_v14, %v1595_v15  ;;  %v1608_v15 = vld [vmem:[%s6172_s13 + $0xc8] sm:$0xff] }
 0x8a4   : > { %v4165_v46 = vunpack.i.h.bf16 %v4163_v41  ;;  %v4164_v25 = vunpack.i.l.bf16 %v4163_v41  ;;  %v1435_v48 = vsel %vm638_vm9, %v1430_v40, %v4169_v59  ;;  %vm6255_vm9 = vcmask 1039360   ;;  %v1707_v26 = vld [vmem:[%s6172_s13 + $0x3e0] sm:$0xff] }
 0x8a5   : > { %3713 = vmatprep.subr.msk.bf16.mxu1 %vm3711_vm7, %v3712_v34  ;;  %vm3720_vm7 = vmpackc.low %vm4681_vm1, %vm4689_vm4  ;;  %vm6199_vm1 = vcmask 588800   ;;  %v3736_v23 = vcombine.high %v1583_v19, %v1587_v20  ;;  %v3735_v28 = vcombine.low %v1583_v19, %v1587_v20  ;;  %v3856_v29 = vcombine.high %v1703_v22, %v1707_v26  ;;  %v1695_v30 = vld [vmem:[%s6172_s13 + $0x380] sm:$0xff]  ;;  %v1600_v20 = vld [vmem:[%s6172_s13 + $0x88] sm:$0xff] }
 0x8a6   : > { %v1423_v49 = vsel %vm6253_vm3, %v1418_v62, %v4164_v25  ;;  %v1424_v50 = vsel %vm6254_vm8, %v4164_v25, %v4165_v46  ;;  %3716 = vmatpush1.bf16.msk.msra.mxu1 %vm3714_vm11, %v3715_v37  ;;  %vm6256_vm8 = vmmov %vm6255_vm9  ;;  %v3783_v62 = vcombine.low %v1631_v58, %v1635_v6  ;;  %v1699_v31 = vld [vmem:[%s6172_s13 + $0x3a0] sm:$0xff]  ;;  %v3855_v59 = vcombine.low %v1703_v22, %v1707_v26  ;;  %v1592_v26 = vld [vmem:[%s6172_s13 + $0x48] sm:$0xff] }
 0x8a7   : > { %v3718_v51 = vpack.c.bf16 %v1436_v47, %v1424_v50  ;;  %v3721_v52 = vpack.c.bf16 %v1435_v48, %v1423_v49  ;;  %v4173_v53 = vpop.permute.xlu0 %4172  ;;  %v1478_v54 = vpop.permute.xlu1 %1477  ;;  %v3848_v32 = vcombine.high %v1695_v30, %v1699_v31  ;;  %v1687_v33 = vld [vmem:[%s6172_s13 + $0x340] sm:$0xff]  ;;  %v3847_v37 = vcombine.low %v1695_v30, %v1699_v31  ;;  %v1584_v31 = vld [vmem:[%s6172_s13 + $0x8] sm:$0xff] }
 0x8a8   : > { %v4175_v8 = vunpack.i.h.bf16 %v4173_v53  ;;  %v4174_v42 = vunpack.i.l.bf16 %v4173_v53  ;;  %v1691_v34 = vld [vmem:[%s6172_s13 + $0x360] sm:$0xff]  ;;  %v3770_v14 = vcombine.high %v1616_v10, %v1620_v11  ;;  %vm2785_vm4 = vcmask 269312  }
 0x8a9   : > { %3719 = vmatprep.subr.msk.bf16.mxu1 %vm3717_vm12, %v3718_v51  ;;  %v3840_v40 = vcombine.high %v1687_v33, %v1691_v34  ;;  %v1679_v41 = vld [vmem:[%s6172_s13 + $0x300] sm:$0xff]  ;;  %v3839_v25 = vcombine.low %v1687_v33, %v1691_v34  ;;  %v1704_v34 = vld [vmem:[%s6172_s13 + $0x3c8] sm:$0xff]  ;;  %vm6211_vm12 = vcmask 515072  }
 0x8aa   : > { %v1483_v55 = vsel %vm6255_vm9, %v1478_v54, %v4174_v42  ;;  %v1484_v56 = vsel %vm6256_vm8, %v4174_v42, %v4175_v8  ;;  %3722 = vmatpush1.bf16.msk.msra.mxu1 %vm3720_vm7, %v3721_v52  ;;  %v1683_v46 = vld [vmem:[%s6172_s13 + $0x320] sm:$0xff] }
 0x8ab   : > { %v3724_v36 = vpack.c.bf16 %v1484_v56, %v4850_v45  ;;  %v3727_v39 = vpack.c.bf16 %v1483_v55, %v4843_v44  ;;  %v1643_v44 = vld [vmem:[%s6172_s13 + $0x1e0] sm:$0xff]  ;;  %v3832_v47 = vcombine.high %v1679_v41, %v1683_v46  ;;  %v3831_v50 = vcombine.low %v1679_v41, %v1683_v46  ;;  %v1696_v46 = vld [vmem:[%s6172_s13 + $0x388] sm:$0xff] }
 0x8ac   : > { %v3791_v45 = vcombine.low %v1639_v38, %v1643_v44  ;;  %v3792_v57 = vcombine.high %v1639_v38, %v1643_v44  ;;  %v1671_v48 = vld [vmem:[%s6172_s13 + $0x2c0] sm:$0xff] }
 0x8ad   : > { %3725 = vmatprep.subr.msk.bf16.mxu1 %vm4905_vm13, %v3724_v36  ;;  %v1675_v49 = vld [vmem:[%s6172_s13 + $0x2e0] sm:$0xff]  ;;  %vm6270_vm13 = vcmask 523264  }
 0x8ae   : > { %3728 = vmatpush1.bf16.msk.msra.mxu1 %vm4912_vm15, %v3727_v39  ;;  %v3824_v51 = vcombine.high %v1671_v48, %v1675_v49  ;;  %v1663_v52 = vld [vmem:[%s6172_s13 + $0x280] sm:$0xff]  ;;  %v3823_v8 = vcombine.low %v1671_v48, %v1675_v49  ;;  %v1688_v49 = vld [vmem:[%s6172_s13 + $0x348] sm:$0xff] }
 0x8af   : > { %2452 = vmatprep.subr.bf16.mxu1 %v3792_v57  ;;  %v1667_v53 = vld [vmem:[%s6172_s13 + $0x2a0] sm:$0xff]  ;;  %v1644_v57 = vld [vmem:[%s6172_s13 + $0x1e8] sm:$0xff] }
 0x8b0   : > { %v3816_v42 = vcombine.high %v1663_v52, %v1667_v53  ;;  %v3815_v54 = vcombine.low %v1663_v52, %v1667_v53  ;;  %v4386_v1 = vld [vmem:[%s6170_s11] sm:$0xff]   ;;  %v1680_v53 = vld [vmem:[%s6172_s13 + $0x308] sm:$0xff] }
 0x8b1   : > { %3729 = vmatmul.mubr.msk.bf16.vlgmr.msra.gmra.mxu1 %vm6199_vm1, %v1399_v35  ;;  %vm6290_vm1 = vcmask 777216  }
 0x8b2   : > { %2453 = vmatpush1.bf16.msra.mxu1 %v3791_v45  ;;  %v1640_v45 = vld [vmem:[%s6172_s13 + $0x1c8] sm:$0xff] }
 0x8b3   : > { %2454 = vmatprep.subr.bf16.mxu1 %v3784_v43  ;;  %v3794_v61 = vcombine.high %v1640_v45, %v1644_v57 }
 0x8b4   : > { %v1520_v55 = vpop.permute.xlu0 %1519 }
 0x8b6   : > { %2455 = vmatpush1.bf16.msra.mxu1 %v3783_v62  ;;  %v1632_v62 = vld [vmem:[%s6172_s13 + $0x188] sm:$0xff] }
 0x8b7   : > { %2456 = vmatprep.subr.bf16.mxu1 %v3776_v63  ;;  %v1636_v63 = vld [vmem:[%s6172_s13 + $0x1a8] sm:$0xff] }
 0x8ba   : > { %2457 = vmatpush1.bf16.msra.mxu1 %v3775_v2  ;;  %v3793_v2 = vcombine.low %v1640_v45, %v1644_v57 }
 0x8bb   : > { %2458 = vmatprep.subr.bf16.mxu1 %v3768_v3  ;;  %v3786_v3 = vcombine.high %v1632_v62, %v1636_v63 }
 0x8be   : > { %2459 = vmatpush1.bf16.msra.mxu1 %v3767_v7  ;;  %v3785_v7 = vcombine.low %v1632_v62, %v1636_v63  ;;  %v1660_v62 = vld [vmem:[%s6172_s13 + $0x268] sm:$0xff] }
 0x8bf   : > { %2460 = vmatprep.subr.bf16.mxu1 %v3760_v9  ;;  %v3778_v9 = vcombine.high %v1624_v4, %v1628_v5 }
 0x8c2   : > { %2461 = vmatpush1.bf16.msra.mxu1 %v3759_v12  ;;  %v4387_v12 = vld [vmem:[%s6170_s11 + $0x8] sm:$0xff]  }
 0x8c3   : > { %2462 = vmatprep.subr.bf16.mxu1 %v3752_v13  ;;  %v3777_v13 = vcombine.low %v1624_v4, %v1628_v5  ;;  %v1652_v5 = vld [vmem:[%s6172_s13 + $0x228] sm:$0xff] }
 0x8c6   : > { %2463 = vmatpush1.bf16.msra.mxu1 %v3751_v16  ;;  %v1612_v16 = vld [vmem:[%s6172_s13 + $0xe8] sm:$0xff] }
 0x8c7   : > { %2464 = vmatprep.subr.bf16.mxu1 %v3744_v18  ;;  %v3769_v18 = vcombine.low %v1616_v10, %v1620_v11  ;;  %v3762_v19 = vcombine.high %v1608_v15, %v1612_v16  ;;  %v1641_v11 = vld [vmem:[%s6172_s13 + $0x1d0] sm:$0xff] }
 0x8ca   : > { %2465 = vmatpush1.bf16.msra.mxu1 %v3743_v21  ;;  %v1604_v21 = vld [vmem:[%s6172_s13 + $0xa8] sm:$0xff] }
 0x8cb   : > { %2466 = vmatprep.subr.bf16.mxu1 %v3736_v23  ;;  %v3761_v23 = vcombine.low %v1608_v15, %v1612_v16  ;;  %v3754_v22 = vcombine.high %v1600_v20, %v1604_v21  ;;  %v1646_v16 = vld [vmem:[%s6172_s13 + $0x1f8] sm:$0xff] }
 0x8ce   : > { %2467 = vmatpush1.bf16.msra.mxu1 %v3735_v28  ;;  %v1596_v28 = vld [vmem:[%s6172_s13 + $0x68] sm:$0xff] }
 0x8cf   : > { %2468 = vmatprep.subr.bf16.mxu1 %v3856_v29  ;;  %v3753_v29 = vcombine.low %v1600_v20, %v1604_v21  ;;  %v3746_v30 = vcombine.high %v1592_v26, %v1596_v28 }
 0x8d2   : > { %2469 = vmatpush2.bf16.msra.mxu1 %v3855_v59  ;;  %v1588_v59 = vld [vmem:[%s6172_s13 + $0x28] sm:$0xff] }
 0x8d3   : > { %2470 = vmatprep.subr.bf16.mxu1 %v3848_v32  ;;  %v3745_v32 = vcombine.low %v1592_v26, %v1596_v28  ;;  %v3738_v33 = vcombine.high %v1584_v31, %v1588_v59  ;;  %v1716_v26 = vpop.permute.xlu1 %1715 }
 0x8d6   : > { %2471 = vmatpush2.bf16.msra.mxu1 %v3847_v37  ;;  %v1708_v37 = vld [vmem:[%s6172_s13 + $0x3e8] sm:$0xff] }
 0x8d7   : > { %2472 = vmatprep.subr.bf16.mxu1 %v3840_v40  ;;  %v3737_v40 = vcombine.low %v1584_v31, %v1588_v59  ;;  %v3858_v41 = vcombine.high %v1704_v34, %v1708_v37 }
 0x8da   : > { %2473 = vmatpush2.bf16.msra.mxu1 %v3839_v25  ;;  %v1700_v25 = vld [vmem:[%s6172_s13 + $0x3a8] sm:$0xff] }
 0x8db   : > { %2474 = vmatprep.subr.bf16.mxu1 %v3832_v47  ;;  %v3857_v47 = vcombine.low %v1704_v34, %v1708_v37  ;;  %v3850_v48 = vcombine.high %v1696_v46, %v1700_v25  ;;  %v1638_v34 = vld [vmem:[%s6172_s13 + $0x1b8] sm:$0xff] }
 0x8de   : > { %2475 = vmatpush2.bf16.msra.mxu1 %v3831_v50  ;;  %v1692_v50 = vld [vmem:[%s6172_s13 + $0x368] sm:$0xff] }
 0x8df   : > { %2476 = vmatprep.subr.bf16.mxu1 %v3824_v51  ;;  %v3849_v51 = vcombine.low %v1696_v46, %v1700_v25  ;;  %v3842_v52 = vcombine.high %v1688_v49, %v1692_v50 }
 0x8e2   : > { %2477 = vmatpush2.bf16.msra.mxu1 %v3823_v8  ;;  %v1684_v8 = vld [vmem:[%s6172_s13 + $0x328] sm:$0xff] }
 0x8e3   : > { %2478 = vmatprep.subr.bf16.mxu1 %v3816_v42  ;;  %v3841_v42 = vcombine.low %v1688_v49, %v1692_v50  ;;  %v1625_v49 = vld [vmem:[%s6172_s13 + $0x150] sm:$0xff] }
 0x8e4   : > { %v1629_v50 = vld [vmem:[%s6172_s13 + $0x170] sm:$0xff] }
 0x8e6   : > { %2479 = vmatpush2.bf16.msra.mxu1 %v3815_v54  ;;  %v3834_v54 = vcombine.high %v1680_v53, %v1684_v8 }
 0x971   : > { %v1566_v56 = vpop.f32.mrf.mxu1 }
 0x972   : > { %v1567_v36 = vadd.f32 %v1566_v56, %v1520_v55  ;;  %v1676_v56 = vld [vmem:[%s6172_s13 + $0x2e8] sm:$0xff] }
 0x973   : > { %v1568_v39 = vpop.f32.mrf.mxu1 }
 0x974   : > { %v1573_v35 = vmax.f32 %v1567_v36, 0.0  ;;  %v1569_v38 = vadd.f32 %v1568_v39, %v1520_v55  ;;  %v1672_v55 = vld [vmem:[%s6172_s13 + $0x2c8] sm:$0xff]  ;;  %v3833_v36 = vcombine.low %v1680_v53, %v1684_v8 }
 0x975   : > { %v1570_v44 = vpop.f32.mrf.mxu1  ;;  %v3826_v39 = vcombine.high %v1672_v55, %v1676_v56 }
 0x976   : > { %v1711_v58 = vpack.c.bf16 %v1573_v35, %v1573_v35  ;;  %v1574_v6 = vmax.f32 %v1569_v38, 0.0  ;;  %v1664_v35 = vld [vmem:[%s6172_s13 + $0x288] sm:$0xff]  ;;  %v3825_v44 = vcombine.low %v1672_v55, %v1676_v56  ;;  %v1726_v55 = vpop.permute.xlu1 %1725 }
 0x977   : > { %v1571_v43 = vpop.f32.mrf.mxu1  ;;  %v1668_v38 = vld [vmem:[%s6172_s13 + $0x2a8] sm:$0xff] }
 0x978   : > { %v1712_v60 = vpack.c.bf16 %v1574_v6, %v1574_v6  ;;  %v1750_v0 = vsel %vm6209_vm14, %v1711_v58, 0  ;;  %v3818_v45 = vcombine.high %v1664_v35, %v1668_v38  ;;  %v3817_v57 = vcombine.low %v1664_v35, %v1668_v38  ;;  %v1655_v58 = vld [vmem:[%s6172_s13 + $0x240] sm:$0xff]  ;;  %v1656_v43 = vld [vmem:[%s6172_s13 + $0x248] sm:$0xff] }
 0x979   : > { %v1659_v6 = vld [vmem:[%s6172_s13 + $0x260] sm:$0xff]  ;;  %v3809_v63 = vcombine.low %v1656_v43, %v1660_v62 }
 0x97a   : > { %3732 = vmatprep.subr.msk.bf16.mxu0 %vm6209_vm14, %v1712_v60  ;;  %v3807_v60 = vcombine.low %v1655_v58, %v1659_v6 }
 0x97b   : > { %1770 = vmatpush1.bf16.msra.mxu0 %v1750_v0  ;;  %v3810_v0 = vcombine.high %v1656_v43, %v1660_v62  ;;  %v1622_v43 = vld [vmem:[%s6172_s13 + $0x138] sm:$0xff] }
 0x97c   : > { %2505 = vmatprep.subr.bf16.mxu0 %v3794_v61  ;;  %v3808_v61 = vcombine.high %v1655_v58, %v1659_v6  ;;  %v1621_v58 = vld [vmem:[%s6172_s13 + $0x130] sm:$0xff]  ;;  %v1618_v6 = vld [vmem:[%s6172_s13 + $0x118] sm:$0xff] }
 0x97e   : > { %3733 = vmatmul.mubr.msk.bf16.vlgmr.msra.gmra.mxu0 %vm1200_vm10, %v4386_v1  ;;  %2480 = vmatprep.subr.bf16.mxu1 %v3808_v61  ;;  %v1647_v1 = vld [vmem:[%s6172_s13 + $0x200] sm:$0xff]  ;;  %v3779_v61 = vcombine.low %v1625_v49, %v1629_v50 }
 0x97f   : > { %1797 = vmatprep.mubr.bf16.mxu0 %v6196_v17  ;;  %2506 = vmatpush1.bf16.msra.mxu0 %v3793_v2  ;;  %v1651_v2 = vld [vmem:[%s6172_s13 + $0x220] sm:$0xff] }
 0x980   : > { %2507 = vmatprep.subr.bf16.mxu0 %v3786_v3  ;;  %2481 = vmatpush2.bf16.msra.mxu1 %v3807_v60  ;;  %v1648_v3 = vld [vmem:[%s6172_s13 + $0x208] sm:$0xff]  ;;  %v3800_v4 = vcombine.high %v1647_v1, %v1651_v2 }
 0x981   : > { %v3802_v10 = vcombine.high %v1648_v3, %v1652_v5 }
 0x982   : > { %2482 = vmatprep.subr.bf16.mxu1 %v3800_v4  ;;  %v1610_v4 = vld [vmem:[%s6172_s13 + $0xd8] sm:$0xff] }
 0x983   : > { %2508 = vmatpush1.bf16.msra.mxu0 %v3785_v7  ;;  %v3799_v7 = vcombine.low %v1647_v1, %v1651_v2  ;;  %v3774_v2 = vcombine.high %v1618_v6, %v1622_v43 }
 0x984   : > { %2509 = vmatprep.subr.bf16.mxu0 %v3778_v9  ;;  %v3801_v9 = vcombine.low %v1648_v3, %v1652_v5  ;;  %v1613_v3 = vld [vmem:[%s6172_s13 + $0xf0] sm:$0xff]  ;;  %v1614_v5 = vld [vmem:[%s6172_s13 + $0xf8] sm:$0xff] }
 0x985   : > { %2483 = vmatpush2.bf16.msra.mxu1 %v3799_v7 }
 0x986   : > { %3734 = vmatmul.mubr.msk.bf16.gmra.mxu0 %vm1200_vm10, %v4387_v12  ;;  %v1645_v12 = vld [vmem:[%s6172_s13 + $0x1f0] sm:$0xff] }
 0x987   : > { %2510 = vmatpush1.bf16.msra.mxu0 %v3777_v13  ;;  %v1642_v13 = vld [vmem:[%s6172_s13 + $0x1d8] sm:$0xff]  ;;  %v3796_v15 = vcombine.high %v1641_v11, %v1645_v12 }
 0x988   : > { %2511 = vmatprep.subr.bf16.mxu0 %v3770_v14  ;;  %v3795_v14 = vcombine.low %v1641_v11, %v1645_v12  ;;  %v3766_v11 = vcombine.high %v1610_v4, %v1614_v5  ;;  %v1601_v12 = vld [vmem:[%s6172_s13 + $0x90] sm:$0xff] }
 0x989   : > { %2558 = vmatprep.subr.bf16.mxu1 %v3796_v15  ;;  %v1606_v15 = vld [vmem:[%s6172_s13 + $0xb8] sm:$0xff] }
 0x98b   : > { %2512 = vmatpush1.bf16.msra.mxu0 %v3769_v18  ;;  %v3797_v18 = vcombine.low %v1642_v13, %v1646_v16 }
 0x98c   : > { %2513 = vmatprep.subr.bf16.mxu0 %v3762_v19  ;;  %v3798_v19 = vcombine.high %v1642_v13, %v1646_v16  ;;  %v1605_v13 = vld [vmem:[%s6172_s13 + $0xb0] sm:$0xff] }
 0x98f   : > { %2514 = vmatpush1.bf16.msra.mxu0 %v3761_v23 }
 0x990   : > { %2515 = vmatprep.subr.bf16.mxu0 %v3754_v22  ;;  %v1721_v22 = vpop.permute.xlu0 %1720 }
 0x993   : > { %2516 = vmatpush1.bf16.msra.mxu0 %v3753_v29 }
 0x994   : > { %2517 = vmatprep.subr.bf16.mxu0 %v3746_v30  ;;  %v1633_v30 = vld [vmem:[%s6172_s13 + $0x190] sm:$0xff]  ;;  %v1731_v8 = vpop.permute.xlu0 %1730 }
 0x997   : > { %2518 = vmatpush1.bf16.msra.mxu0 %v3745_v32  ;;  %v1637_v32 = vld [vmem:[%s6172_s13 + $0x1b0] sm:$0xff] }
 0x998   : > { %2519 = vmatprep.subr.bf16.mxu0 %v3738_v33  ;;  %v1634_v33 = vld [vmem:[%s6172_s13 + $0x198] sm:$0xff] }
 0x99b   : > { %2520 = vmatpush1.bf16.msra.mxu0 %v3737_v40 }
 0x99c   : > { %2521 = vmatprep.subr.bf16.mxu0 %v3858_v41 }
 0x99f   : > { %2522 = vmatpush2.bf16.msra.mxu0 %v3857_v47  ;;  %v3788_v47 = vcombine.high %v1633_v30, %v1637_v32 }
 0x9a0   : > { %2523 = vmatprep.subr.bf16.mxu0 %v3850_v48  ;;  %v3790_v48 = vcombine.high %v1634_v33, %v1638_v34 }
 0x9a3   : > { %2524 = vmatpush2.bf16.msra.mxu0 %v3849_v51  ;;  %v1626_v51 = vld [vmem:[%s6172_s13 + $0x158] sm:$0xff] }
 0x9a4   : > { %2525 = vmatprep.subr.bf16.mxu0 %v3842_v52  ;;  %v1630_v52 = vld [vmem:[%s6172_s13 + $0x178] sm:$0xff] }
 0x9a5   : > { %v3782_v35 = vcombine.high %v1626_v51, %v1630_v52  ;;  %v3781_v62 = vcombine.low %v1626_v51, %v1630_v52 }
 0x9a7   : > { %2526 = vmatpush2.bf16.msra.mxu0 %v3841_v42  ;;  %v3787_v42 = vcombine.low %v1633_v30, %v1637_v32  ;;  %v1589_v32 = vld [vmem:[%s6172_s13 + $0x30] sm:$0xff] }
 0x9a8   : > { %2527 = vmatprep.subr.bf16.mxu0 %v3834_v54  ;;  %v3789_v54 = vcombine.low %v1634_v33, %v1638_v34  ;;  %v1586_v33 = vld [vmem:[%s6172_s13 + $0x18] sm:$0xff] }
 0x9a9   : > { %v1590_v34 = vld [vmem:[%s6172_s13 + $0x38] sm:$0xff] }
 0x9aa   : > { %v3741_v52 = vcombine.low %v1586_v33, %v1590_v34 }
 0x9ab   : > { %2528 = vmatpush2.bf16.msra.mxu0 %v3833_v36 }
 0x9ac   : > { %2529 = vmatprep.subr.bf16.mxu0 %v3826_v39  ;;  %v3780_v39 = vcombine.high %v1625_v49, %v1629_v50  ;;  %v1706_v49 = vld [vmem:[%s6172_s13 + $0x3d8] sm:$0xff] }
 0x9ad   : > { %v1710_v50 = vld [vmem:[%s6172_s13 + $0x3f8] sm:$0xff] }
 0x9af   : > { %2530 = vmatpush2.bf16.msra.mxu0 %v3825_v44 }
 0x9b0   : > { %2531 = vmatprep.subr.bf16.mxu0 %v3818_v45  ;;  %v1617_v45 = vld [vmem:[%s6172_s13 + $0x110] sm:$0xff] }
 0x9b1   : > { %v3772_v1 = vcombine.high %v1617_v45, %v1621_v58  ;;  %v3771_v7 = vcombine.low %v1617_v45, %v1621_v58  ;;  %v1693_v45 = vld [vmem:[%s6172_s13 + $0x370] sm:$0xff]  ;;  %v1694_v58 = vld [vmem:[%s6172_s13 + $0x378] sm:$0xff] }
 0x9b3   : > { %2532 = vmatpush2.bf16.msra.mxu0 %v3817_v57 }
 0x9b4   : > { %2533 = vmatprep.subr.bf16.mxu0 %v3810_v0  ;;  %v1609_v0 = vld [vmem:[%s6172_s13 + $0xd0] sm:$0xff] }
 0x9b5   : > { %v3763_v16 = vcombine.low %v1609_v0, %v1613_v3 }
 0x9b7   : > { %2534 = vmatpush2.bf16.msra.mxu0 %v3809_v63 }
 0x9b8   : > { %2535 = vmatprep.subr.bf16.mxu0 %v3802_v10  ;;  %v3764_v10 = vcombine.high %v1609_v0, %v1613_v3  ;;  %v1681_v0 = vld [vmem:[%s6172_s13 + $0x310] sm:$0xff]  ;;  %v1686_v3 = vld [vmem:[%s6172_s13 + $0x338] sm:$0xff] }
 0x9bb   : > { %2536 = vmatpush2.bf16.msra.mxu0 %v3801_v9  ;;  %v3773_v9 = vcombine.low %v1618_v6, %v1622_v43 }
 0x9bc   : > { %2611 = vmatprep.subr.bf16.mxu0 %v3798_v19  ;;  %v3756_v19 = vcombine.high %v1601_v12, %v1605_v13 }
 0xa3e   : > { %v1789_v20 = vpop.f32.mrf.mxu0 }
 0xa3f   : > { %v1790_v37 = vadd.f32 %v1789_v20, %v1716_v26 }
 0xa40   : > { %v1791_v21 = vpop.f32.mrf.mxu0 }
 0xa41   : > { %v1792_v31 = vadd.f32 %v1791_v21, %v1716_v26  ;;  %v1593_v21 = vld [vmem:[%s6172_s13 + $0x50] sm:$0xff]  ;;  %v1598_v26 = vld [vmem:[%s6172_s13 + $0x78] sm:$0xff] }
 0xa42   : > { %v1793_v23 = vpop.f32.mrf.mxu0 }
 0xa43   : > { %v1794_v28 = vadd.f32 %v1793_v23, %v1721_v22  ;;  %v1597_v23 = vld [vmem:[%s6172_s13 + $0x70] sm:$0xff] }
 0xa44   : > { %v1795_v29 = vpop.f32.mrf.mxu0  ;;  %v3748_v30 = vcombine.high %v1593_v21, %v1597_v23 }
 0xa45   : > { %v1796_v59 = vadd.f32 %v1795_v29, %v1721_v22  ;;  %v5181_v46 = vpack.c.bf16 %v1794_v28, %v1790_v37  ;;  %v1594_v22 = vld [vmem:[%s6172_s13 + $0x58] sm:$0xff]  ;;  %v3755_v28 = vcombine.low %v1601_v12, %v1605_v13  ;;  %v3747_v37 = vcombine.low %v1593_v21, %v1597_v23 }
 0xa46   : > { %v1799_v40 = vpop.f32.mrf.mxu0  ;;  %v1674_v12 = vld [vmem:[%s6172_s13 + $0x2d8] sm:$0xff] }
 0xa47   : > { %v1809_v41 = vpack.c.bf16 %v1796_v59, %v1792_v31  ;;  %v1800_v57 = vadd.f32 %v1799_v40, %v1726_v55  ;;  %v3750_v31 = vcombine.high %v1594_v22, %v1598_v26  ;;  %v1585_v59 = vld [vmem:[%s6172_s13 + $0x10] sm:$0xff]  ;;  %v3749_v40 = vcombine.low %v1594_v22, %v1598_v26  ;;  %v1678_v13 = vld [vmem:[%s6172_s13 + $0x2f8] sm:$0xff] }
 0xa48   : > { %v1801_v25 = vpop.f32.mrf.mxu0  ;;  %v3739_v51 = vcombine.low %v1585_v59, %v1589_v32  ;;  %v1666_v21 = vld [vmem:[%s6172_s13 + $0x298] sm:$0xff]  ;;  %v3829_v26 = vcombine.low %v1674_v12, %v1678_v13 }
 0xa49   : > { %2484 = vmatprep.mubr.bf16.mxu1 %v1809_v41  ;;  %2537 = vmatprep.mubr.bf16.mxu0 %v1809_v41  ;;  %v1802_v38 = vadd.f32 %v1801_v25, %v1726_v55  ;;  %v3742_v25 = vcombine.high %v1586_v33, %v1590_v34  ;;  %v1698_v55 = vld [vmem:[%s6172_s13 + $0x398] sm:$0xff] }
 0xa4a   : > { %v1803_v53 = vpop.f32.mrf.mxu0  ;;  %2485 = vmatmul.mubr.bf16.vlgmr.msra.gmra.mxu1 %v5181_v46  ;;  %2538 = vmatmul.mubr.bf16.vlgmr.msra.gmra.mxu0 %v5181_v46  ;;  %v1670_v23 = vld [vmem:[%s6172_s13 + $0x2b8] sm:$0xff] }
 0xa4b   : > { %2559 = vmatpush1.bf16.msra.mxu1 %v3795_v14  ;;  %2612 = vmatpush1.bf16.msra.mxu0 %v3797_v18  ;;  %v1804_v56 = vadd.f32 %v1803_v53, %v1731_v8  ;;  %v1602_v14 = vld [vmem:[%s6172_s13 + $0x98] sm:$0xff]  ;;  %v3765_v18 = vcombine.low %v1610_v4, %v1614_v5  ;;  %v3821_v34 = vcombine.low %v1666_v21, %v1670_v23 }
 0xa4c   : > { %v1805_v36 = vpop.f32.mrf.mxu0  ;;  %2560 = vmatprep.subr.bf16.mxu1 %v3788_v47  ;;  %2613 = vmatprep.subr.bf16.mxu0 %v3790_v48  ;;  %v3758_v20 = vcombine.high %v1602_v14, %v1606_v15  ;;  %v3757_v29 = vcombine.low %v1602_v14, %v1606_v15  ;;  %v1705_v47 = vld [vmem:[%s6172_s13 + $0x3d0] sm:$0xff] }
 0xa4d   : > { %v1806_v44 = vadd.f32 %v1805_v36, %v1731_v8  ;;  %v5211_v63 = vpack.c.bf16 %v1804_v56, %v1800_v57  ;;  %v1709_v48 = vld [vmem:[%s6172_s13 + $0x3f0] sm:$0xff]  ;;  %v3862_v8 = vcombine.high %v1706_v49, %v1710_v50  ;;  %v1702_v56 = vld [vmem:[%s6172_s13 + $0x3b8] sm:$0xff] }
 0xa4e   : > { %v3860_v53 = vcombine.high %v1705_v47, %v1709_v48  ;;  %v3859_v36 = vcombine.low %v1705_v47, %v1709_v48  ;;  %v1690_v57 = vld [vmem:[%s6172_s13 + $0x358] sm:$0xff]  ;;  %v3853_v43 = vcombine.low %v1698_v55, %v1702_v56 }
 0xa4f   : > { %v5209_v60 = vpack.c.bf16 %v1806_v44, %v1802_v38  ;;  %2561 = vmatpush1.bf16.msra.mxu1 %v3787_v42  ;;  %2614 = vmatpush1.bf16.msra.mxu0 %v3789_v54  ;;  %v1697_v42 = vld [vmem:[%s6172_s13 + $0x390] sm:$0xff]  ;;  %v3854_v38 = vcombine.high %v1698_v55, %v1702_v56  ;;  %v3845_v5 = vcombine.low %v1690_v57, %v1694_v58  ;;  %v1650_v47 = vld [vmem:[%s6172_s13 + $0x218] sm:$0xff] }
 0xa50   : > { %2562 = vmatprep.subr.bf16.mxu1 %v3780_v39  ;;  %2615 = vmatprep.subr.bf16.mxu0 %v3782_v35  ;;  %v1701_v54 = vld [vmem:[%s6172_s13 + $0x3b0] sm:$0xff]  ;;  %v3861_v39 = vcombine.low %v1706_v49, %v1710_v50  ;;  %v1654_v48 = vld [vmem:[%s6172_s13 + $0x238] sm:$0xff] }
 0xa51   : > { %2494 = vmatprep.mubr.bf16.mxu1 %v5209_v60  ;;  %2547 = vmatprep.mubr.bf16.mxu0 %v5209_v60  ;;  %v3852_v35 = vcombine.high %v1697_v42, %v1701_v54  ;;  %v1689_v44 = vld [vmem:[%s6172_s13 + $0x350] sm:$0xff]  ;;  %v3851_v6 = vcombine.low %v1697_v42, %v1701_v54 }
 0xa52   : > { %2495 = vmatmul.mubr.bf16.gmra.mxu1 %v5211_v63  ;;  %2548 = vmatmul.mubr.bf16.gmra.mxu0 %v5211_v63  ;;  %v3843_v4 = vcombine.low %v1689_v44, %v1693_v45 }
 0xa53   : > { %2563 = vmatpush1.bf16.msra.mxu1 %v3779_v61  ;;  %2616 = vmatpush1.bf16.msra.mxu0 %v3781_v62  ;;  %v3844_v61 = vcombine.high %v1689_v44, %v1693_v45  ;;  %v3846_v62 = vcombine.high %v1690_v57, %v1694_v58 }
 0xa54   : > { %2590 = vmatprep.mubr.bf16.mxu1 %v1809_v41  ;;  %2643 = vmatprep.mubr.bf16.mxu0 %v1809_v41  ;;  %v3740_v41 = vcombine.high %v1585_v59, %v1589_v32  ;;  %v1658_v59 = vld [vmem:[%s6172_s13 + $0x258] sm:$0xff] }
 0xa55   : > { %2564 = vmatprep.subr.bf16.mxu1 %v3772_v1  ;;  %2617 = vmatprep.subr.bf16.mxu0 %v3774_v2  ;;  %v1685_v1 = vld [vmem:[%s6172_s13 + $0x330] sm:$0xff]  ;;  %v1682_v2 = vld [vmem:[%s6172_s13 + $0x318] sm:$0xff] }
 0xa56   : > { %v3835_v14 = vcombine.low %v1681_v0, %v1685_v1  ;;  %v3837_v15 = vcombine.low %v1682_v2, %v1686_v3  ;;  %v1662_v32 = vld [vmem:[%s6172_s13 + $0x278] sm:$0xff] }
 0xa57   : > { %2565 = vmatpush1.bf16.msra.mxu1 %v3771_v7  ;;  %2618 = vmatpush1.bf16.msra.mxu0 %v3773_v9  ;;  %v3836_v7 = vcombine.high %v1681_v0, %v1685_v1  ;;  %v3838_v9 = vcombine.high %v1682_v2, %v1686_v3  ;;  %v3813_v50 = vcombine.low %v1658_v59, %v1662_v32 }
 0xa58   : > { %2566 = vmatprep.subr.bf16.mxu1 %v3764_v10  ;;  %2619 = vmatprep.subr.bf16.mxu0 %v3766_v11  ;;  %v1673_v10 = vld [vmem:[%s6172_s13 + $0x2d0] sm:$0xff] }
 0xa59   : > { %v1677_v11 = vld [vmem:[%s6172_s13 + $0x2f0] sm:$0xff] }
 0xa5a   : > { %v3827_v22 = vcombine.low %v1673_v10, %v1677_v11 }
 0xa5b   : > { %2567 = vmatpush1.bf16.msra.mxu1 %v3763_v16  ;;  %2620 = vmatpush1.bf16.msra.mxu0 %v3765_v18  ;;  %v3828_v16 = vcombine.high %v1673_v10, %v1677_v11  ;;  %v3830_v18 = vcombine.high %v1674_v12, %v1678_v13 }
 0xa5c   : > { %2568 = vmatprep.subr.bf16.mxu1 %v3756_v19  ;;  %2621 = vmatprep.subr.bf16.mxu0 %v3758_v20  ;;  %v1665_v19 = vld [vmem:[%s6172_s13 + $0x290] sm:$0xff] }
 0xa5d   : > { %v1669_v20 = vld [vmem:[%s6172_s13 + $0x2b0] sm:$0xff] }
 0xa5e   : > { %v3819_v33 = vcombine.low %v1665_v19, %v1669_v20 }
 0xa5f   : > { %2569 = vmatpush1.bf16.msra.mxu1 %v3755_v28  ;;  %2622 = vmatpush1.bf16.msra.mxu0 %v3757_v29  ;;  %v3820_v28 = vcombine.high %v1665_v19, %v1669_v20  ;;  %v3822_v29 = vcombine.high %v1666_v21, %v1670_v23 }
 0xa60   : > { %2570 = vmatprep.subr.bf16.mxu1 %v3748_v30  ;;  %2623 = vmatprep.subr.bf16.mxu0 %v3750_v31  ;;  %v1657_v30 = vld [vmem:[%s6172_s13 + $0x250] sm:$0xff] }
 0xa61   : > { %v1661_v31 = vld [vmem:[%s6172_s13 + $0x270] sm:$0xff] }
 0xa62   : > { %v3811_v49 = vcombine.low %v1657_v30, %v1661_v31 }
 0xa63   : > { %2571 = vmatpush1.bf16.msra.mxu1 %v3747_v37  ;;  %2624 = vmatpush1.bf16.msra.mxu0 %v3749_v40  ;;  %v3812_v37 = vcombine.high %v1657_v30, %v1661_v31  ;;  %v3814_v40 = vcombine.high %v1658_v59, %v1662_v32 }
 0xa64   : > { %2572 = vmatprep.subr.bf16.mxu1 %v3740_v41  ;;  %2625 = vmatprep.subr.bf16.mxu0 %v3742_v25  ;;  %v1649_v41 = vld [vmem:[%s6172_s13 + $0x210] sm:$0xff] }
 0xa65   : > { %v1653_v25 = vld [vmem:[%s6172_s13 + $0x230] sm:$0xff] }
 0xa67   : > { %2573 = vmatpush1.bf16.msra.mxu1 %v3739_v51  ;;  %2626 = vmatpush1.bf16.msra.mxu0 %v3741_v52  ;;  %v3804_v51 = vcombine.high %v1649_v41, %v1653_v25  ;;  %v3806_v52 = vcombine.high %v1650_v47, %v1654_v48 }
 0xa68   : > { %2574 = vmatprep.subr.bf16.mxu1 %v3860_v53  ;;  %2627 = vmatprep.subr.bf16.mxu0 %v3862_v8  ;;  %v3803_v53 = vcombine.low %v1649_v41, %v1653_v25  ;;  %v3805_v8 = vcombine.low %v1650_v47, %v1654_v48 }
 0xa6b   : > { %2575 = vmatpush2.bf16.msra.mxu1 %v3859_v36  ;;  %2628 = vmatpush2.bf16.msra.mxu0 %v3861_v39 }
 0xa6c   : > { %2576 = vmatprep.subr.bf16.mxu1 %v3852_v35  ;;  %2629 = vmatprep.subr.bf16.mxu0 %v3854_v38 }
 0xa6f   : > { %2577 = vmatpush2.bf16.msra.mxu1 %v3851_v6  ;;  %2630 = vmatpush2.bf16.msra.mxu0 %v3853_v43 }
 0xa70   : > { %2578 = vmatprep.subr.bf16.mxu1 %v3844_v61  ;;  %2631 = vmatprep.subr.bf16.mxu0 %v3846_v62 }
 0xa73   : > { %2579 = vmatpush2.bf16.msra.mxu1 %v3843_v4  ;;  %2632 = vmatpush2.bf16.msra.mxu0 %v3845_v5 }
 0xa74   : > { %2580 = vmatprep.subr.bf16.mxu1 %v3836_v7  ;;  %2633 = vmatprep.subr.bf16.mxu0 %v3838_v9 }
 0xa77   : > { %2581 = vmatpush2.bf16.msra.mxu1 %v3835_v14  ;;  %2634 = vmatpush2.bf16.msra.mxu0 %v3837_v15 }
 0xa78   : > { %2582 = vmatprep.subr.bf16.mxu1 %v3828_v16  ;;  %2635 = vmatprep.subr.bf16.mxu0 %v3830_v18 }
 0xa7b   : > { %2583 = vmatpush2.bf16.msra.mxu1 %v3827_v22  ;;  %2636 = vmatpush2.bf16.msra.mxu0 %v3829_v26 }
 0xa7c   : > { %2584 = vmatprep.subr.bf16.mxu1 %v3820_v28  ;;  %2637 = vmatprep.subr.bf16.mxu0 %v3822_v29 }
 0xa7f   : > { %2585 = vmatpush2.bf16.msra.mxu1 %v3819_v33  ;;  %2638 = vmatpush2.bf16.msra.mxu0 %v3821_v34 }
 0xa80   : > { %2586 = vmatprep.subr.bf16.mxu1 %v3812_v37  ;;  %2639 = vmatprep.subr.bf16.mxu0 %v3814_v40 }
 0xa83   : > { %2587 = vmatpush2.bf16.msra.mxu1 %v3811_v49  ;;  %2640 = vmatpush2.bf16.msra.mxu0 %v3813_v50 }
 0xa84   : > { %2588 = vmatprep.subr.bf16.mxu1 %v3804_v51  ;;  %2641 = vmatprep.subr.bf16.mxu0 %v3806_v52 }
 0xa87   : > { %2589 = vmatpush2.bf16.msra.mxu1 %v3803_v53  ;;  %2642 = vmatpush2.bf16.msra.mxu0 %v3805_v8 }
 0xa8a   : > { %2591 = vmatmul.mubr.bf16.vlgmr.msra.gmra.mxu1 %v5181_v46  ;;  %2644 = vmatmul.mubr.bf16.vlgmr.msra.gmra.mxu0 %v5181_v46 }
 0xa8b   : > { %2600 = vmatprep.mubr.bf16.mxu1 %v5209_v60  ;;  %2653 = vmatprep.mubr.bf16.mxu0 %v5209_v60 }
 0xa92   : > { %2601 = vmatmul.mubr.bf16.gmra.mxu1 %v5211_v63  ;;  %2654 = vmatmul.mubr.bf16.gmra.mxu0 %v5211_v63 }
 0xa93   : > { %3432 = vmatprep.mubr.bf16.mxu1 %v6196_v17  ;;  %3473 = vmatprep.mubr.bf16.mxu0 %v6196_v17 }
 0xb0a   : > { %v5369_v42 = vpop.f32.mrf.mxu1  ;;  %v5371_v54 = vpop.f32.mrf.mxu0 }
 0xb0c   : > { %v5373_v55 = vpop.f32.mrf.mxu1  ;;  %v5375_v56 = vpop.f32.mrf.mxu0 }
 0xb0e   : > { %v2490_v46 = vpop.f32.mrf.mxu1  ;;  %v2543_v36 = vpop.f32.mrf.mxu0 }
 0xb0f   : > { %2672 = vrot.lane.b32.xlu1 %v2490_v46, %s4478_s29 }
 0xb10   : > { %v2492_v60 = vpop.f32.mrf.mxu1  ;;  %v2545_v63 = vpop.f32.mrf.mxu0 }
 0xb11   : > { %2674 = vrot.lane.b32.xlu0 %v2492_v60, %s4478_s29 }
 0xb12   : > { %v2496_v39 = vpop.f32.mrf.mxu1  ;;  %v2549_v35 = vpop.f32.mrf.mxu0 }
 0xb13   : > { %2676 = vrot.lane.b32.xlu1 %v2543_v36, %s4478_s29 }
 0xb14   : > { %v2498_v38 = vpop.f32.mrf.mxu1  ;;  %v2551_v44 = vpop.f32.mrf.mxu0 }
 0xb15   : > { %2678 = vrot.lane.b32.xlu0 %v2545_v63, %s4478_s29 }
 0xb16   : > { %v2500_v45 = vpop.f32.mrf.mxu1  ;;  %v2553_v58 = vpop.f32.mrf.mxu0 }
 0xb17   : > { %2722 = vrot.lane.b32.xlu1 %v2498_v38, %s4481_s23 }
 0xb18   : > { %v2502_v57 = vpop.f32.mrf.mxu1  ;;  %v2555_v43 = vpop.f32.mrf.mxu0 }
 0xb19   : > { %2720 = vrot.lane.b32.xlu0 %v2496_v39, %s4481_s23 }
 0xb1b   : > { %2726 = vrot.lane.b32.xlu1 %v2551_v44, %s4481_s23 }
 0xb1d   : > { %2724 = vrot.lane.b32.xlu0 %v2549_v35, %s4481_s23 }
 0xb1f   : > { %2769 = vrot.lane.b32.xlu1 %v2500_v45, %s4482_s28 }
 0xb21   : > { %2771 = vrot.lane.b32.xlu0 %v2502_v57, %s4482_s28 }
 0xb23   : > { %2773 = vrot.lane.b32.xlu1 %v2553_v58, %s4482_s28 }
 0xb4a   : > { %v2592_v6 = vpop.f32.mrf.mxu1  ;;  %v5390_v62 = vpop.f32.mrf.mxu0 }
 0xb4c   : > { %v5388_v61 = vpop.f32.mrf.mxu1  ;;  %v5393_v2 = vpop.f32.mrf.mxu0 }
 0xb4e   : > { %v2596_v0 = vpop.f32.mrf.mxu1  ;;  %v2649_v5 = vpop.f32.mrf.mxu0 }
 0xb4f   : > { %2680 = vrot.lane.b32.xlu1 %v2596_v0, %s4478_s29 }
 0xb50   : > { %v2598_v1 = vpop.f32.mrf.mxu1  ;;  %v2651_v9 = vpop.f32.mrf.mxu0 }
 0xb52   : > { %v2602_v3 = vpop.f32.mrf.mxu1  ;;  %v2655_v10 = vpop.f32.mrf.mxu0 }
 0xb53   : > { %2728 = vrot.lane.b32.xlu0 %v2602_v3, %s4481_s23 }
 0xb54   : > { %v2604_v4 = vpop.f32.mrf.mxu1  ;;  %v2657_v11 = vpop.f32.mrf.mxu0 }
 0xb56   : > { %v2606_v7 = vpop.f32.mrf.mxu1  ;;  %v2659_v12 = vpop.f32.mrf.mxu0 }
 0xb57   : > { %2775 = vrot.lane.b32.xlu0 %v2555_v43, %s4482_s28  ;;  %2777 = vrot.lane.b32.xlu1 %v2606_v7, %s4482_s28 }
 0xb58   : > { %v2608_v13 = vpop.f32.mrf.mxu1  ;;  %v2661_v14 = vpop.f32.mrf.mxu0 }
 0xb5b   : > { %2682 = vrot.lane.b32.xlu0 %v2598_v1, %s4478_s29  ;;  %2684 = vrot.lane.b32.xlu1 %v2649_v5, %s4478_s29 }
 0xb5f   : > { %2686 = vrot.lane.b32.xlu0 %v2651_v9, %s4478_s29  ;;  %2730 = vrot.lane.b32.xlu1 %v2604_v4, %s4481_s23  ;;  %s6257_s29 = smov 96  }
 0xb63   : > { %2732 = vrot.lane.b32.xlu0 %v2655_v10, %s4481_s23  ;;  %2734 = vrot.lane.b32.xlu1 %v2657_v11, %s4481_s23 }
 0xb67   : > { %2781 = vrot.lane.b32.xlu1 %v2659_v12, %s4482_s28  ;;  %2779 = vrot.lane.b32.xlu0 %v2608_v13, %s4482_s28 }
 0xb6b   : > { %2783 = vrot.lane.b32.xlu0 %v2661_v14, %s4482_s28 }
 0xb81   : > { %v2673_v15 = vpop.permute.xlu1 %2672 }
 0xb82   : > { %v2703_v22 = vsel %vm1367_vm6, 0.0, %v2673_v15 }
 0xb83   : > { %v2675_v16 = vpop.permute.xlu0 %2674  ;;  %v2704_v31 = vadd.f32 %v2703_v22, %v5369_v42 }
 0xb84   : > { %v2688_v26 = vsel %vm1367_vm6, %v2673_v15, %v2675_v16 }
 0xb85   : > { %v2677_v18 = vpop.permute.xlu1 %2676  ;;  %v2705_v59 = vadd.f32 %v2688_v26, %v5373_v55 }
 0xb86   : > { %v2689_v52 = vsel %vm1367_vm6, %v2675_v16, %v2677_v18 }
 0xb87   : > { %v2679_v19 = vpop.permute.xlu0 %2678  ;;  %v2706_v60 = vadd.f32 %v2689_v52, %v5371_v54 }
 0xb88   : > { %v2690_v53 = vsel %vm1367_vm6, %v2677_v18, %v2679_v19 }
 0xb89   : > { %v2723_v20 = vpop.permute.xlu1 %2722  ;;  %v2707_v63 = vadd.f32 %v2690_v53, %v5375_v56 }
 0xb8b   : > { %v2721_v21 = vpop.permute.xlu0 %2720 }
 0xb8c   : > { %v2737_v29 = vsel %vm2736_vm2, %v2721_v21, %v2723_v20  ;;  %v2752_v30 = vsel %vm2736_vm2, 0.0, %v2721_v21 }
 0xb8d   : > { %v2727_v23 = vpop.permute.xlu1 %2726  ;;  %v2753_v34 = vadd.f32 %v2752_v30, %v2704_v31  ;;  %v2754_v37 = vadd.f32 %v2737_v29, %v2705_v59 }
 0xb8f   : > { %v2725_v28 = vpop.permute.xlu0 %2724 }
 0xb90   : > { %v2738_v55 = vsel %vm2736_vm2, %v2723_v20, %v2725_v28  ;;  %v2739_v46 = vsel %vm2736_vm2, %v2725_v28, %v2727_v23 }
 0xb91   : > { %v2770_v32 = vpop.permute.xlu1 %2769  ;;  %v2755_v38 = vadd.f32 %v2738_v55, %v2706_v60  ;;  %v2756_v44 = vadd.f32 %v2739_v46, %v2707_v63 }
 0xb92   : > { %v2801_v33 = vsel %vm2785_vm4, 0.0, %v2770_v32 }
 0xb93   : > { %v2772_v40 = vpop.permute.xlu0 %2771  ;;  %v2802_v25 = vadd.f32 %v2801_v33, %v2753_v34 }
 0xb94   : > { %v2786_v41 = vsel %vm2785_vm4, %v2770_v32, %v2772_v40 }
 0xb95   : > { %v2803_v47 = vadd.f32 %v2786_v41, %v2754_v37  ;;  %v2774_v49 = vpop.permute.xlu1 %2773 }
 0xb96   : > { %v2787_v35 = vsel %vm2785_vm4, %v2772_v40, %v2774_v49 }
 0xb97   : > { %v4176_v48 = vpack.i.bf16 %v2803_v47, %v2802_v25 }
 0xb99   : > { %4177 = vrot.lane.b32.xlu1 %v4176_v48, %s4482_s28 }
 0xbc1   : > { %v2681_v50 = vpop.permute.xlu1 %2680 }
 0xbc2   : > { %v2691_v51 = vsel %vm1367_vm6, %v2679_v19, %v2681_v50 }
 0xbc3   : > { %v2708_v8 = vadd.f32 %v2691_v51, %v2592_v6  ;;  %v2804_v6 = vadd.f32 %v2787_v35, %v2755_v38 }
 0xbc5   : > { %v2729_v42 = vpop.permute.xlu0 %2728 }
 0xbc6   : > { %v2740_v36 = vsel %vm2736_vm2, %v2727_v23, %v2729_v42 }
 0xbc7   : > { %v2757_v39 = vadd.f32 %v2740_v36, %v2708_v8 }
 0xbc9   : > { %v2776_v45 = vpop.permute.xlu0 %2775  ;;  %v2778_v57 = vpop.permute.xlu1 %2777 }
 0xbca   : > { %v2788_v58 = vsel %vm2785_vm4, %v2774_v49, %v2776_v45  ;;  %v2789_v11 = vsel %vm2785_vm4, %v2776_v45, %v2778_v57 }
 0xbcb   : > { %v2805_v43 = vadd.f32 %v2788_v58, %v2756_v44  ;;  %v2806_v21 = vadd.f32 %v2789_v11, %v2757_v39 }
 0xbcd   : > { %v2683_v0 = vpop.permute.xlu0 %2682  ;;  %v2685_v1 = vpop.permute.xlu1 %2684  ;;  %v4181_v3 = vpack.i.bf16 %v2805_v43, %v2804_v6 }
 0xbce   : > { %v2692_v56 = vsel %vm1367_vm6, %v2681_v50, %v2683_v0  ;;  %v2693_v12 = vsel %vm1367_vm6, %v2683_v0, %v2685_v1 }
 0xbcf   : > { %4182 = vrot.lane.b32.xlu0 %v4181_v3, %s4482_s28  ;;  %v2709_v10 = vadd.f32 %v2692_v56, %v5388_v61  ;;  %v2710_v23 = vadd.f32 %v2693_v12, %v5390_v62 }
 0xbd1   : > { %v2687_v4 = vpop.permute.xlu0 %2686  ;;  %v2731_v54 = vpop.permute.xlu1 %2730 }
 0xbd2   : > { %v2741_v9 = vsel %vm2736_vm2, %v2729_v42, %v2731_v54  ;;  %v2694_v13 = vsel %vm1367_vm6, %v2685_v1, %v2687_v4  ;;  %v2811_v1 = vld [vmem:[%s6174_s15] sm:$0xff] }
 0xbd3   : > { %v2758_v14 = vadd.f32 %v2741_v9, %v2709_v10  ;;  %v2711_v61 = vadd.f32 %v2694_v13, %v5393_v2  ;;  %v2871_v10 = vand.u32 31, %v4677_v27 }
 0xbd5   : > { %v2733_v5 = vpop.permute.xlu0 %2732  ;;  %v2735_v7 = vpop.permute.xlu1 %2734  ;;  %vm5546_vm10 = vcmp.le.s32.totalorder %v2871_v10, 30  ;;  %vm5562_vm6 = vcmp.ge.s32.totalorder %v2871_v10, 1  ;;  %v5637_v10 = vadd.s32 768, %v4672_v24 }
 0xbd6   : > { %v2742_v18 = vsel %vm2736_vm2, %v2731_v54, %v2733_v5  ;;  %v2743_v19 = vsel %vm2736_vm2, %v2733_v5, %v2735_v7  ;;  %v2864_v5 = vand.u32 31, %v4672_v24  ;;  %vm5579_vm11 = vmpackc.low %vm6225_vm0, %vm5562_vm6  ;;  %vm6286_vm2 = vcmask 769024  }
 0xbd7   : > { %v2759_v28 = vadd.f32 %v2742_v18, %v2710_v23  ;;  %v2760_v29 = vadd.f32 %v2743_v19, %v2711_v61 }
 0xbd8   : > { %vm5538_vm15 = vcmp.le.s32.totalorder %v2864_v5, 30  ;;  %vm5656_vm8 = vcmp.ge.s32.totalorder %v2864_v5, 1 }
 0xbd9   : > { %v2782_v15 = vpop.permute.xlu1 %2781  ;;  %v2780_v16 = vpop.permute.xlu0 %2779 }
 0xbda   : > { %v2790_v20 = vsel %vm2785_vm4, %v2778_v57, %v2780_v16  ;;  %v2791_v26 = vsel %vm2785_vm4, %v2780_v16, %v2782_v15 }
 0xbdb   : > { %v2807_v22 = vadd.f32 %v2790_v20, %v2758_v14  ;;  %v2808_v32 = vadd.f32 %v2791_v26, %v2759_v28  ;;  %v6352_v14 = vand.u32 31, %v5637_v10  ;;  %v6402_v10 = vmov 0 }
 0xbdd   : > { %v2784_v30 = vpop.permute.xlu0 %2783  ;;  %v4186_v31 = vpack.i.bf16 %v2807_v22, %v2806_v21 }
 0xbde   : > { %v2792_v59 = vsel %vm2785_vm4, %v2782_v15, %v2784_v30 }
 0xbdf   : > { %v2809_v33 = vadd.f32 %v2792_v59, %v2760_v29  ;;  %4187 = vrot.lane.b32.xlu1 %v4186_v31, %s4482_s28  ;;  %v6271_v59 = vmov 0 }
 0xbe0   : > { %v6272_v59 = vsel %vm5579_vm11, 4294967295, %v6271_v59 }
 0xbe1   : > { %v4191_v34 = vpack.i.bf16 %v2809_v33, %v2808_v32 }
 0xbe3   : > { %4192 = vrot.lane.b32.xlu0 %v4191_v34, %s4482_s28 }
 0xc0b   : > { %v4178_v37 = vpop.permute.xlu1 %4177 }
 0xc0c   : > { %v4180_v62 = vunpack.i.h.bf16 %v4178_v37  ;;  %v4179_v40 = vunpack.i.l.bf16 %v4178_v37 }
 0xc0e   : > { %v5443_v2 = vsel %vm2785_vm4, %v4179_v40, %v4180_v62  ;;  %v5446_v41 = vsel %vm2785_vm4, 0.0, %v4179_v40 }
 0xc0f   : > { %3056 = vrot.lane.b32.xlu1 %v5446_v41, %s6257_s29  ;;  %3225 = vrot.lane.b32.xlu0 %v5446_v41, %s6248_s27  ;;  %v4196_v25 = vpack.i.bf16 %v5443_v2, %v5446_v41 }
 0xc13   : > { %4197 = vrot.lane.b32.xlu1 %v4196_v25, %s4483_s17 }
 0xc41   : > { %v4183_v47 = vpop.permute.xlu0 %4182 }
 0xc42   : > { %v4185_v48 = vunpack.i.h.bf16 %v4183_v47  ;;  %v4184_v49 = vunpack.i.l.bf16 %v4183_v47 }
 0xc44   : > { %v5456_v50 = vsel %vm2785_vm4, %v4180_v62, %v4184_v49  ;;  %v5459_v51 = vsel %vm2785_vm4, %v4184_v49, %v4185_v48 }
 0xc45   : > { %v4201_v52 = vpack.i.bf16 %v5459_v51, %v5456_v50  ;;  %v4206_v53 = vpack.i.bf16 %v5456_v50, %v5443_v2 }
 0xc47   : > { %4202 = vrot.lane.b32.xlu0 %v4201_v52, %s4483_s17 }
 0xc4b   : > { %4207 = vrot.lane.b32.xlu0 %v4206_v53, %s4484_s19 }
 0xc4f   : > { %4212 = vrot.lane.b32.xlu0 %v4206_v53, %s4485_s18 }
 0xc51   : > { %v4188_v8 = vpop.permute.xlu1 %4187 }
 0xc52   : > { %v4189_v42 = vunpack.i.l.bf16 %v4188_v8  ;;  %v4190_v36 = vunpack.i.h.bf16 %v4188_v8 }
 0xc53   : > { %4217 = vrot.lane.b32.xlu0 %v4206_v53, %s6246_s0 }
 0xc54   : > { %v5470_v55 = vsel %vm2785_vm4, %v4185_v48, %v4189_v42  ;;  %v5481_v60 = vsel %vm2785_vm4, %v4189_v42, %v4190_v36  ;;  %v2854_v48 = vadd.s32 256, %v4672_v24 }
 0xc55   : > { %6258 = vst [vmem:[#allocation8_spill] sm:$0xff] %v5470_v55  ;;  %v4241_v46 = vpack.i.bf16 %v5470_v55, %v5459_v51  ;;  %6261 = vst [vmem:[#allocation9_spill] sm:$0xff] %v5481_v60  ;;  %v4281_v63 = vpack.i.bf16 %v5481_v60, %v5446_v41  ;;  %v4193_v39 = vpop.permute.xlu0 %4192  ;;  %v4276_v38 = vpack.i.bf16 %v5481_v60, %v5470_v55 }
 0xc56   : > { %v4195_v35 = vunpack.i.h.bf16 %v4193_v39  ;;  %v4194_v45 = vunpack.i.l.bf16 %v4193_v39  ;;  %v2878_v8 = vand.u32 31, %v2854_v48 }
 0xc57   : > { %4242 = vrot.lane.b32.xlu1 %v4241_v46, %s4484_s19  ;;  %4222 = vrot.lane.b32.xlu0 %v4206_v53, %s6259_s26 }
 0xc58   : > { %v2853_v44 = vsel %vm2785_vm4, %v4195_v35, 0.0  ;;  %v5501_v57 = vsel %vm2785_vm4, %v4190_v36, %v4194_v45  ;;  %v5504_v58 = vsel %vm2785_vm4, %v4194_v45, %v4195_v35  ;;  %vm5611_vm3 = vcmp.le.s32.totalorder %v2878_v8, 30 }
 0xc59   : > { %6262 = vst [vmem:[#allocation10_spill] sm:$0xff] %v5501_v57  ;;  %6263 = vst [vmem:[#allocation11_spill] sm:$0xff] %v5504_v58  ;;  %v4306_v6 = vpack.i.bf16 %v5504_v58, %v5501_v57  ;;  %v4341_v43 = vpack.i.bf16 %v2853_v44, %v5504_v58  ;;  %v4336_v0 = vpack.i.bf16 %v5501_v57, %v5481_v60  ;;  %vm5672_vm4 = vcmp.ge.s32.totalorder %v2878_v8, 1 }
 0xc5a   : > { %v6319_v58 = vmov 0 }
 0xc5b   : > { %4247 = vrot.lane.b32.xlu1 %v4241_v46, %s4485_s18  ;;  %4227 = vrot.lane.b32.xlu0 %v4206_v53, %s6260_s30 }
 0xc5f   : > { %4252 = vrot.lane.b32.xlu1 %v4241_v46, %s6246_s0  ;;  %4232 = vrot.lane.b32.xlu0 %v4206_v53, %s6257_s29 }
 0xc63   : > { %4257 = vrot.lane.b32.xlu1 %v4241_v46, %s6259_s26  ;;  %4237 = vrot.lane.b32.xlu0 %v4206_v53, %s6248_s27 }
 0xc67   : > { %4262 = vrot.lane.b32.xlu1 %v4241_v46, %s6260_s30  ;;  %4282 = vrot.lane.b32.xlu0 %v4281_v63, %s4484_s19 }
 0xc6b   : > { %4267 = vrot.lane.b32.xlu1 %v4241_v46, %s6257_s29  ;;  %4292 = vrot.lane.b32.xlu0 %v4281_v63, %s6246_s0 }
 0xc6f   : > { %4272 = vrot.lane.b32.xlu1 %v4241_v46, %s6248_s27  ;;  %4302 = vrot.lane.b32.xlu0 %v4281_v63, %s6260_s30 }
 0xc73   : > { %4277 = vrot.lane.b32.xlu1 %v4276_v38, %s4483_s17  ;;  %3198 = vrot.lane.b32.xlu0 %v2853_v44, %s4483_s17 }
 0xc77   : > { %4287 = vrot.lane.b32.xlu1 %v4281_v63, %s4485_s18  ;;  %3156 = vrot.lane.b32.xlu0 %v2853_v44, %s4484_s19 }
 0xc7b   : > { %4297 = vrot.lane.b32.xlu1 %v4281_v63, %s6259_s26  ;;  %3309 = vrot.lane.b32.xlu0 %v2853_v44, %s4485_s18  ;;  %v2855_v63 = vadd.s32 384, %v4672_v24 }
 0xc7d   : > { %v2885_v45 = vand.u32 31, %v2855_v63 }
 0xc7f   : > { %4307 = vrot.lane.b32.xlu1 %v4306_v6, %s4483_s17  ;;  %3114 = vrot.lane.b32.xlu0 %v2853_v44, %s6246_s0  ;;  %vm5644_vm7 = vcmp.le.s32.totalorder %v2885_v45, 30  ;;  %vm5648_vm9 = vcmp.ge.s32.totalorder %v2885_v45, 1 }
 0xc81   : > { %v5529_v3 = vpop.permute.xlu1 %3056  ;;  %v5532_v7 = vpop.permute.xlu0 %3225 }
 0xc83   : > { %4312 = vrot.lane.b32.xlu1 %v4306_v6, %s4484_s19  ;;  %3275 = vrot.lane.b32.xlu0 %v2853_v44, %s6259_s26 }
 0xc85   : > { %v4198_v4 = vpop.permute.xlu1 %4197 }
 0xc86   : > { %v4200_v54 = vunpack.i.h.bf16 %v4198_v4  ;;  %v4199_v56 = vunpack.i.l.bf16 %v4198_v4 }
 0xc87   : > { %4317 = vrot.lane.b32.xlu1 %v4306_v6, %s4485_s18  ;;  %3030 = vrot.lane.b32.xlu0 %v2853_v44, %s6260_s30 }
 0xc88   : > { %v3201_v9 = vsel %vm6208_vm5, %v4199_v56, %v4200_v54 }
 0xc89   : > { %v3217_v13 = vsel %vm5538_vm15, %v3201_v9, 0.0 }
 0xc8a   : > { %v3360_v27 = vpack.c.bf16 %v3217_v13, %v3217_v13 }
 0xc8b   : > { %4322 = vrot.lane.b32.xlu1 %v4306_v6, %s6246_s0  ;;  %4342 = vrot.lane.b32.xlu0 %v4341_v43, %s6257_s29 }
 0xc8c   : > { %v3377_v61 = vsel %vm6209_vm14, %v3360_v27, 0 }
 0xc8f   : > { %4327 = vrot.lane.b32.xlu1 %v4306_v6, %s6259_s26  ;;  %4352 = vrot.lane.b32.xlu0 %v4341_v43, %s6248_s27  ;;  %v5625_v43 = vadd.s32 640, %v4672_v24 }
 0xc93   : > { %4332 = vrot.lane.b32.xlu1 %v4306_v6, %s6260_s30  ;;  %v5622_v6 = vadd.s32 512, %v4672_v24 }
 0xc97   : > { %4337 = vrot.lane.b32.xlu1 %v4336_v0, %s6257_s29  ;;  %s6146_s29 = scalar_lea.vmem %s6175_s16, %s3970_s22 }
 0xc9b   : > { %4347 = vrot.lane.b32.xlu1 %v4336_v0, %s6248_s27  ;;  %v5628_v0 = vadd.s32 896, %v4672_v24 }
 0xc9f   : > { %3370 = vperm.xlu1 %4119, %v2811_v1  }
 0xcb9   : > { %v5542_v12 = vpop.permute.xlu0 %4202 }
 0xcba   : > { %v4204_v15 = vunpack.i.l.bf16 %v5542_v12  ;;  %v4205_v53 = vunpack.i.h.bf16 %v5542_v12 }
 0xcbc   : > { %v3202_v16 = vsel %vm6208_vm5, %v4200_v54, %v4204_v15  ;;  %v3203_v36 = vsel %vm6208_vm5, %v4204_v15, %v4205_v53 }
 0xcbd   : > { %v3218_v18 = vsel %vm5546_vm10, %v3202_v16, 0.0  ;;  %v5554_v19 = vpop.permute.xlu0 %4207  ;;  %v3219_v44 = vsel %vm5611_vm3, %v3203_v36, 0.0 }
 0xcbe   : > { %v3361_v20 = vpack.c.bf16 %v3218_v18, %v3218_v18  ;;  %v4210_v21 = vunpack.i.h.bf16 %v5554_v19  ;;  %v6204_v23 = vunpack.i.l.bf16 %v5554_v19  ;;  %v3362_v9 = vpack.c.bf16 %v3219_v44, %v3219_v44 }
 0xcc0   : > { %3863 = vmatprep.subr.msk.bf16.mxu1 %vm6209_vm14, %v3361_v20  ;;  %v3159_v30 = vsel %vm6270_vm13, %v6204_v23, %v4210_v21  ;;  %v3383_v45 = vsel %vm6209_vm14, %v3362_v9, 0  ;;  %vm6301_vm14 = vcmask 523264  }
 0xcc1   : > { %v5560_v22 = vpop.permute.xlu0 %4212  ;;  %3407 = vmatpush1.bf16.msra.mxu1 %v3377_v61 }
 0xcc2   : > { %v4215_v28 = vunpack.i.h.bf16 %v5560_v22  ;;  %v6203_v29 = vunpack.i.l.bf16 %v5560_v22 }
 0xcc4   : > { %v3313_v31 = vsel %vm6211_vm12, %v6203_v29, %v4215_v28 }
 0xcc5   : > { %v3865_v32 = vpack.c.bf16 %v3313_v31, %v3159_v30  ;;  %v5583_v33 = vpop.permute.xlu0 %4217 }
 0xcc6   : > { %v4220_v1 = vunpack.i.h.bf16 %v5583_v33  ;;  %v6198_v4 = vunpack.i.l.bf16 %v5583_v33 }
 0xcc7   : > { %3866 = vmatprep.subr.msk.bf16.mxu1 %vm5579_vm11, %v3865_v32 }
 0xcc8   : > { %v5665_v36 = vsel %vm6286_vm2, %v6198_v4, %v4220_v1  ;;  %vm6289_vm2 = vmmov %vm6270_vm13 }
 0xcc9   : > { %v5587_v34 = vpop.permute.xlu1 %4242  ;;  %v5589_v37 = vpop.permute.xlu0 %4222 }
 0xcca   : > { %6273 = vst [vmem:[#allocation12_spill] sm:$0xff] %v5587_v34  ;;  %v6200_v12 = vunpack.i.h.bf16 %v5587_v34  ;;  %v4244_v13 = vunpack.i.l.bf16 %v5587_v34  ;;  %v6202_v15 = vunpack.i.h.bf16 %v5589_v37  ;;  %v6201_v16 = vunpack.i.l.bf16 %v5589_v37 }
 0xccc   : > { %v5680_v17 = vsel %vm6270_vm13, %v4210_v21, %v4244_v13  ;;  %v3161_v4 = vsel %vm6289_vm2, %v4244_v13, %v6200_v12  ;;  %v3278_v8 = vsel %vm6290_vm1, %v6201_v16, %v6202_v15  ;;  %vm6294_vm1 = vcmask 1031168   ;;  %vm5732_vm2 = vmpackc.low %vm6225_vm0, %vm5648_vm9 }
 0xccd   : > { %v5591_v62 = vpop.permute.xlu1 %4247  ;;  %v5593_v40 = vpop.permute.xlu0 %4227  ;;  %vm6295_vm13 = vcmask 769024  }
 0xcce   : > { %v4249_v27 = vunpack.i.l.bf16 %v5591_v62  ;;  %v6205_v30 = vunpack.i.h.bf16 %v5591_v62  ;;  %v6293_v15 = vunpack.i.l.bf16 %v5593_v40 }
 0xcd0   : > { %v5692_v48 = vsel %vm6211_vm12, %v4215_v28, %v4249_v27  ;;  %v3315_v13 = vsel %vm6211_vm12, %v4249_v27, %v6205_v30  ;;  %v3871_v28 = vpack.c.bf16 %v5665_v36, %v3278_v8  ;;  %v6292_v8 = vunpack.i.h.bf16 %v5593_v40 }
 0xcd1   : > { %v5595_v25 = vpop.permute.xlu1 %4252  ;;  %v5597_v47 = vpop.permute.xlu0 %4232  ;;  %v3894_v36 = vpack.c.bf16 %v5692_v48, %v5680_v17  ;;  %v6296_v30 = vmov 0 }
 0xcd2   : > { %6274 = vst [vmem:[#allocation13_spill] sm:$0xff] %v5595_v25  ;;  %v4254_v61 = vunpack.i.l.bf16 %v5595_v25  ;;  %v4234_v12 = vunpack.i.l.bf16 %v5597_v47  ;;  %v6297_v30 = vsel %vm5732_vm2, 4294967295, %v6296_v30  ;;  %v6316_v60 = vunpack.i.h.bf16 %v5597_v47 }
 0xcd4   : > { %v5727_v57 = vsel %vm6295_vm13, %v4220_v1, %v4254_v61  ;;  %v6302_v1 = vunpack.i.l.bf16 %v5560_v22  ;;  %v6310_v22 = vmov 0 }
 0xcd5   : > { %v5600_v49 = vpop.permute.xlu1 %4257  ;;  %v5602_v52 = vpop.permute.xlu0 %4237 }
 0xcd6   : > { %6275 = vst [vmem:[#allocation14_spill] sm:$0xff] %v5600_v49  ;;  %v4259_v29 = vunpack.i.l.bf16 %v5600_v49 }
 0xcd9   : > { %v5605_v42 = vpop.permute.xlu1 %4262  ;;  %v5607_v46 = vpop.permute.xlu0 %4282 }
 0xcda   : > { %v4284_v32 = vunpack.i.l.bf16 %v5607_v46  ;;  %v4285_v11 = vunpack.i.h.bf16 %v5607_v46 }
 0xcdd   : > { %v5615_v35 = vpop.permute.xlu1 %4267  ;;  %v5617_v38 = vpop.permute.xlu0 %4292 }
 0xcde   : > { %6278 = vst [vmem:[#allocation15_spill] sm:$0xff] %v5617_v38 }
 0xce1   : > { %v5632_v54 = vpop.permute.xlu1 %4272  ;;  %v5634_v56 = vpop.permute.xlu0 %4302 }
 0xce2   : > { %6279 = vst [vmem:[#allocation16_spill] sm:$0xff] %v5634_v56 }
 0xce5   : > { %v5667_v63 = vpop.permute.xlu1 %4277  ;;  %v5669_v44 = vpop.permute.xlu0 %3198 }
 0xce6   : > { %v6206_v9 = vunpack.i.l.bf16 %v5667_v63 }
 0xce8   : > { %v3204_v16 = vsel %vm6208_vm5, %v4205_v53, %v6206_v9  ;;  %v3891_v9 = vpack.c.bf16 %v3315_v13, %v3161_v4  ;;  %vm6299_vm5 = vmmov %vm6295_vm13  ;;  %v6300_v4 = vunpack.i.l.bf16 %v5554_v19  ;;  %v6307_v19 = vmov 0 }
 0xce9   : > { %v3220_v23 = vsel %vm5644_vm7, %v3204_v16, 0.0  ;;  %v5710_v21 = vpop.permute.xlu1 %4287  ;;  %v5712_v27 = vpop.permute.xlu0 %3156  ;;  %v5724_v16 = vsel %vm6294_vm1, %v6293_v15, %v6292_v8  ;;  %v4294_v15 = vunpack.i.l.bf16 %v5617_v38  ;;  %vm6303_vm1 = vcmask 1043456   ;;  %vm5750_vm13 = vmpackc.low %vm6225_vm0, %vm5656_vm8 }
 0xcea   : > { %6291 = vst [vmem:[#allocation17_spill] sm:$0xff] %v5712_v27  ;;  %v4289_v5 = vunpack.i.l.bf16 %v5710_v21  ;;  %v3363_v53 = vpack.c.bf16 %v3220_v23, %v3220_v23  ;;  %v6298_v23 = vunpack.i.h.bf16 %v5595_v25  ;;  %v3158_v48 = vsel %vm6301_vm14, %v4284_v32, %v6300_v4 }
 0xceb   : > { %v6304_v8 = vmov 0  ;;  %v6309_v32 = vand.u32 31, %v5622_v6  ;;  %v4269_v4 = vunpack.i.l.bf16 %v5615_v35  ;;  %v4239_v25 = vunpack.i.l.bf16 %v5602_v52 }
 0xcec   : > { %v3119_v17 = vsel %vm6299_vm5, %v4254_v61, %v6298_v23  ;;  %v3312_v13 = vsel %vm6211_vm12, %v4289_v5, %v6302_v1  ;;  %3889 = vmatprep.subr.msk.bf16.mxu0 %vm6303_vm1, %v3363_v53  ;;  %v6305_v8 = vsel %vm5750_vm13, 4294967295, %v6304_v8  ;;  %v6306_v61 = vand.u32 31, %v5625_v43  ;;  %vm5778_vm12 = vmpackc.low %vm5546_vm10, %vm6225_vm0 }
 0xced   : > { %vm5762_vm14 = vcmp.le.s32.totalorder %v6309_v32, 30  ;;  %v6312_v5 = vunpack.i.h.bf16 %v5600_v49  ;;  %vm6313_vm1 = vcmask 777216   ;;  %v3868_v1 = vpack.c.bf16 %v3312_v13, %v3158_v48  ;;  %v5771_v55 = vpop.permute.xlu1 %4297  ;;  %3448 = vmatpush1.bf16.msra.mxu0 %v3383_v45 }
 0xcee   : > { %vm5756_vm5 = vcmp.le.s32.totalorder %v6306_v61, 30  ;;  %v6311_v22 = vsel %vm5762_vm14, 4294967295, %v6310_v22  ;;  %v5773_v61 = vpop.permute.xlu0 %3309  ;;  %v4304_v48 = vunpack.i.l.bf16 %v5634_v56  ;;  %v4299_v13 = vunpack.i.l.bf16 %v5771_v55  ;;  %3892 = vmatprep.subr.msk.bf16.mxu0 %vm5732_vm2, %v3891_v9  ;;  %vm5799_vm14 = vmpackc.low %vm6225_vm0, %vm5672_vm4 }
 0xcef   : > { %v6308_v19 = vsel %vm5756_vm5, 4294967295, %v6307_v19  ;;  %v3280_v53 = vsel %vm6313_vm1, %v4259_v29, %v6312_v5  ;;  %vm6317_vm1 = vcmask 785408   ;;  %v6318_v45 = vand.u32 31, %v5628_v0  ;;  %3869 = vmatpush1.bf16.msk.msra.mxu1 %vm5750_vm13, %v3868_v1  ;;  %vm5814_vm2 = vmpackc.low %vm5644_vm7, %vm6225_vm0 }
 0xcf0   : > { %v3075_v5 = vsel %vm6317_vm1, %v4234_v12, %v6316_v60  ;;  %v6323_v23 = vunpack.i.h.bf16 %v5589_v37  ;;  %vm6324_vm1 = vcmask 777216   ;;  %v3897_v38 = vpack.c.bf16 %v3119_v17, %v3280_v53  ;;  %3872 = vmatprep.subr.msk.bf16.mxu1 %vm5778_vm12, %v3871_v28  ;;  %vm5830_vm13 = vmpackc.low %vm5538_vm15, %vm6225_vm0 }
 0xcf1   : > { %vm5792_vm11 = vcmp.le.s32.totalorder %v6318_v45, 30  ;;  %v4264_v45 = vunpack.i.l.bf16 %v5605_v42  ;;  %v6327_v27 = vunpack.i.l.bf16 %v5583_v33  ;;  %v6329_v9 = vunpack.i.l.bf16 %v5589_v37  ;;  %v4308_v53 = vpop.permute.xlu1 %4307  ;;  %3895 = vmatpush1.bf16.msk.msra.mxu0 %vm5799_vm14, %v3894_v36 }
 0xcf2   : > { %v6320_v58 = vsel %vm5792_vm11, 4294967295, %v6319_v58  ;;  %v3279_v56 = vsel %vm6324_vm1, %v6323_v23, %v4259_v29  ;;  %vm6328_vm1 = vcmask 769024   ;;  %v4280_v23 = vunpack.i.h.bf16 %v5667_v63  ;;  %3898 = vmatprep.subr.msk.bf16.mxu0 %vm5814_vm2, %v3897_v38 }
 0xcf3   : > { %v3116_v29 = vsel %vm6328_vm1, %v4294_v15, %v6327_v27  ;;  %vm6330_vm11 = vcmask 777216   ;;  %v6333_v33 = vunpack.i.h.bf16 %v5615_v35  ;;  %vm6334_vm5 = vcmask 785408  }
 0xcf4   : > { %v3277_v34 = vsel %vm6330_vm11, %v4299_v13, %v6329_v9  ;;  %v4274_v37 = vunpack.i.l.bf16 %v5632_v54  ;;  %v5839_v13 = vpop.permute.xlu0 %3114  ;;  %v3877_v28 = vpack.c.bf16 %v3075_v5, %v5724_v16  ;;  %v6335_v32 = vunpack.i.l.bf16 %v5593_v40 }
 0xcf5   : > { %v3077_v27 = vsel %vm6334_vm5, %v4269_v4, %v6333_v33  ;;  %v3874_v15 = vpack.c.bf16 %v3116_v29, %v3277_v34  ;;  %vm6336_vm11 = vcmask 1031168   ;;  %v4310_v33 = vunpack.i.h.bf16 %v4308_v53  ;;  %vm5856_vm5 = vmpackc.low %vm5611_vm3, %vm6225_vm0  ;;  %v5958_v34 = vld [vmem:[%s6173_s14] sm:$0xf] }
 0xcf6   : > { %v3032_v9 = vsel %vm6336_vm11, %v4304_v48, %v6335_v32  ;;  %v4309_v17 = vunpack.i.l.bf16 %v4308_v53  ;;  %vm6339_vm1 = vcmask 785408   ;;  %v3900_v16 = vpack.c.bf16 %v5727_v57, %v3279_v56 }
 0xcf7   : > { %v3074_v36 = vsel %vm6339_vm1, %v5529_v3, %v4234_v12  ;;  %v6340_v5 = vunpack.i.h.bf16 %v5602_v52  ;;  %vm6341_vm11 = vcmask 1039360   ;;  %v6342_v29 = vunpack.i.h.bf16 %v5605_v42  ;;  %3875 = vmatpush1.bf16.msk.msra.mxu1 %vm5830_vm13, %v3874_v15  ;;  %vm6348_vm13 = vmpackc.low %vm5562_vm6, %vm5546_vm10 }
 0xcf8   : > { %vm6343_vm12 = vcmask 1031168   ;;  %v6344_v3 = vunpack.i.h.bf16 %v5597_v47  ;;  %v6345_v56 = vunpack.i.l.bf16 %v5667_v63  ;;  %3878 = vmatprep.subr.msk.bf16.mxu1 %vm6348_vm13, %v3877_v28  ;;  %v6350_v63 = vunpack.i.h.bf16 %v5632_v54  ;;  %v5898_v26 = vpop.permute.xlu0 %3275  ;;  %3901 = vmatpush1.bf16.msk.msra.mxu0 %vm5856_vm5, %v3900_v16  ;;  %vm6359_vm5 = vmpackc.low %vm5648_vm9, %vm5644_vm7 }
 0xcf9   : > { %v3244_v48 = vsel %vm6341_vm11, %v4239_v25, %v6340_v5  ;;  %v3035_v49 = vsel %vm6343_vm12, %v4264_v45, %v6342_v29  ;;  %vm6346_vm11 = vcmask 506880   ;;  %vm3879_vm12 = vmpackc.low %vm5656_vm8, %vm5538_vm15  ;;  %v3880_v1 = vpack.c.bf16 %v3074_v36, %v3032_v9 }
 0xcfa   : > { %v3076_v57 = vsel %vm6339_vm1, %v6344_v3, %v4269_v4  ;;  %v3903_v38 = vpack.c.bf16 %v3077_v27, %v3035_v49  ;;  %v3205_v12 = vsel %vm6346_vm11, %v6345_v56, %v4280_v23  ;;  %vm6347_vm0 = vmmov %vm6346_vm11  ;;  %vm6349_vm1 = vcmask 1039360  }
 0xcfb   : > { %v3206_v53 = vsel %vm6347_vm0, %v4280_v23, %v4309_v17  ;;  %v3243_v47 = vsel %vm6349_vm1, %v5532_v7, %v4239_v25  ;;  %vm6351_vm2 = vmmov %vm6349_vm1  ;;  %v5896_v23 = vpop.permute.xlu1 %4312  ;;  %vm5904_vm0 = vcmp.le.s32.totalorder %v6352_v14, 30  ;;  %v3883_v7 = vpack.c.bf16 %v3244_v48, %v5443_v2  ;;  %3881 = vmatpush1.bf16.msk.msra.mxu1 %vm3879_vm12, %v3880_v1 }
 0xcfc   : > { %v3246_v4 = vsel %vm6351_vm2, %v4274_v37, %v6350_v63  ;;  %v6355_v25 = vunpack.i.h.bf16 %v5593_v40  ;;  %vm6356_vm10 = vcmask 1031168   ;;  %vm6357_vm6 = vmmov %vm6346_vm11  ;;  %3904 = vmatprep.subr.msk.bf16.mxu0 %vm6359_vm5, %v3903_v38  ;;  %vm6360_vm13 = vnez %v6308_v19 }
 0xcfd   : > { %v3207_v28 = vsel %vm6357_vm6, %v4309_v17, %v4310_v33  ;;  %vm6358_vm2 = vmmov %vm6357_vm6  ;;  %v3222_v40 = vsel %vm6360_vm13, %v3206_v53, 0.0  ;;  %vm6361_vm1 = vnez %v6311_v22  ;;  %v3886_v20 = vpack.c.bf16 %v3243_v47, %v5446_v41  ;;  %v5945_v41 = vpop.permute.xlu0 %3030  ;;  %v6392_v47 = vld [vmem:[#allocation17_spill] sm:$0xff] }
 0xcfe   : > { %v3034_v15 = vsel %vm6356_vm10, %v6355_v25, %v4264_v45  ;;  %v3208_v32 = vsel %vm6358_vm2, %v4310_v33, %v5669_v44  ;;  %vm3905_vm11 = vmpackc.low %vm5672_vm4, %vm5611_vm3  ;;  %v3221_v18 = vsel %vm6361_vm1, %v3205_v12, 0.0  ;;  %v6362_v39 = vmov %v6340_v5  ;;  %v6442_v22 = vld [vmem:[#allocation9_spill] sm:$0xff] }
 0xcff   : > { %v3906_v2 = vpack.c.bf16 %v3076_v57, %v3034_v15  ;;  %vm6363_vm7 = vcmask 1039360   ;;  %v3909_v24 = vpack.c.bf16 %v3246_v4, %v5459_v51  ;;  %v4314_v45 = vunpack.i.l.bf16 %v5896_v23  ;;  %v4318_v9 = vpop.permute.xlu1 %4317 }
 0xd00   : > { %v3245_v44 = vsel %vm6363_vm7, %v6362_v39, %v4274_v37  ;;  %vm6364_vm3 = vnez %v6272_v59  ;;  %v4290_v31 = vunpack.i.h.bf16 %v5710_v21  ;;  %vm6365_vm15 = vnez %v6320_v58  ;;  %v6405_v39 = vld [vmem:[#allocation14_spill] sm:$0xff] }
 0xd01   : > { %3884 = vmatprep.subr.msk.bf16.mxu1 %vm6364_vm3, %v3883_v7  ;;  %v3224_v17 = vsel %vm6365_vm15, %v3208_v32, 0.0  ;;  %3907 = vmatpush1.bf16.msk.msra.mxu0 %vm3905_vm11, %v3906_v2  ;;  %v3223_v52 = vsel %vm5904_vm0, %v3207_v28, 0.0  ;;  %v4320_v51 = vunpack.i.h.bf16 %v4318_v9  ;;  %v4319_v37 = vunpack.i.l.bf16 %v4318_v9  ;;  %v5989_v53 = vpop.permute.xlu0 %4342  ;;  %v6404_v2 = vld [vmem:[#allocation15_spill] sm:$0xff] }
 0xd02   : > { %vm6366_vm9 = vnez %v6297_v30  ;;  %v3365_v59 = vpack.c.bf16 %v3222_v40, %v3222_v40  ;;  %v3364_v33 = vpack.c.bf16 %v3221_v18, %v3221_v18  ;;  %v3912_v46 = vpack.c.bf16 %v3245_v44, %v5456_v50 }
 0xd03   : > { %3910 = vmatprep.subr.msk.bf16.mxu0 %vm6366_vm9, %v3909_v24  ;;  %v4315_v21 = vunpack.i.h.bf16 %v5896_v23  ;;  %vm6367_vm8 = vnez %v6305_v8  ;;  %v6368_v36 = vand.u32 31, %v5625_v43  ;;  %v6371_v30 = vand.u32 31, %v5628_v0  ;;  %v4323_v3 = vpop.permute.xlu1 %4322 }
 0xd04   : > { %3887 = vmatpush1.bf16.msk.msra.mxu1 %vm6367_vm8, %v3886_v20  ;;  %vm6374_vm10 = vcmask 523264   ;;  %vm6375_vm6 = vcmask 515072   ;;  %vm6376_vm2 = vcmask 1043456   ;;  %v3367_v48 = vpack.c.bf16 %v3224_v17, %v3224_v17 }
 0xd05   : > { %vm5962_vm4 = vcmp.ge.s32.totalorder %v6368_v36, 1  ;;  %vm5968_vm12 = vcmp.ge.s32.totalorder %v6371_v30, 1  ;;  %v3163_v8 = vsel %vm6374_vm10, %v4285_v11, %v4314_v45  ;;  %v3317_v5 = vsel %vm6375_vm6, %v4290_v31, %v4319_v37  ;;  %3915 = vmatprep.subr.msk.bf16.mxu1 %vm6376_vm2, %v3365_v59  ;;  %vm6377_vm5 = vmmov %vm6375_vm6  ;;  %3913 = vmatpush1.bf16.msk.msra.mxu0 %vm5799_vm14, %v3912_v46  ;;  %v4353_v30 = vpop.permute.xlu0 %4352 }
 0xd06   : > { %v3366_v29 = vpack.c.bf16 %v3223_v52, %v3223_v52  ;;  %v3319_v43 = vsel %vm6377_vm5, %v4320_v51, %v5773_v61  ;;  %v3917_v49 = vpack.c.bf16 %v3317_v5, %v3163_v8  ;;  %v6378_v0 = vand.u32 31, %v5622_v6  ;;  %vm6382_vm7 = vmmov %vm6377_vm5  ;;  %v6420_v5 = vld [vmem:[#allocation13_spill] sm:$0xff] }
 0xd07   : > { %v6379_v57 = vmov 0  ;;  %v6381_v38 = vunpack.i.h.bf16 %v5591_v62  ;;  %v4300_v12 = vunpack.i.h.bf16 %v5771_v55  ;;  %vm6383_vm3 = vcmask 588800   ;;  %vm6384_vm9 = vmmov %vm6376_vm2  ;;  %v6389_v62 = vld [vmem:[#allocation12_spill] sm:$0xff]  ;;  %v4328_v20 = vpop.permute.xlu1 %4327 }
 0xd08   : > { %vm5981_vm11 = vcmp.ge.s32.totalorder %v6378_v0, 1  ;;  %3888 = vmatmul.mubr.msk.bf16.vlgmr.msra.gmra.mxu1 %vm6383_vm3, %v5958_v34  ;;  %3941 = vmatprep.subr.msk.bf16.mxu0 %vm6384_vm9, %v3367_v48  ;;  %vm6385_vm14 = vmmov %vm6376_vm2  ;;  %vm6386_vm8 = vmmov 1   ;;  %v6387_v6 = vmov 0  ;;  %v6390_v60 = vunpack.i.h.bf16 %v6389_v62 }
 0xd09   : > { %v6380_v57 = vsel %vm5981_vm11, 4294967295, %v6379_v57  ;;  %v3316_v56 = vsel %vm6382_vm7, %v6381_v38, %v4290_v31  ;;  %v3389_v61 = vsel %vm6385_vm14, %v3364_v33, 0  ;;  %vm5998_vm10 = vmpackc.low %vm6386_vm8, %vm5962_vm4  ;;  %vm6391_vm6 = vcmask 523264  }
 0xd0a   : > { %v6388_v6 = vsel %vm5998_vm10, 4294967295, %v6387_v6  ;;  %v3162_v55 = vsel %vm6391_vm6, %v6390_v60, %v4285_v11  ;;  %vm6393_vm2 = vmmov %vm6391_vm6  ;;  %v4324_v4 = vunpack.i.l.bf16 %v4323_v3  ;;  %3489 = vmatpush1.bf16.msra.mxu1 %v3389_v61  ;;  %v6394_v1 = vmov 0 }
 0xd0b   : > { %v3165_v63 = vsel %vm6393_vm2, %v4315_v21, %v6392_v47  ;;  %vm6010_vm5 = vmpackc.low %vm6386_vm8, %vm5968_vm12  ;;  %v6396_v23 = vmov %v6352_v14  ;;  %v6399_v7 = vmov 0   ;;  %vm6400_vm3 = vcmask 515072   ;;  %3918 = vmatprep.subr.msk.bf16.mxu1 %vm5998_vm10, %v3917_v49  ;;  %v4333_v49 = vpop.permute.xlu1 %4332 }
 0xd0c   : > { %v6395_v1 = vsel %vm6010_vm5, 4294967295, %v6394_v1  ;;  %vm6016_vm7 = vcmp.ge.s32.totalorder %v6396_v23, 1  ;;  %3514 = vmatprep.mubr.bf16.mxu1 %v6399_v7  ;;  %v3318_v25 = vsel %vm6400_vm3, %v4319_v37, %v4320_v51  ;;  %v3943_v15 = vpack.c.bf16 %v3319_v43, %v3165_v63  ;;  %vm6028_vm6 = vmpackc.low %vm6386_vm8, %vm5981_vm11 }
 0xd0d   : > { %v4325_v28 = vunpack.i.h.bf16 %v4323_v3  ;;  %vm6401_vm9 = vcmask 588800   ;;  %v3395_v32 = vsel %vm6385_vm14, %v3366_v29, 0  ;;  %v6403_v10 = vsel %vm6028_vm6, 4294967295, %v6402_v10 }
 0xd0e   : > { %3914 = vmatmul.mubr.msk.bf16.vlgmr.msra.gmra.mxu0 %vm6401_vm9, %v5958_v34  ;;  %v4295_v40 = vunpack.i.h.bf16 %v6404_v2  ;;  %v3920_v18 = vpack.c.bf16 %v3316_v56, %v3162_v55  ;;  %v6406_v44 = vunpack.i.h.bf16 %v6405_v39  ;;  %vm6407_vm2 = vcmask 777216   ;;  %vm6044_vm9 = vmpackc.low %vm6386_vm8, %vm6016_vm7 }
 0xd0f   : > { %3530 = vmatpush1.bf16.msra.mxu0 %v3395_v32  ;;  %vm6408_vm3 = vcmask 523264   ;;  %v4330_v31 = vunpack.i.h.bf16 %v4328_v20  ;;  %v4329_v17 = vunpack.i.l.bf16 %v4328_v20  ;;  %3555 = vmatprep.mubr.bf16.mxu0 %v6399_v7  ;;  %vm6411_vm14 = vcmask 769024   ;;  %v4338_v63 = vpop.permute.xlu1 %4337 }
 0xd10   : > { %v3281_v24 = vsel %vm6407_vm2, %v6406_v44, %v4300_v12  ;;  %v3164_v11 = vsel %vm6408_vm3, %v4314_v45, %v4315_v21  ;;  %3944 = vmatprep.subr.msk.bf16.mxu0 %vm6010_vm5, %v3943_v15  ;;  %v3121_v51 = vsel %vm6411_vm14, %v4295_v40, %v4324_v4  ;;  %v4345_v37 = vunpack.i.h.bf16 %v5989_v53  ;;  %3921 = vmatpush1.bf16.msk.msra.mxu1 %vm6028_vm6, %v3920_v18  ;;  %vm6057_vm2 = vmpackc.low %vm6360_vm13, %vm6386_vm8 }
 0xd11   : > { %v3946_v52 = vpack.c.bf16 %v3318_v25, %v3164_v11  ;;  %v4344_v45 = vunpack.i.l.bf16 %v5989_v53  ;;  %vm6414_vm3 = vmmov %vm6411_vm14  ;;  %vm6415_vm10 = vcmask 777216   ;;  %v6421_v48 = vunpack.i.h.bf16 %v6420_v5  ;;  %v6443_v11 = vld [vmem:[#allocation8_spill] sm:$0xff] }
 0xd12   : > { %v3123_v33 = vsel %vm6414_vm3, %v4325_v28, %v5839_v13  ;;  %v3282_v46 = vsel %vm6415_vm10, %v4300_v12, %v4329_v17  ;;  %vm6416_vm14 = vmmov %vm6415_vm10  ;;  %v4335_v56 = vunpack.i.h.bf16 %v4333_v49  ;;  %v4355_v53 = vunpack.i.h.bf16 %v4353_v30 }
 0xd13   : > { %v3283_v21 = vsel %vm6416_vm14, %v4329_v17, %v4330_v31  ;;  %vm6417_vm5 = vmmov %vm6415_vm10  ;;  %v3923_v13 = vpack.c.bf16 %v3121_v51, %v3282_v46  ;;  %3947 = vmatpush1.bf16.msk.msra.mxu0 %vm6044_vm9, %v3946_v52  ;;  %v4354_v61 = vunpack.i.l.bf16 %v4353_v30  ;;  %v4334_v62 = vunpack.i.l.bf16 %v4333_v49  ;;  %v4348_v16 = vpop.permute.xlu1 %4347  ;;  %v6444_v17 = vld [vmem:[#allocation10_spill] sm:$0xff] }
 0xd14   : > { %v3284_v36 = vsel %vm6417_vm5, %v4330_v31, %v5898_v26  ;;  %vm6070_vm6 = vmpackc.low %vm6365_vm15, %vm6386_vm8  ;;  %v6423_v26 = vld [vmem:[#allocation16_spill] sm:$0xff]  ;;  %vm6426_vm14 = vcmask 1031168   ;;  %v4339_v23 = vunpack.i.l.bf16 %v4338_v63  ;;  %v6427_v7 = vunpack.i.h.bf16 %v5605_v42 }
 0xd15   : > { %vm6422_vm11 = vmmov %vm6414_vm3  ;;  %v3949_v43 = vpack.c.bf16 %v3123_v33, %v3284_v36  ;;  %v4305_v3 = vunpack.i.h.bf16 %v6423_v26  ;;  %3924 = vmatprep.subr.msk.bf16.mxu1 %vm6057_vm2, %v3923_v13  ;;  %v3039_v55 = vsel %vm6426_vm14, %v4335_v56, %v5945_v41  ;;  %v6432_v41 = vunpack.i.h.bf16 %v5615_v35  ;;  %v6436_v35 = vld [vmem:[#allocation11_spill] sm:$0xff] }
 0xd16   : > { %v3120_v29 = vsel %vm6422_vm11, %v6421_v48, %v4295_v40  ;;  %vm3925_vm10 = vmpackc.low %vm6361_vm1, %vm6386_vm8  ;;  %v4350_v20 = vunpack.i.h.bf16 %v4348_v16  ;;  %v4349_v39 = vunpack.i.l.bf16 %v4348_v16  ;;  %v6437_v27 = vunpack.i.h.bf16 %v5632_v54 }
 0xd17   : > { %v3926_v0 = vpack.c.bf16 %v3120_v29, %v3281_v24  ;;  %vm6424_vm5 = vmmov %vm6414_vm3  ;;  %3950 = vmatprep.subr.msk.bf16.mxu0 %vm6070_vm6, %v3949_v43  ;;  %vm6425_vm3 = vcmask 785408   ;;  %vm6429_vm6 = vcmask 1039360  }
 0xd18   : > { %v3122_v38 = vsel %vm6424_vm5, %v4324_v4, %v4325_v28  ;;  %vm3951_vm11 = vmpackc.low %vm5904_vm0, %vm6386_vm8  ;;  %v3081_v60 = vsel %vm6425_vm3, %v4344_v45, %v4345_v37  ;;  %v4340_v4 = vunpack.i.h.bf16 %v4338_v63  ;;  %v3250_v15 = vsel %vm6429_vm6, %v4354_v61, %v4355_v53 }
 0xd19   : > { %v3952_v12 = vpack.c.bf16 %v3122_v38, %v3283_v21  ;;  %3927 = vmatpush1.bf16.msk.msra.mxu1 %vm3925_vm10, %v3926_v0  ;;  %vm3954_vm8 = vmpackc.low %vm5968_vm12, %vm6365_vm15  ;;  %v3955_v47 = vpack.c.bf16 %v3081_v60, %v3039_v55  ;;  %v3961_v18 = vpack.c.bf16 %v3250_v15, %v6436_v35 }
 0xd1a   : > { %vm6428_vm2 = vmmov %vm6426_vm14  ;;  %v3080_v32 = vsel %vm6425_vm3, %v4340_v4, %v4344_v45  ;;  %v3371_v54 = vpop.permute.xlu1 %3370 }
 0xd1b   : > { %3953 = vmatpush1.bf16.msk.msra.mxu0 %vm3951_vm11, %v3952_v12  ;;  %v3036_v25 = vsel %vm6428_vm2, %v6427_v7, %v4305_v3  ;;  %vm6430_vm5 = vmmov %vm6428_vm2 }
 0xd1c   : > { %v3037_v28 = vsel %vm6430_vm5, %v4305_v3, %v4334_v62  ;;  %3956 = vmatprep.subr.msk.bf16.mxu0 %vm3954_vm8, %v3955_v47  ;;  %vm3928_vm10 = vmpackc.low %vm5962_vm4, %vm6360_vm13  ;;  %vm6435_vm13 = vnez %v6380_v57  ;;  %vm6447_vm5 = vcmask 588800  }
 0xd1d   : > { %vm6431_vm15 = vmmov %vm6428_vm2  ;;  %vm6441_vm2 = vnez %v6395_v1 }
 0xd1e   : > { %v3038_v58 = vsel %vm6431_vm15, %v4334_v62, %v4335_v56  ;;  %vm6433_vm12 = vmmov %vm6425_vm3 }
 0xd1f   : > { %v3078_v50 = vsel %vm6433_vm12, %v6432_v41, %v4339_v23  ;;  %vm6434_vm11 = vmmov %vm6425_vm3  ;;  %v3958_v40 = vpack.c.bf16 %v3080_v32, %v3038_v58 }
 0xd20   : > { %v3079_v42 = vsel %vm6434_vm11, %v4339_v23, %v4340_v4  ;;  %vm3957_vm14 = vmpackc.low %vm6016_vm7, %vm5904_vm0  ;;  %v3932_v19 = vpack.c.bf16 %v3078_v50, %v3036_v25 }
 0xd21   : > { %v3929_v2 = vpack.c.bf16 %v3079_v42, %v3037_v28  ;;  %vm3931_vm4 = vmpackc.low %vm6435_vm13, %vm6361_vm1  ;;  %3959 = vmatpush1.bf16.msk.msra.mxu0 %vm3957_vm14, %v3958_v40  ;;  %vm6445_vm1 = vnez %v6388_v6 }
 0xd22   : > { %vm6438_vm8 = vmmov %vm6429_vm6  ;;  %3962 = vmatprep.subr.msk.bf16.mxu0 %vm6441_vm2, %v3961_v18 }
 0xd23   : > { %3930 = vmatprep.subr.msk.bf16.mxu1 %vm3928_vm10, %v3929_v2  ;;  %v3247_v14 = vsel %vm6438_vm8, %v6437_v27, %v4349_v39  ;;  %vm6439_vm0 = vmmov %vm6429_vm6  ;;  %vm6446_vm6 = vnez %v6403_v10 }
 0xd24   : > { %v3248_v44 = vsel %vm6439_vm0, %v4349_v39, %v4350_v20  ;;  %vm6440_vm7 = vmmov %vm6439_vm0  ;;  %3933 = vmatpush1.bf16.msk.msra.mxu1 %vm3931_vm4, %v3932_v19  ;;  %v3938_v31 = vpack.c.bf16 %v3247_v14, %v6443_v11 }
 0xd25   : > { %v3249_v24 = vsel %vm6440_vm7, %v4350_v20, %v4354_v61  ;;  %v3935_v57 = vpack.c.bf16 %v3248_v44, %v6442_v22  ;;  %vm6448_vm10 = vmmov %vm6447_vm5 }
 0xd26   : > { %v3964_v52 = vpack.c.bf16 %v3249_v24, %v6444_v17 }
 0xd27   : > { %3936 = vmatprep.subr.msk.bf16.mxu1 %vm6445_vm1, %v3935_v57 }
 0xd28   : > { %3965 = vmatpush1.bf16.msk.msra.mxu0 %vm6044_vm9, %v3964_v52  ;;  %3939 = vmatpush1.bf16.msk.msra.mxu1 %vm6446_vm6, %v3938_v31 }
 0xd2b   : > { %3966 = vmatmul.mubr.msk.bf16.vlgmr.msra.gmra.mxu0 %vm6447_vm5, %v5958_v34  ;;  %3940 = vmatmul.mubr.msk.bf16.vlgmr.msra.gmra.mxu1 %vm6448_vm10, %v5958_v34 }
 0xdc8   : > { %v3434_v1 = vpop.f32.mrf.mxu1 }
 0xdc9   : > { %v3435_v51 = vadd.f32 %v3434_v1, %v3371_v54 }
 0xdca   : > { %v3436_v6 = vpop.f32.mrf.mxu1 }
 0xdcb   : > { %v3564_v9 = vmax.f32 %v3435_v51, 0.0  ;;  %v3437_v37 = vadd.f32 %v3436_v6, %v3371_v54 }
 0xdcc   : > { %v3438_v34 = vpop.f32.mrf.mxu1 }
 0xdcd   : > { %3572 = vst [vmem:[%s6146_s29] sm:$0xff] %v3564_v9  ;;  %v3565_v33 = vmax.f32 %v3437_v37, 0.0 }
 0xdce   : > { %v3475_v10 = vpop.f32.mrf.mxu0  ;;  %v3439_v30 = vpop.f32.mrf.mxu1 }
 0xdcf   : > { %v3476_v45 = vadd.f32 %v3475_v10, %v3371_v54  ;;  %3573 = vst [vmem:[%s6146_s29 + $0x8] sm:$0xff] %v3565_v33 }
 0xdd0   : > { %v3477_v59 = vpop.f32.mrf.mxu0 }
 0xdd1   : > { %v3566_v46 = vmax.f32 %v3476_v45, 0.0  ;;  %v3478_v21 = vadd.f32 %v3477_v59, %v3371_v54 }
 0xdd2   : > { %v3479_v36 = vpop.f32.mrf.mxu0 }
 0xdd3   : > { %3574 = vst [vmem:[%s6146_s29 + $0x10] sm:$0xff] %v3566_v46  ;;  %v3567_v8 = vmax.f32 %v3478_v21, 0.0 }
 0xdd4   : > { %v3480_v5 = vpop.f32.mrf.mxu0 }
 0xdd5   : > { %3575 = vst [vmem:[%s6146_s29 + $0x18] sm:$0xff] %v3567_v8 }
 0xdeb   : > { %v3557_v48 = vpop.f32.mrf.mxu0  ;;  %v3516_v13 = vpop.f32.mrf.mxu1 }
 0xdec   : > { %v3558_v29 = vadd.f32 %v3557_v48, %v3371_v54  ;;  %v3517_v43 = vadd.f32 %v3516_v13, %v3371_v54 }
 0xded   : > { %v3559_v49 = vpop.f32.mrf.mxu0  ;;  %v3518_v0 = vpop.f32.mrf.mxu1 }
 0xdee   : > { %v3570_v26 = vmax.f32 %v3558_v29, 0.0  ;;  %v3560_v3 = vadd.f32 %v3559_v49, %v3371_v54  ;;  %v3568_v38 = vmax.f32 %v3517_v43, 0.0  ;;  %v3519_v56 = vadd.f32 %v3518_v0, %v3371_v54 }
 0xdef   : > { %v3561_v12 = vpop.f32.mrf.mxu0  ;;  %v3520_v61 = vpop.f32.mrf.mxu1 }
 0xdf0   : > { %3578 = vst [vmem:[%s6146_s29 + $0x30] sm:$0xff] %v3570_v26  ;;  %v3571_v53 = vmax.f32 %v3560_v3, 0.0  ;;  %3576 = vst [vmem:[%s6146_s29 + $0x20] sm:$0xff] %v3568_v38  ;;  %v3569_v62 = vmax.f32 %v3519_v56, 0.0 }
 0xdf1   : > { %v3562_v60 = vpop.f32.mrf.mxu0  ;;  %v3521_v55 = vpop.f32.mrf.mxu1 }
 0xdf2   : > { %3579 = vst [vmem:[%s6146_s29 + $0x38] sm:$0xff] %v3571_v53  ;;  %3577 = vst [vmem:[%s6146_s29 + $0x28] sm:$0xff] %v3569_v62 }
 0xdf3 PF: > { %s28_s21 = sadd.s32 1, %s4454_s21  }
 0xdf4   : > { %p25_p2 = scmp.ge.s32.totalorder %s28_s21, 4  }
 0xdf6   :  { %27 = sbr.rel (!%p25_p2) target bundleno = 4 (0x4), region = 123 }
 0xdfb   :  { %3601 = vsyncpa [#allocation3], 1 }
 0xdfc   :  { %3603 = vsyncpa [#allocation3 + $0x1], 1 }
 0xdfd   :  { %3604 = vsyncpa [#allocation5], 1 }

</bundles_post_ra>
